<compile_context>
chip_gen: v7x
topology: tpu7x:2x2x1
jax: 0.10.0
libtpu: 0.0.40
codegen_flags: <defaults>
</compile_context>

<pallas_src>
import math

import jax
import jax.numpy as jnp
from jax.experimental import pallas as pl
from jax.experimental.pallas import tpu as pltpu

EMB_S = 32              # per-head embedding size
HEAD_CNT = 8
EMB = EMB_S * HEAD_CNT  # 256
FF_DIM = 4 * EMB        # 1024
LN_EPS = 1e-5


def _gelu_exact(x):
    # PyTorch nn.GELU() default = exact erf formulation.
    # erf via Abramowitz & Stegun 7.1.26 rational approximation (|err| < 1.5e-7).
    a1, a2, a3, a4, a5 = 0.254829592, -0.284496736, 1.421413741, -1.453152027, 1.061405429
    p = 0.3275911
    u = x * (1.0 / math.sqrt(2.0))
    au = jnp.abs(u)
    t = 1.0 / (1.0 + p * au)
    poly = ((((a5 * t + a4) * t + a3) * t + a2) * t + a1) * t
    erf_abs = 1.0 - poly * jnp.exp(-au * au)     # exp lands on the EUP slot
    erf_u = jnp.where(u >= 0.0, erf_abs, -erf_abs)
    return 0.5 * x * (1.0 + erf_u)


def _layernorm(x, gamma, beta):
    # Single-pass statistics: var = E[x^2] - mean^2 (f32, O(1) activations).
    inv_n = 1.0 / x.shape[-1]
    mean = jnp.sum(x, axis=-1, keepdims=True) * inv_n
    mean_sq = jnp.sum(x * x, axis=-1, keepdims=True) * inv_n
    var = mean_sq - mean * mean
    return (x - mean) * jax.lax.rsqrt(var + LN_EPS) * gamma + beta


def encoder_block_kernel(x_ref, wkqv_ref, wproj_ref, w1_ref, b1_ref,
                         w2_ref, b2_ref, g1_ref, be1_ref, g2_ref, be2_ref,
                         o_ref):
    TB, T, E = x_ref.shape
    M = TB * T
    x2 = x_ref[...].astype(jnp.float32).reshape(M, E)            # (M, EMB) f32

    # ---- fused QKV: one lane-dense bf16 MXU matmul (f32 accumulation) against
    #      the block-diagonal pre-transposed weight; 1/sqrt(emb_s) is folded
    #      into the Q columns host-side.
    kqv = jnp.dot(x2.astype(jnp.bfloat16), wkqv_ref[...],
                  preferred_element_type=jnp.float32)            # (M, 3*EMB)
    kqv3 = kqv.reshape(TB, T, 3 * E)                             # [K_all | Q_all | V_all]

    # ---- attention per head (static unroll, H=8), batched over the TB rows.
    #      The proj matmul is decomposed along K: each head's context directly
    #      accumulates into attn_out (no scratch stores, no concatenate).
    attn_out = jnp.zeros((M, E), jnp.float32)
    for h in range(HEAD_CNT):
        lo = h * EMB_S
        hi = lo + EMB_S
        k_h = kqv3[:, :, lo:hi].astype(jnp.bfloat16)             # (TB, T, S)
        q_h = kqv3[:, :, E + lo:E + hi].astype(jnp.bfloat16)     # already scaled
        v_h = kqv3[:, :, 2 * E + lo:2 * E + hi].astype(jnp.bfloat16)

        logits = jnp.einsum('bqd,bkd->bqk', q_h, k_h,
                            preferred_element_type=jnp.float32)  # (TB, T, T) f32
        mx = jnp.max(logits, axis=-1, keepdims=True)
        p = jnp.exp(logits - mx)
        inv_den = 1.0 / jnp.sum(p, axis=-1, keepdims=True)       # (TB, T, 1)
        ctx = jnp.einsum('bqk,bkd->bqd', p.astype(jnp.bfloat16), v_h,
                         preferred_element_type=jnp.float32)     # (TB, T, S)
        ctx = (ctx * inv_den).reshape(M, EMB_S)                  # denom folded in

        attn_out = attn_out + jnp.dot(ctx.astype(jnp.bfloat16),
                                      wproj_ref[lo:hi, :],
                                      preferred_element_type=jnp.float32)

    # dropout = identity in eval mode
    h1 = _layernorm(x2 + attn_out, g1_ref[...], be1_ref[...])    # (M, EMB)

    # ---- feed-forward (bf16 MXU operands, f32 accumulation)
    ff = jnp.dot(h1.astype(jnp.bfloat16), w1_ref[...],
                 preferred_element_type=jnp.float32) + b1_ref[...]
    ff = _gelu_exact(ff)                                         # (M, 4*EMB) f32
    ff = jnp.dot(ff.astype(jnp.bfloat16), w2_ref[...],
                 preferred_element_type=jnp.float32) + b2_ref[...]

    out = _layernorm(h1 + ff, g2_ref[...], be2_ref[...])
    o_ref[...] = out.reshape(TB, T, E).astype(o_ref.dtype)


def prepare_params(params):
    """One-time host-side weight prep: block-diag QKV (scale folded into Q),
    pre-transpose everything, cast matmul weights to bf16."""
    wkqv, wproj, w1, b1, w2, b2, g1, be1, g2, be2 = params
    S, H, E = EMB_S, HEAD_CNT, EMB
    wk = wkqv[:S, :].T                                   # (S, S): xh @ wk = k_h
    wq = wkqv[S:2 * S, :].T * (1.0 / math.sqrt(S))       # fold attention scale
    wv = wkqv[2 * S:, :].T
    wblk = jnp.zeros((E, 3 * E), jnp.float32)
    for h in range(H):
        r = slice(h * S, (h + 1) * S)
        wblk = wblk.at[r, h * S:(h + 1) * S].set(wk)
        wblk = wblk.at[r, E + h * S:E + (h + 1) * S].set(wq)
        wblk = wblk.at[r, 2 * E + h * S:2 * E + (h + 1) * S].set(wv)
    bf = jnp.bfloat16
    return (wblk.astype(bf), wproj.T.astype(bf), w1.T.astype(bf), b1,
            w2.T.astype(bf), b2, g1, be1, g2, be2)


def _pick_tb(B, T, max_rows=1024):
    """Rows-per-grid-step: fill the MXU M-dim, stay within v7x's 64 MiB VMEM
    (cap tb*T at ~1024), and keep >=2 grid steps whenever B > 1 so both
    TensorCores get work (megacore / v7x)."""
    divisors = [d for d in range(1, B + 1) if B % d == 0]
    fits = [d for d in divisors if d * T <= max_rows] or [1]
    multi = [d for d in fits if B // d >= 2]
    pool = multi if (B > 1 and multi) else fits
    return max(pool)


def encoder_block(x, prepared, tb=None):
    """prepared = prepare_params(params), computed ONCE at init time."""
    B, T, E = x.shape
    assert E == EMB
    if tb is None:
        tb = _pick_tb(B, T)
    assert B % tb == 0
    grid = (B // tb,)

    def full_spec(arr):
        nd = arr.ndim
        return pl.BlockSpec(arr.shape, lambda b, _nd=nd: (0,) * _nd)

    in_specs = [pl.BlockSpec((tb, T, E), lambda b: (b, 0, 0))]
    in_specs += [full_spec(w) for w in prepared]
    out_spec = pl.BlockSpec((tb, T, E), lambda b: (b, 0, 0))

    # Advisory cost estimate so XLA schedules around the custom call.
    Mtot = B * T
    mm_flops = (2 * Mtot * (E * 3 * E + E * E + E * FF_DIM + FF_DIM * E)
                + 4 * B * HEAD_CNT * T * T * EMB_S)
    transcendentals = B * HEAD_CNT * T * T + Mtot * FF_DIM + 2 * Mtot
    weight_bytes = sum(int(w.size) * w.dtype.itemsize for w in prepared)
    bytes_accessed = 2 * Mtot * E * x.dtype.itemsize + weight_bytes
    cost = pl.CostEstimate(flops=int(mm_flops),
                           transcendentals=int(transcendentals),
                           bytes_accessed=int(bytes_accessed))

    return pl.pallas_call(
        encoder_block_kernel,
        out_shape=jax.ShapeDtypeStruct((B, T, E), x.dtype),
        grid=grid,
        in_specs=in_specs,
        out_specs=out_spec,
        compiler_params=pltpu.CompilerParams(
            dimension_semantics=("parallel",),
            vmem_limit_bytes=64 * 1024 * 1024),
        cost_estimate=cost,
    )(x, *prepared)


def reference(x, params):
    # Pure-JAX f32 mirror of the PyTorch forward (eval mode), on ORIGINAL params.
    wkqv, wproj, w1, b1, w2, b2, g1, be1, g2, be2 = params
    B, T, E = x.shape
    xh = x.reshape(B, T, HEAD_CNT, EMB_S)
    kqv = jnp.einsum('bths,os->btho', xh, wkqv)
    k, q, v = kqv[..., :EMB_S], kqv[..., EMB_S:2 * EMB_S], kqv[..., 2 * EMB_S:]
    att = jax.nn.softmax(jnp.einsum('bihk,bjhk->bijh', q, k) / math.sqrt(EMB_S), axis=2)
    res = jnp.einsum('btih,bihs->bths', att, v).reshape(B, T, E)
    attn_out = res @ wproj.T

    def ln(z, g, be):
        mu = z.mean(-1, keepdims=True)
        var = ((z - mu) ** 2).mean(-1, keepdims=True)
        return (z - mu) / jnp.sqrt(var + LN_EPS) * g.reshape(-1) + be.reshape(-1)

    h1 = ln(x + attn_out, g1, be1)
    ff = jax.nn.gelu(h1 @ w1.T + b1.reshape(-1), approximate=False)
    ff = ff @ w2.T + b2.reshape(-1)
    return ln(h1 + ff, g2, be2)


def make_params(key):
    ks = jax.random.split(key, 8)
    wkqv = 0.05 * jax.random.normal(ks[0], (3 * EMB_S, EMB_S), jnp.float32)   # kqv.weight
    wproj = 0.05 * jax.random.normal(ks[1], (EMB, EMB), jnp.float32)          # proj.weight
    w1 = 0.05 * jax.random.normal(ks[2], (4 * EMB, EMB), jnp.float32)         # ff[0].weight
    b1 = 0.05 * jax.random.normal(ks[3], (1, 4 * EMB), jnp.float32)           # ff[0].bias
    w2 = 0.05 * jax.random.normal(ks[4], (EMB, 4 * EMB), jnp.float32)         # ff[2].weight
    b2 = 0.05 * jax.random.normal(ks[5], (1, EMB), jnp.float32)               # ff[2].bias
    g1 = 1.0 + 0.05 * jax.random.normal(ks[6], (1, EMB), jnp.float32)         # ln1.weight
    be1 = 0.05 * jax.random.normal(ks[7], (1, EMB), jnp.float32)              # ln1.bias
    g2 = 1.0 + 0.05 * jax.random.normal(jax.random.fold_in(key, 101), (1, EMB), jnp.float32)
    be2 = 0.05 * jax.random.normal(jax.random.fold_in(key, 102), (1, EMB), jnp.float32)
    return (wkqv, wproj, w1, b1, w2, b2, g1, be1, g2, be2)


if __name__ == "__main__":
    key = jax.random.PRNGKey(0)
    kx, kp = jax.random.split(key)

    B, T = 2, 8
    x = jax.random.normal(kx, (B, T, EMB), jnp.float32)
    params = make_params(kp)
    prepared = prepare_params(params)          # hoisted out of the call path

    out = jax.block_until_ready(encoder_block(x, prepared))
    ref = reference(x, params)
    assert out.shape == (B, T, EMB)
    # bf16 MXU operands (f32 accumulation) vs the f32 reference: allow ~1e-2 drift.
    err = float(jnp.max(jnp.abs(out - ref)))
    assert jnp.allclose(out, ref, atol=2e-2, rtol=2e-2), err

    print("KERNEL_OK")
</pallas_src>

<mosaic_0001>
module attributes {stable_mosaic.version = 11 : i64} {
  func.func @encoder_block_kernel(%arg0: i32, %arg1: memref<1x8x256xf32, #tpu.memory_space<vmem>>, %arg2: memref<256x768xbf16, #tpu.memory_space<vmem>>, %arg3: memref<256x256xbf16, #tpu.memory_space<vmem>>, %arg4: memref<256x1024xbf16, #tpu.memory_space<vmem>>, %arg5: memref<1x1024xf32, #tpu.memory_space<vmem>>, %arg6: memref<1024x256xbf16, #tpu.memory_space<vmem>>, %arg7: memref<1x256xf32, #tpu.memory_space<vmem>>, %arg8: memref<1x256xf32, #tpu.memory_space<vmem>>, %arg9: memref<1x256xf32, #tpu.memory_space<vmem>>, %arg10: memref<1x256xf32, #tpu.memory_space<vmem>>, %arg11: memref<1x256xf32, #tpu.memory_space<vmem>>, %arg12: memref<1x8x256xf32, #tpu.memory_space<vmem>>) attributes {dimension_semantics = [#tpu.dimension_semantics<parallel>], iteration_bounds = array<i64: 2>, scalar_prefetch = 0 : i64, scratch_operands = 0 : i64, tpu.core_type = #tpu.core_type<tc>, window_params = [{transform_indices = @transform_0, window_bounds = array<i64: 1, 8, 256>}, {pipeline_mode = #tpu.pipeline_mode<synchronous>, transform_indices = @transform_1, window_bounds = array<i64: 256, 768>}, {pipeline_mode = #tpu.pipeline_mode<synchronous>, transform_indices = @transform_2, window_bounds = array<i64: 256, 256>}, {pipeline_mode = #tpu.pipeline_mode<synchronous>, transform_indices = @transform_3, window_bounds = array<i64: 256, 1024>}, {pipeline_mode = #tpu.pipeline_mode<synchronous>, transform_indices = @transform_4, window_bounds = array<i64: 1, 1024>}, {pipeline_mode = #tpu.pipeline_mode<synchronous>, transform_indices = @transform_5, window_bounds = array<i64: 1024, 256>}, {pipeline_mode = #tpu.pipeline_mode<synchronous>, transform_indices = @transform_6, window_bounds = array<i64: 1, 256>}, {pipeline_mode = #tpu.pipeline_mode<synchronous>, transform_indices = @transform_7, window_bounds = array<i64: 1, 256>}, {pipeline_mode = #tpu.pipeline_mode<synchronous>, transform_indices = @transform_8, window_bounds = array<i64: 1, 256>}, {pipeline_mode = #tpu.pipeline_mode<synchronous>, transform_indices = @transform_9, window_bounds = array<i64: 1, 256>}, {pipeline_mode = #tpu.pipeline_mode<synchronous>, transform_indices = @transform_10, window_bounds = array<i64: 1, 256>}, {transform_indices = @transform_11, window_bounds = array<i64: 1, 8, 256>}]} {
    %c0 = arith.constant 0 : index
    %c0_0 = arith.constant 0 : index
    %c0_1 = arith.constant 0 : index
    %0 = vector.load %arg1[%c0, %c0_0, %c0_1] : memref<1x8x256xf32, #tpu.memory_space<vmem>>, vector<1x8x256xf32>
    %1 = vector.shape_cast %0 : vector<1x8x256xf32> to vector<8x256xf32>
    %2 = arith.truncf %1 : vector<8x256xf32> to vector<8x256xbf16>
    %c0_2 = arith.constant 0 : index
    %c0_3 = arith.constant 0 : index
    %3 = vector.load %arg2[%c0_2, %c0_3] : memref<256x768xbf16, #tpu.memory_space<vmem>>, vector<256x768xbf16>
    %cst = arith.constant dense<0.000000e+00> : vector<8x768xf32>
    %4 = tpu.matmul %2, %3, %cst {dimension_numbers = #tpu.dot_dimension_numbers<[1], [0], [0], [1], [0, 0, 1, 1], [], []>} : vector<8x256xbf16>, vector<256x768xbf16>, vector<8x768xf32> -> vector<8x768xf32>
    %5 = vector.shape_cast %4 : vector<8x768xf32> to vector<1x8x768xf32>
    %cst_4 = arith.constant 0.000000e+00 : f32
    %6 = vector.broadcast %cst_4 : f32 to vector<8x256xf32>
    %7 = vector.extract_strided_slice %5 {offsets = [0, 0, 0], sizes = [1, 8, 32], strides = [1, 1, 1]} : vector<1x8x768xf32> to vector<1x8x32xf32>
    %8 = arith.truncf %7 : vector<1x8x32xf32> to vector<1x8x32xbf16>
    %9 = vector.extract_strided_slice %5 {offsets = [0, 0, 256], sizes = [1, 8, 32], strides = [1, 1, 1]} : vector<1x8x768xf32> to vector<1x8x32xf32>
    %10 = arith.truncf %9 : vector<1x8x32xf32> to vector<1x8x32xbf16>
    %11 = vector.extract_strided_slice %5 {offsets = [0, 0, 512], sizes = [1, 8, 32], strides = [1, 1, 1]} : vector<1x8x768xf32> to vector<1x8x32xf32>
    %12 = arith.truncf %11 : vector<1x8x32xf32> to vector<1x8x32xbf16>
    "tpu.trace_start"() <{level = 10 : i32, message = "bqd,bkd->bqk"}> : () -> ()
    %cst_5 = arith.constant dense<0.000000e+00> : vector<1x8x8xf32>
    %13 = tpu.matmul %10, %8, %cst_5 {dimension_numbers = #tpu.dot_dimension_numbers<[2], [2], [1], [1], [0, 0, 0, 1, 1, 1], [0], [0]>} : vector<1x8x32xbf16>, vector<1x8x32xbf16>, vector<1x8x8xf32> -> vector<1x8x8xf32>
    "tpu.trace_stop"() : () -> ()
    %cst_6 = arith.constant dense<0xFF800000> : vector<1x8xf32>
    %14 = vector.multi_reduction <maximumf>, %13, %cst_6 [2] : vector<1x8x8xf32> to vector<1x8xf32>
    %15 = vector.shape_cast %14 : vector<1x8xf32> to vector<1x8x1xf32>
    %16 = vector.broadcast %15 : vector<1x8x1xf32> to vector<1x8x8xf32>
    %17 = arith.subf %13, %16 : vector<1x8x8xf32>
    %18 = math.exp %17 : vector<1x8x8xf32>
    %cst_7 = arith.constant dense<0.000000e+00> : vector<1x8xf32>
    %19 = vector.multi_reduction <add>, %18, %cst_7 [2] : vector<1x8x8xf32> to vector<1x8xf32>
    %20 = vector.shape_cast %19 : vector<1x8xf32> to vector<1x8x1xf32>
    %cst_8 = arith.constant 1.000000e+00 : f32
    %21 = vector.broadcast %cst_8 : f32 to vector<1x8x1xf32>
    %22 = arith.divf %21, %20 : vector<1x8x1xf32>
    %23 = arith.truncf %18 : vector<1x8x8xf32> to vector<1x8x8xbf16>
    "tpu.trace_start"() <{level = 10 : i32, message = "bqk,bkd->bqd"}> : () -> ()
    %cst_9 = arith.constant dense<0.000000e+00> : vector<1x8x32xf32>
    %24 = tpu.matmul %23, %12, %cst_9 {dimension_numbers = #tpu.dot_dimension_numbers<[2], [1], [1], [2], [0, 0, 0, 1, 1, 2], [0], [0]>} : vector<1x8x8xbf16>, vector<1x8x32xbf16>, vector<1x8x32xf32> -> vector<1x8x32xf32>
    "tpu.trace_stop"() : () -> ()
    %25 = vector.broadcast %22 : vector<1x8x1xf32> to vector<1x8x32xf32>
    %26 = arith.mulf %24, %25 : vector<1x8x32xf32>
    %27 = vector.shape_cast %26 : vector<1x8x32xf32> to vector<8x32xf32>
    %28 = arith.truncf %27 : vector<8x32xf32> to vector<8x32xbf16>
    %c0_10 = arith.constant 0 : index
    %c0_11 = arith.constant 0 : index
    %29 = vector.load %arg3[%c0_10, %c0_11] : memref<256x256xbf16, #tpu.memory_space<vmem>>, vector<32x256xbf16>
    %cst_12 = arith.constant dense<0.000000e+00> : vector<8x256xf32>
    %30 = tpu.matmul %28, %29, %cst_12 {dimension_numbers = #tpu.dot_dimension_numbers<[1], [0], [0], [1], [0, 0, 1, 1], [], []>} : vector<8x32xbf16>, vector<32x256xbf16>, vector<8x256xf32> -> vector<8x256xf32>
    %31 = arith.addf %6, %30 : vector<8x256xf32>
    %32 = vector.extract_strided_slice %5 {offsets = [0, 0, 32], sizes = [1, 8, 32], strides = [1, 1, 1]} : vector<1x8x768xf32> to vector<1x8x32xf32>
    %33 = arith.truncf %32 : vector<1x8x32xf32> to vector<1x8x32xbf16>
    %34 = vector.extract_strided_slice %5 {offsets = [0, 0, 288], sizes = [1, 8, 32], strides = [1, 1, 1]} : vector<1x8x768xf32> to vector<1x8x32xf32>
    %35 = arith.truncf %34 : vector<1x8x32xf32> to vector<1x8x32xbf16>
    %36 = vector.extract_strided_slice %5 {offsets = [0, 0, 544], sizes = [1, 8, 32], strides = [1, 1, 1]} : vector<1x8x768xf32> to vector<1x8x32xf32>
    %37 = arith.truncf %36 : vector<1x8x32xf32> to vector<1x8x32xbf16>
    "tpu.trace_start"() <{level = 10 : i32, message = "bqd,bkd->bqk"}> : () -> ()
    %cst_13 = arith.constant dense<0.000000e+00> : vector<1x8x8xf32>
    %38 = tpu.matmul %35, %33, %cst_13 {dimension_numbers = #tpu.dot_dimension_numbers<[2], [2], [1], [1], [0, 0, 0, 1, 1, 1], [0], [0]>} : vector<1x8x32xbf16>, vector<1x8x32xbf16>, vector<1x8x8xf32> -> vector<1x8x8xf32>
    "tpu.trace_stop"() : () -> ()
    %cst_14 = arith.constant dense<0xFF800000> : vector<1x8xf32>
    %39 = vector.multi_reduction <maximumf>, %38, %cst_14 [2] : vector<1x8x8xf32> to vector<1x8xf32>
    %40 = vector.shape_cast %39 : vector<1x8xf32> to vector<1x8x1xf32>
    %41 = vector.broadcast %40 : vector<1x8x1xf32> to vector<1x8x8xf32>
    %42 = arith.subf %38, %41 : vector<1x8x8xf32>
    %43 = math.exp %42 : vector<1x8x8xf32>
    %cst_15 = arith.constant dense<0.000000e+00> : vector<1x8xf32>
    %44 = vector.multi_reduction <add>, %43, %cst_15 [2] : vector<1x8x8xf32> to vector<1x8xf32>
    %45 = vector.shape_cast %44 : vector<1x8xf32> to vector<1x8x1xf32>
    %cst_16 = arith.constant 1.000000e+00 : f32
    %46 = vector.broadcast %cst_16 : f32 to vector<1x8x1xf32>
    %47 = arith.divf %46, %45 : vector<1x8x1xf32>
    %48 = arith.truncf %43 : vector<1x8x8xf32> to vector<1x8x8xbf16>
    "tpu.trace_start"() <{level = 10 : i32, message = "bqk,bkd->bqd"}> : () -> ()
    %cst_17 = arith.constant dense<0.000000e+00> : vector<1x8x32xf32>
    %49 = tpu.matmul %48, %37, %cst_17 {dimension_numbers = #tpu.dot_dimension_numbers<[2], [1], [1], [2], [0, 0, 0, 1, 1, 2], [0], [0]>} : vector<1x8x8xbf16>, vector<1x8x32xbf16>, vector<1x8x32xf32> -> vector<1x8x32xf32>
    "tpu.trace_stop"() : () -> ()
    %50 = vector.broadcast %47 : vector<1x8x1xf32> to vector<1x8x32xf32>
    %51 = arith.mulf %49, %50 : vector<1x8x32xf32>
    %52 = vector.shape_cast %51 : vector<1x8x32xf32> to vector<8x32xf32>
    %53 = arith.truncf %52 : vector<8x32xf32> to vector<8x32xbf16>
    %c32 = arith.constant 32 : index
    %c0_18 = arith.constant 0 : index
    %54 = vector.load %arg3[%c32, %c0_18] : memref<256x256xbf16, #tpu.memory_space<vmem>>, vector<32x256xbf16>
    %cst_19 = arith.constant dense<0.000000e+00> : vector<8x256xf32>
    %55 = tpu.matmul %53, %54, %cst_19 {dimension_numbers = #tpu.dot_dimension_numbers<[1], [0], [0], [1], [0, 0, 1, 1], [], []>} : vector<8x32xbf16>, vector<32x256xbf16>, vector<8x256xf32> -> vector<8x256xf32>
    %56 = arith.addf %31, %55 : vector<8x256xf32>
    %57 = vector.extract_strided_slice %5 {offsets = [0, 0, 64], sizes = [1, 8, 32], strides = [1, 1, 1]} : vector<1x8x768xf32> to vector<1x8x32xf32>
    %58 = arith.truncf %57 : vector<1x8x32xf32> to vector<1x8x32xbf16>
    %59 = vector.extract_strided_slice %5 {offsets = [0, 0, 320], sizes = [1, 8, 32], strides = [1, 1, 1]} : vector<1x8x768xf32> to vector<1x8x32xf32>
    %60 = arith.truncf %59 : vector<1x8x32xf32> to vector<1x8x32xbf16>
    %61 = vector.extract_strided_slice %5 {offsets = [0, 0, 576], sizes = [1, 8, 32], strides = [1, 1, 1]} : vector<1x8x768xf32> to vector<1x8x32xf32>
    %62 = arith.truncf %61 : vector<1x8x32xf32> to vector<1x8x32xbf16>
    "tpu.trace_start"() <{level = 10 : i32, message = "bqd,bkd->bqk"}> : () -> ()
    %cst_20 = arith.constant dense<0.000000e+00> : vector<1x8x8xf32>
    %63 = tpu.matmul %60, %58, %cst_20 {dimension_numbers = #tpu.dot_dimension_numbers<[2], [2], [1], [1], [0, 0, 0, 1, 1, 1], [0], [0]>} : vector<1x8x32xbf16>, vector<1x8x32xbf16>, vector<1x8x8xf32> -> vector<1x8x8xf32>
    "tpu.trace_stop"() : () -> ()
    %cst_21 = arith.constant dense<0xFF800000> : vector<1x8xf32>
    %64 = vector.multi_reduction <maximumf>, %63, %cst_21 [2] : vector<1x8x8xf32> to vector<1x8xf32>
    %65 = vector.shape_cast %64 : vector<1x8xf32> to vector<1x8x1xf32>
    %66 = vector.broadcast %65 : vector<1x8x1xf32> to vector<1x8x8xf32>
    %67 = arith.subf %63, %66 : vector<1x8x8xf32>
    %68 = math.exp %67 : vector<1x8x8xf32>
    %cst_22 = arith.constant dense<0.000000e+00> : vector<1x8xf32>
    %69 = vector.multi_reduction <add>, %68, %cst_22 [2] : vector<1x8x8xf32> to vector<1x8xf32>
    %70 = vector.shape_cast %69 : vector<1x8xf32> to vector<1x8x1xf32>
    %cst_23 = arith.constant 1.000000e+00 : f32
    %71 = vector.broadcast %cst_23 : f32 to vector<1x8x1xf32>
    %72 = arith.divf %71, %70 : vector<1x8x1xf32>
    %73 = arith.truncf %68 : vector<1x8x8xf32> to vector<1x8x8xbf16>
    "tpu.trace_start"() <{level = 10 : i32, message = "bqk,bkd->bqd"}> : () -> ()
    %cst_24 = arith.constant dense<0.000000e+00> : vector<1x8x32xf32>
    %74 = tpu.matmul %73, %62, %cst_24 {dimension_numbers = #tpu.dot_dimension_numbers<[2], [1], [1], [2], [0, 0, 0, 1, 1, 2], [0], [0]>} : vector<1x8x8xbf16>, vector<1x8x32xbf16>, vector<1x8x32xf32> -> vector<1x8x32xf32>
    "tpu.trace_stop"() : () -> ()
    %75 = vector.broadcast %72 : vector<1x8x1xf32> to vector<1x8x32xf32>
    %76 = arith.mulf %74, %75 : vector<1x8x32xf32>
    %77 = vector.shape_cast %76 : vector<1x8x32xf32> to vector<8x32xf32>
    %78 = arith.truncf %77 : vector<8x32xf32> to vector<8x32xbf16>
    %c64 = arith.constant 64 : index
    %c0_25 = arith.constant 0 : index
    %79 = vector.load %arg3[%c64, %c0_25] : memref<256x256xbf16, #tpu.memory_space<vmem>>, vector<32x256xbf16>
    %cst_26 = arith.constant dense<0.000000e+00> : vector<8x256xf32>
    %80 = tpu.matmul %78, %79, %cst_26 {dimension_numbers = #tpu.dot_dimension_numbers<[1], [0], [0], [1], [0, 0, 1, 1], [], []>} : vector<8x32xbf16>, vector<32x256xbf16>, vector<8x256xf32> -> vector<8x256xf32>
    %81 = arith.addf %56, %80 : vector<8x256xf32>
    %82 = vector.extract_strided_slice %5 {offsets = [0, 0, 96], sizes = [1, 8, 32], strides = [1, 1, 1]} : vector<1x8x768xf32> to vector<1x8x32xf32>
    %83 = arith.truncf %82 : vector<1x8x32xf32> to vector<1x8x32xbf16>
    %84 = vector.extract_strided_slice %5 {offsets = [0, 0, 352], sizes = [1, 8, 32], strides = [1, 1, 1]} : vector<1x8x768xf32> to vector<1x8x32xf32>
    %85 = arith.truncf %84 : vector<1x8x32xf32> to vector<1x8x32xbf16>
    %86 = vector.extract_strided_slice %5 {offsets = [0, 0, 608], sizes = [1, 8, 32], strides = [1, 1, 1]} : vector<1x8x768xf32> to vector<1x8x32xf32>
    %87 = arith.truncf %86 : vector<1x8x32xf32> to vector<1x8x32xbf16>
    "tpu.trace_start"() <{level = 10 : i32, message = "bqd,bkd->bqk"}> : () -> ()
    %cst_27 = arith.constant dense<0.000000e+00> : vector<1x8x8xf32>
    %88 = tpu.matmul %85, %83, %cst_27 {dimension_numbers = #tpu.dot_dimension_numbers<[2], [2], [1], [1], [0, 0, 0, 1, 1, 1], [0], [0]>} : vector<1x8x32xbf16>, vector<1x8x32xbf16>, vector<1x8x8xf32> -> vector<1x8x8xf32>
    "tpu.trace_stop"() : () -> ()
    %cst_28 = arith.constant dense<0xFF800000> : vector<1x8xf32>
    %89 = vector.multi_reduction <maximumf>, %88, %cst_28 [2] : vector<1x8x8xf32> to vector<1x8xf32>
    %90 = vector.shape_cast %89 : vector<1x8xf32> to vector<1x8x1xf32>
    %91 = vector.broadcast %90 : vector<1x8x1xf32> to vector<1x8x8xf32>
    %92 = arith.subf %88, %91 : vector<1x8x8xf32>
    %93 = math.exp %92 : vector<1x8x8xf32>
    %cst_29 = arith.constant dense<0.000000e+00> : vector<1x8xf32>
    %94 = vector.multi_reduction <add>, %93, %cst_29 [2] : vector<1x8x8xf32> to vector<1x8xf32>
    %95 = vector.shape_cast %94 : vector<1x8xf32> to vector<1x8x1xf32>
    %cst_30 = arith.constant 1.000000e+00 : f32
    %96 = vector.broadcast %cst_30 : f32 to vector<1x8x1xf32>
    %97 = arith.divf %96, %95 : vector<1x8x1xf32>
    %98 = arith.truncf %93 : vector<1x8x8xf32> to vector<1x8x8xbf16>
    "tpu.trace_start"() <{level = 10 : i32, message = "bqk,bkd->bqd"}> : () -> ()
    %cst_31 = arith.constant dense<0.000000e+00> : vector<1x8x32xf32>
    %99 = tpu.matmul %98, %87, %cst_31 {dimension_numbers = #tpu.dot_dimension_numbers<[2], [1], [1], [2], [0, 0, 0, 1, 1, 2], [0], [0]>} : vector<1x8x8xbf16>, vector<1x8x32xbf16>, vector<1x8x32xf32> -> vector<1x8x32xf32>
    "tpu.trace_stop"() : () -> ()
    %100 = vector.broadcast %97 : vector<1x8x1xf32> to vector<1x8x32xf32>
    %101 = arith.mulf %99, %100 : vector<1x8x32xf32>
    %102 = vector.shape_cast %101 : vector<1x8x32xf32> to vector<8x32xf32>
    %103 = arith.truncf %102 : vector<8x32xf32> to vector<8x32xbf16>
    %c96 = arith.constant 96 : index
    %c0_32 = arith.constant 0 : index
    %104 = vector.load %arg3[%c96, %c0_32] : memref<256x256xbf16, #tpu.memory_space<vmem>>, vector<32x256xbf16>
    %cst_33 = arith.constant dense<0.000000e+00> : vector<8x256xf32>
    %105 = tpu.matmul %103, %104, %cst_33 {dimension_numbers = #tpu.dot_dimension_numbers<[1], [0], [0], [1], [0, 0, 1, 1], [], []>} : vector<8x32xbf16>, vector<32x256xbf16>, vector<8x256xf32> -> vector<8x256xf32>
    %106 = arith.addf %81, %105 : vector<8x256xf32>
    %107 = vector.extract_strided_slice %5 {offsets = [0, 0, 128], sizes = [1, 8, 32], strides = [1, 1, 1]} : vector<1x8x768xf32> to vector<1x8x32xf32>
    %108 = arith.truncf %107 : vector<1x8x32xf32> to vector<1x8x32xbf16>
    %109 = vector.extract_strided_slice %5 {offsets = [0, 0, 384], sizes = [1, 8, 32], strides = [1, 1, 1]} : vector<1x8x768xf32> to vector<1x8x32xf32>
    %110 = arith.truncf %109 : vector<1x8x32xf32> to vector<1x8x32xbf16>
    %111 = vector.extract_strided_slice %5 {offsets = [0, 0, 640], sizes = [1, 8, 32], strides = [1, 1, 1]} : vector<1x8x768xf32> to vector<1x8x32xf32>
    %112 = arith.truncf %111 : vector<1x8x32xf32> to vector<1x8x32xbf16>
    "tpu.trace_start"() <{level = 10 : i32, message = "bqd,bkd->bqk"}> : () -> ()
    %cst_34 = arith.constant dense<0.000000e+00> : vector<1x8x8xf32>
    %113 = tpu.matmul %110, %108, %cst_34 {dimension_numbers = #tpu.dot_dimension_numbers<[2], [2], [1], [1], [0, 0, 0, 1, 1, 1], [0], [0]>} : vector<1x8x32xbf16>, vector<1x8x32xbf16>, vector<1x8x8xf32> -> vector<1x8x8xf32>
    "tpu.trace_stop"() : () -> ()
    %cst_35 = arith.constant dense<0xFF800000> : vector<1x8xf32>
    %114 = vector.multi_reduction <maximumf>, %113, %cst_35 [2] : vector<1x8x8xf32> to vector<1x8xf32>
    %115 = vector.shape_cast %114 : vector<1x8xf32> to vector<1x8x1xf32>
    %116 = vector.broadcast %115 : vector<1x8x1xf32> to vector<1x8x8xf32>
    %117 = arith.subf %113, %116 : vector<1x8x8xf32>
    %118 = math.exp %117 : vector<1x8x8xf32>
    %cst_36 = arith.constant dense<0.000000e+00> : vector<1x8xf32>
    %119 = vector.multi_reduction <add>, %118, %cst_36 [2] : vector<1x8x8xf32> to vector<1x8xf32>
    %120 = vector.shape_cast %119 : vector<1x8xf32> to vector<1x8x1xf32>
    %cst_37 = arith.constant 1.000000e+00 : f32
    %121 = vector.broadcast %cst_37 : f32 to vector<1x8x1xf32>
    %122 = arith.divf %121, %120 : vector<1x8x1xf32>
    %123 = arith.truncf %118 : vector<1x8x8xf32> to vector<1x8x8xbf16>
    "tpu.trace_start"() <{level = 10 : i32, message = "bqk,bkd->bqd"}> : () -> ()
    %cst_38 = arith.constant dense<0.000000e+00> : vector<1x8x32xf32>
    %124 = tpu.matmul %123, %112, %cst_38 {dimension_numbers = #tpu.dot_dimension_numbers<[2], [1], [1], [2], [0, 0, 0, 1, 1, 2], [0], [0]>} : vector<1x8x8xbf16>, vector<1x8x32xbf16>, vector<1x8x32xf32> -> vector<1x8x32xf32>
    "tpu.trace_stop"() : () -> ()
    %125 = vector.broadcast %122 : vector<1x8x1xf32> to vector<1x8x32xf32>
    %126 = arith.mulf %124, %125 : vector<1x8x32xf32>
    %127 = vector.shape_cast %126 : vector<1x8x32xf32> to vector<8x32xf32>
    %128 = arith.truncf %127 : vector<8x32xf32> to vector<8x32xbf16>
    %c128 = arith.constant 128 : index
    %c0_39 = arith.constant 0 : index
    %129 = vector.load %arg3[%c128, %c0_39] : memref<256x256xbf16, #tpu.memory_space<vmem>>, vector<32x256xbf16>
    %cst_40 = arith.constant dense<0.000000e+00> : vector<8x256xf32>
    %130 = tpu.matmul %128, %129, %cst_40 {dimension_numbers = #tpu.dot_dimension_numbers<[1], [0], [0], [1], [0, 0, 1, 1], [], []>} : vector<8x32xbf16>, vector<32x256xbf16>, vector<8x256xf32> -> vector<8x256xf32>
    %131 = arith.addf %106, %130 : vector<8x256xf32>
    %132 = vector.extract_strided_slice %5 {offsets = [0, 0, 160], sizes = [1, 8, 32], strides = [1, 1, 1]} : vector<1x8x768xf32> to vector<1x8x32xf32>
    %133 = arith.truncf %132 : vector<1x8x32xf32> to vector<1x8x32xbf16>
    %134 = vector.extract_strided_slice %5 {offsets = [0, 0, 416], sizes = [1, 8, 32], strides = [1, 1, 1]} : vector<1x8x768xf32> to vector<1x8x32xf32>
    %135 = arith.truncf %134 : vector<1x8x32xf32> to vector<1x8x32xbf16>
    %136 = vector.extract_strided_slice %5 {offsets = [0, 0, 672], sizes = [1, 8, 32], strides = [1, 1, 1]} : vector<1x8x768xf32> to vector<1x8x32xf32>
    %137 = arith.truncf %136 : vector<1x8x32xf32> to vector<1x8x32xbf16>
    "tpu.trace_start"() <{level = 10 : i32, message = "bqd,bkd->bqk"}> : () -> ()
    %cst_41 = arith.constant dense<0.000000e+00> : vector<1x8x8xf32>
    %138 = tpu.matmul %135, %133, %cst_41 {dimension_numbers = #tpu.dot_dimension_numbers<[2], [2], [1], [1], [0, 0, 0, 1, 1, 1], [0], [0]>} : vector<1x8x32xbf16>, vector<1x8x32xbf16>, vector<1x8x8xf32> -> vector<1x8x8xf32>
    "tpu.trace_stop"() : () -> ()
    %cst_42 = arith.constant dense<0xFF800000> : vector<1x8xf32>
    %139 = vector.multi_reduction <maximumf>, %138, %cst_42 [2] : vector<1x8x8xf32> to vector<1x8xf32>
    %140 = vector.shape_cast %139 : vector<1x8xf32> to vector<1x8x1xf32>
    %141 = vector.broadcast %140 : vector<1x8x1xf32> to vector<1x8x8xf32>
    %142 = arith.subf %138, %141 : vector<1x8x8xf32>
    %143 = math.exp %142 : vector<1x8x8xf32>
    %cst_43 = arith.constant dense<0.000000e+00> : vector<1x8xf32>
    %144 = vector.multi_reduction <add>, %143, %cst_43 [2] : vector<1x8x8xf32> to vector<1x8xf32>
    %145 = vector.shape_cast %144 : vector<1x8xf32> to vector<1x8x1xf32>
    %cst_44 = arith.constant 1.000000e+00 : f32
    %146 = vector.broadcast %cst_44 : f32 to vector<1x8x1xf32>
    %147 = arith.divf %146, %145 : vector<1x8x1xf32>
    %148 = arith.truncf %143 : vector<1x8x8xf32> to vector<1x8x8xbf16>
    "tpu.trace_start"() <{level = 10 : i32, message = "bqk,bkd->bqd"}> : () -> ()
    %cst_45 = arith.constant dense<0.000000e+00> : vector<1x8x32xf32>
    %149 = tpu.matmul %148, %137, %cst_45 {dimension_numbers = #tpu.dot_dimension_numbers<[2], [1], [1], [2], [0, 0, 0, 1, 1, 2], [0], [0]>} : vector<1x8x8xbf16>, vector<1x8x32xbf16>, vector<1x8x32xf32> -> vector<1x8x32xf32>
    "tpu.trace_stop"() : () -> ()
    %150 = vector.broadcast %147 : vector<1x8x1xf32> to vector<1x8x32xf32>
    %151 = arith.mulf %149, %150 : vector<1x8x32xf32>
    %152 = vector.shape_cast %151 : vector<1x8x32xf32> to vector<8x32xf32>
    %153 = arith.truncf %152 : vector<8x32xf32> to vector<8x32xbf16>
    %c160 = arith.constant 160 : index
    %c0_46 = arith.constant 0 : index
    %154 = vector.load %arg3[%c160, %c0_46] : memref<256x256xbf16, #tpu.memory_space<vmem>>, vector<32x256xbf16>
    %cst_47 = arith.constant dense<0.000000e+00> : vector<8x256xf32>
    %155 = tpu.matmul %153, %154, %cst_47 {dimension_numbers = #tpu.dot_dimension_numbers<[1], [0], [0], [1], [0, 0, 1, 1], [], []>} : vector<8x32xbf16>, vector<32x256xbf16>, vector<8x256xf32> -> vector<8x256xf32>
    %156 = arith.addf %131, %155 : vector<8x256xf32>
    %157 = vector.extract_strided_slice %5 {offsets = [0, 0, 192], sizes = [1, 8, 32], strides = [1, 1, 1]} : vector<1x8x768xf32> to vector<1x8x32xf32>
    %158 = arith.truncf %157 : vector<1x8x32xf32> to vector<1x8x32xbf16>
    %159 = vector.extract_strided_slice %5 {offsets = [0, 0, 448], sizes = [1, 8, 32], strides = [1, 1, 1]} : vector<1x8x768xf32> to vector<1x8x32xf32>
    %160 = arith.truncf %159 : vector<1x8x32xf32> to vector<1x8x32xbf16>
    %161 = vector.extract_strided_slice %5 {offsets = [0, 0, 704], sizes = [1, 8, 32], strides = [1, 1, 1]} : vector<1x8x768xf32> to vector<1x8x32xf32>
    %162 = arith.truncf %161 : vector<1x8x32xf32> to vector<1x8x32xbf16>
    "tpu.trace_start"() <{level = 10 : i32, message = "bqd,bkd->bqk"}> : () -> ()
    %cst_48 = arith.constant dense<0.000000e+00> : vector<1x8x8xf32>
    %163 = tpu.matmul %160, %158, %cst_48 {dimension_numbers = #tpu.dot_dimension_numbers<[2], [2], [1], [1], [0, 0, 0, 1, 1, 1], [0], [0]>} : vector<1x8x32xbf16>, vector<1x8x32xbf16>, vector<1x8x8xf32> -> vector<1x8x8xf32>
    "tpu.trace_stop"() : () -> ()
    %cst_49 = arith.constant dense<0xFF800000> : vector<1x8xf32>
    %164 = vector.multi_reduction <maximumf>, %163, %cst_49 [2] : vector<1x8x8xf32> to vector<1x8xf32>
    %165 = vector.shape_cast %164 : vector<1x8xf32> to vector<1x8x1xf32>
    %166 = vector.broadcast %165 : vector<1x8x1xf32> to vector<1x8x8xf32>
    %167 = arith.subf %163, %166 : vector<1x8x8xf32>
    %168 = math.exp %167 : vector<1x8x8xf32>
    %cst_50 = arith.constant dense<0.000000e+00> : vector<1x8xf32>
    %169 = vector.multi_reduction <add>, %168, %cst_50 [2] : vector<1x8x8xf32> to vector<1x8xf32>
    %170 = vector.shape_cast %169 : vector<1x8xf32> to vector<1x8x1xf32>
    %cst_51 = arith.constant 1.000000e+00 : f32
    %171 = vector.broadcast %cst_51 : f32 to vector<1x8x1xf32>
    %172 = arith.divf %171, %170 : vector<1x8x1xf32>
    %173 = arith.truncf %168 : vector<1x8x8xf32> to vector<1x8x8xbf16>
    "tpu.trace_start"() <{level = 10 : i32, message = "bqk,bkd->bqd"}> : () -> ()
    %cst_52 = arith.constant dense<0.000000e+00> : vector<1x8x32xf32>
    %174 = tpu.matmul %173, %162, %cst_52 {dimension_numbers = #tpu.dot_dimension_numbers<[2], [1], [1], [2], [0, 0, 0, 1, 1, 2], [0], [0]>} : vector<1x8x8xbf16>, vector<1x8x32xbf16>, vector<1x8x32xf32> -> vector<1x8x32xf32>
    "tpu.trace_stop"() : () -> ()
    %175 = vector.broadcast %172 : vector<1x8x1xf32> to vector<1x8x32xf32>
    %176 = arith.mulf %174, %175 : vector<1x8x32xf32>
    %177 = vector.shape_cast %176 : vector<1x8x32xf32> to vector<8x32xf32>
    %178 = arith.truncf %177 : vector<8x32xf32> to vector<8x32xbf16>
    %c192 = arith.constant 192 : index
    %c0_53 = arith.constant 0 : index
    %179 = vector.load %arg3[%c192, %c0_53] : memref<256x256xbf16, #tpu.memory_space<vmem>>, vector<32x256xbf16>
    %cst_54 = arith.constant dense<0.000000e+00> : vector<8x256xf32>
    %180 = tpu.matmul %178, %179, %cst_54 {dimension_numbers = #tpu.dot_dimension_numbers<[1], [0], [0], [1], [0, 0, 1, 1], [], []>} : vector<8x32xbf16>, vector<32x256xbf16>, vector<8x256xf32> -> vector<8x256xf32>
    %181 = arith.addf %156, %180 : vector<8x256xf32>
    %182 = vector.extract_strided_slice %5 {offsets = [0, 0, 224], sizes = [1, 8, 32], strides = [1, 1, 1]} : vector<1x8x768xf32> to vector<1x8x32xf32>
    %183 = arith.truncf %182 : vector<1x8x32xf32> to vector<1x8x32xbf16>
    %184 = vector.extract_strided_slice %5 {offsets = [0, 0, 480], sizes = [1, 8, 32], strides = [1, 1, 1]} : vector<1x8x768xf32> to vector<1x8x32xf32>
    %185 = arith.truncf %184 : vector<1x8x32xf32> to vector<1x8x32xbf16>
    %186 = vector.extract_strided_slice %5 {offsets = [0, 0, 736], sizes = [1, 8, 32], strides = [1, 1, 1]} : vector<1x8x768xf32> to vector<1x8x32xf32>
    %187 = arith.truncf %186 : vector<1x8x32xf32> to vector<1x8x32xbf16>
    "tpu.trace_start"() <{level = 10 : i32, message = "bqd,bkd->bqk"}> : () -> ()
    %cst_55 = arith.constant dense<0.000000e+00> : vector<1x8x8xf32>
    %188 = tpu.matmul %185, %183, %cst_55 {dimension_numbers = #tpu.dot_dimension_numbers<[2], [2], [1], [1], [0, 0, 0, 1, 1, 1], [0], [0]>} : vector<1x8x32xbf16>, vector<1x8x32xbf16>, vector<1x8x8xf32> -> vector<1x8x8xf32>
    "tpu.trace_stop"() : () -> ()
    %cst_56 = arith.constant dense<0xFF800000> : vector<1x8xf32>
    %189 = vector.multi_reduction <maximumf>, %188, %cst_56 [2] : vector<1x8x8xf32> to vector<1x8xf32>
    %190 = vector.shape_cast %189 : vector<1x8xf32> to vector<1x8x1xf32>
    %191 = vector.broadcast %190 : vector<1x8x1xf32> to vector<1x8x8xf32>
    %192 = arith.subf %188, %191 : vector<1x8x8xf32>
    %193 = math.exp %192 : vector<1x8x8xf32>
    %cst_57 = arith.constant dense<0.000000e+00> : vector<1x8xf32>
    %194 = vector.multi_reduction <add>, %193, %cst_57 [2] : vector<1x8x8xf32> to vector<1x8xf32>
    %195 = vector.shape_cast %194 : vector<1x8xf32> to vector<1x8x1xf32>
    %cst_58 = arith.constant 1.000000e+00 : f32
    %196 = vector.broadcast %cst_58 : f32 to vector<1x8x1xf32>
    %197 = arith.divf %196, %195 : vector<1x8x1xf32>
    %198 = arith.truncf %193 : vector<1x8x8xf32> to vector<1x8x8xbf16>
    "tpu.trace_start"() <{level = 10 : i32, message = "bqk,bkd->bqd"}> : () -> ()
    %cst_59 = arith.constant dense<0.000000e+00> : vector<1x8x32xf32>
    %199 = tpu.matmul %198, %187, %cst_59 {dimension_numbers = #tpu.dot_dimension_numbers<[2], [1], [1], [2], [0, 0, 0, 1, 1, 2], [0], [0]>} : vector<1x8x8xbf16>, vector<1x8x32xbf16>, vector<1x8x32xf32> -> vector<1x8x32xf32>
    "tpu.trace_stop"() : () -> ()
    %200 = vector.broadcast %197 : vector<1x8x1xf32> to vector<1x8x32xf32>
    %201 = arith.mulf %199, %200 : vector<1x8x32xf32>
    %202 = vector.shape_cast %201 : vector<1x8x32xf32> to vector<8x32xf32>
    %203 = arith.truncf %202 : vector<8x32xf32> to vector<8x32xbf16>
    %c224 = arith.constant 224 : index
    %c0_60 = arith.constant 0 : index
    %204 = vector.load %arg3[%c224, %c0_60] : memref<256x256xbf16, #tpu.memory_space<vmem>>, vector<32x256xbf16>
    %cst_61 = arith.constant dense<0.000000e+00> : vector<8x256xf32>
    %205 = tpu.matmul %203, %204, %cst_61 {dimension_numbers = #tpu.dot_dimension_numbers<[1], [0], [0], [1], [0, 0, 1, 1], [], []>} : vector<8x32xbf16>, vector<32x256xbf16>, vector<8x256xf32> -> vector<8x256xf32>
    %206 = arith.addf %181, %205 : vector<8x256xf32>
    %207 = arith.addf %1, %206 : vector<8x256xf32>
    %c0_62 = arith.constant 0 : index
    %c0_63 = arith.constant 0 : index
    %208 = vector.load %arg8[%c0_62, %c0_63] : memref<1x256xf32, #tpu.memory_space<vmem>>, vector<1x256xf32>
    %c0_64 = arith.constant 0 : index
    %c0_65 = arith.constant 0 : index
    %209 = vector.load %arg9[%c0_64, %c0_65] : memref<1x256xf32, #tpu.memory_space<vmem>>, vector<1x256xf32>
    %cst_66 = arith.constant dense<0.000000e+00> : vector<8xf32>
    %210 = vector.multi_reduction <add>, %207, %cst_66 [1] : vector<8x256xf32> to vector<8xf32>
    %211 = vector.shape_cast %210 : vector<8xf32> to vector<8x1xf32>
    %cst_67 = arith.constant 3.906250e-03 : f32
    %212 = vector.broadcast %cst_67 : f32 to vector<8x1xf32>
    %213 = arith.mulf %211, %212 : vector<8x1xf32>
    %214 = arith.mulf %207, %207 : vector<8x256xf32>
    %cst_68 = arith.constant dense<0.000000e+00> : vector<8xf32>
    %215 = vector.multi_reduction <add>, %214, %cst_68 [1] : vector<8x256xf32> to vector<8xf32>
    %216 = vector.shape_cast %215 : vector<8xf32> to vector<8x1xf32>
    %cst_69 = arith.constant 3.906250e-03 : f32
    %217 = vector.broadcast %cst_69 : f32 to vector<8x1xf32>
    %218 = arith.mulf %216, %217 : vector<8x1xf32>
    %219 = arith.mulf %213, %213 : vector<8x1xf32>
    %220 = arith.subf %218, %219 : vector<8x1xf32>
    %221 = vector.broadcast %213 : vector<8x1xf32> to vector<8x256xf32>
    %222 = arith.subf %207, %221 : vector<8x256xf32>
    %cst_70 = arith.constant 9.99999974E-6 : f32
    %223 = vector.broadcast %cst_70 : f32 to vector<8x1xf32>
    %224 = arith.addf %220, %223 : vector<8x1xf32>
    %225 = math.rsqrt %224 : vector<8x1xf32>
    %226 = vector.broadcast %225 : vector<8x1xf32> to vector<8x256xf32>
    %227 = arith.mulf %222, %226 : vector<8x256xf32>
    %228 = vector.broadcast %208 : vector<1x256xf32> to vector<8x256xf32>
    %229 = arith.mulf %227, %228 : vector<8x256xf32>
    %230 = vector.broadcast %209 : vector<1x256xf32> to vector<8x256xf32>
    %231 = arith.addf %229, %230 : vector<8x256xf32>
    %232 = arith.truncf %231 : vector<8x256xf32> to vector<8x256xbf16>
    %c0_71 = arith.constant 0 : index
    %c0_72 = arith.constant 0 : index
    %233 = vector.load %arg4[%c0_71, %c0_72] : memref<256x1024xbf16, #tpu.memory_space<vmem>>, vector<256x1024xbf16>
    %cst_73 = arith.constant dense<0.000000e+00> : vector<8x1024xf32>
    %234 = tpu.matmul %232, %233, %cst_73 {dimension_numbers = #tpu.dot_dimension_numbers<[1], [0], [0], [1], [0, 0, 1, 1], [], []>} : vector<8x256xbf16>, vector<256x1024xbf16>, vector<8x1024xf32> -> vector<8x1024xf32>
    %c0_74 = arith.constant 0 : index
    %c0_75 = arith.constant 0 : index
    %235 = vector.load %arg5[%c0_74, %c0_75] : memref<1x1024xf32, #tpu.memory_space<vmem>>, vector<1x1024xf32>
    %236 = vector.broadcast %235 : vector<1x1024xf32> to vector<8x1024xf32>
    %237 = arith.addf %234, %236 : vector<8x1024xf32>
    %cst_76 = arith.constant 0.707106769 : f32
    %238 = vector.broadcast %cst_76 : f32 to vector<8x1024xf32>
    %239 = arith.mulf %237, %238 : vector<8x1024xf32>
    %240 = math.absf %239 : vector<8x1024xf32>
    %cst_77 = arith.constant 0.327591091 : f32
    %241 = vector.broadcast %cst_77 : f32 to vector<8x1024xf32>
    %242 = arith.mulf %241, %240 : vector<8x1024xf32>
    %cst_78 = arith.constant 1.000000e+00 : f32
    %243 = vector.broadcast %cst_78 : f32 to vector<8x1024xf32>
    %244 = arith.addf %243, %242 : vector<8x1024xf32>
    %cst_79 = arith.constant 1.000000e+00 : f32
    %245 = vector.broadcast %cst_79 : f32 to vector<8x1024xf32>
    %246 = arith.divf %245, %244 : vector<8x1024xf32>
    %cst_80 = arith.constant 1.06140542 : f32
    %247 = vector.broadcast %cst_80 : f32 to vector<8x1024xf32>
    %248 = arith.mulf %247, %246 : vector<8x1024xf32>
    %cst_81 = arith.constant -1.45315206 : f32
    %249 = vector.broadcast %cst_81 : f32 to vector<8x1024xf32>
    %250 = arith.addf %248, %249 : vector<8x1024xf32>
    %251 = arith.mulf %250, %246 : vector<8x1024xf32>
    %cst_82 = arith.constant 1.42141378 : f32
    %252 = vector.broadcast %cst_82 : f32 to vector<8x1024xf32>
    %253 = arith.addf %251, %252 : vector<8x1024xf32>
    %254 = arith.mulf %253, %246 : vector<8x1024xf32>
    %cst_83 = arith.constant -0.284496725 : f32
    %255 = vector.broadcast %cst_83 : f32 to vector<8x1024xf32>
    %256 = arith.addf %254, %255 : vector<8x1024xf32>
    %257 = arith.mulf %256, %246 : vector<8x1024xf32>
    %cst_84 = arith.constant 0.254829586 : f32
    %258 = vector.broadcast %cst_84 : f32 to vector<8x1024xf32>
    %259 = arith.addf %257, %258 : vector<8x1024xf32>
    %260 = arith.mulf %259, %246 : vector<8x1024xf32>
    %cst_85 = arith.constant 0.000000e+00 : f32
    %261 = vector.broadcast %cst_85 : f32 to vector<8x1024xf32>
    %262 = arith.subf %261, %240 : vector<8x1024xf32>
    %263 = arith.mulf %262, %240 : vector<8x1024xf32>
    %264 = math.exp %263 : vector<8x1024xf32>
    %265 = arith.mulf %260, %264 : vector<8x1024xf32>
    %cst_86 = arith.constant 1.000000e+00 : f32
    %266 = vector.broadcast %cst_86 : f32 to vector<8x1024xf32>
    %267 = arith.subf %266, %265 : vector<8x1024xf32>
    %cst_87 = arith.constant 0.000000e+00 : f32
    %268 = vector.broadcast %cst_87 : f32 to vector<8x1024xf32>
    %269 = arith.cmpf oge, %239, %268 : vector<8x1024xf32>
    %cst_88 = arith.constant 0.000000e+00 : f32
    %270 = vector.broadcast %cst_88 : f32 to vector<8x1024xf32>
    %271 = arith.subf %270, %267 : vector<8x1024xf32>
    %272 = arith.select %269, %267, %271 : vector<8x1024xi1>, vector<8x1024xf32>
    %cst_89 = arith.constant 5.000000e-01 : f32
    %273 = vector.broadcast %cst_89 : f32 to vector<8x1024xf32>
    %274 = arith.mulf %273, %237 : vector<8x1024xf32>
    %cst_90 = arith.constant 1.000000e+00 : f32
    %275 = vector.broadcast %cst_90 : f32 to vector<8x1024xf32>
    %276 = arith.addf %275, %272 : vector<8x1024xf32>
    %277 = arith.mulf %274, %276 : vector<8x1024xf32>
    %278 = arith.truncf %277 : vector<8x1024xf32> to vector<8x1024xbf16>
    %c0_91 = arith.constant 0 : index
    %c0_92 = arith.constant 0 : index
    %279 = vector.load %arg6[%c0_91, %c0_92] : memref<1024x256xbf16, #tpu.memory_space<vmem>>, vector<1024x256xbf16>
    %cst_93 = arith.constant dense<0.000000e+00> : vector<8x256xf32>
    %280 = tpu.matmul %278, %279, %cst_93 {dimension_numbers = #tpu.dot_dimension_numbers<[1], [0], [0], [1], [0, 0, 1, 1], [], []>} : vector<8x1024xbf16>, vector<1024x256xbf16>, vector<8x256xf32> -> vector<8x256xf32>
    %c0_94 = arith.constant 0 : index
    %c0_95 = arith.constant 0 : index
    %281 = vector.load %arg7[%c0_94, %c0_95] : memref<1x256xf32, #tpu.memory_space<vmem>>, vector<1x256xf32>
    %282 = vector.broadcast %281 : vector<1x256xf32> to vector<8x256xf32>
    %283 = arith.addf %280, %282 : vector<8x256xf32>
    %284 = arith.addf %231, %283 : vector<8x256xf32>
    %c0_96 = arith.constant 0 : index
    %c0_97 = arith.constant 0 : index
    %285 = vector.load %arg10[%c0_96, %c0_97] : memref<1x256xf32, #tpu.memory_space<vmem>>, vector<1x256xf32>
    %c0_98 = arith.constant 0 : index
    %c0_99 = arith.constant 0 : index
    %286 = vector.load %arg11[%c0_98, %c0_99] : memref<1x256xf32, #tpu.memory_space<vmem>>, vector<1x256xf32>
    %cst_100 = arith.constant dense<0.000000e+00> : vector<8xf32>
    %287 = vector.multi_reduction <add>, %284, %cst_100 [1] : vector<8x256xf32> to vector<8xf32>
    %288 = vector.shape_cast %287 : vector<8xf32> to vector<8x1xf32>
    %cst_101 = arith.constant 3.906250e-03 : f32
    %289 = vector.broadcast %cst_101 : f32 to vector<8x1xf32>
    %290 = arith.mulf %288, %289 : vector<8x1xf32>
    %291 = arith.mulf %284, %284 : vector<8x256xf32>
    %cst_102 = arith.constant dense<0.000000e+00> : vector<8xf32>
    %292 = vector.multi_reduction <add>, %291, %cst_102 [1] : vector<8x256xf32> to vector<8xf32>
    %293 = vector.shape_cast %292 : vector<8xf32> to vector<8x1xf32>
    %cst_103 = arith.constant 3.906250e-03 : f32
    %294 = vector.broadcast %cst_103 : f32 to vector<8x1xf32>
    %295 = arith.mulf %293, %294 : vector<8x1xf32>
    %296 = arith.mulf %290, %290 : vector<8x1xf32>
    %297 = arith.subf %295, %296 : vector<8x1xf32>
    %298 = vector.broadcast %290 : vector<8x1xf32> to vector<8x256xf32>
    %299 = arith.subf %284, %298 : vector<8x256xf32>
    %cst_104 = arith.constant 9.99999974E-6 : f32
    %300 = vector.broadcast %cst_104 : f32 to vector<8x1xf32>
    %301 = arith.addf %297, %300 : vector<8x1xf32>
    %302 = math.rsqrt %301 : vector<8x1xf32>
    %303 = vector.broadcast %302 : vector<8x1xf32> to vector<8x256xf32>
    %304 = arith.mulf %299, %303 : vector<8x256xf32>
    %305 = vector.broadcast %285 : vector<1x256xf32> to vector<8x256xf32>
    %306 = arith.mulf %304, %305 : vector<8x256xf32>
    %307 = vector.broadcast %286 : vector<1x256xf32> to vector<8x256xf32>
    %308 = arith.addf %306, %307 : vector<8x256xf32>
    %309 = vector.shape_cast %308 : vector<8x256xf32> to vector<1x8x256xf32>
    %c0_105 = arith.constant 0 : index
    %c0_106 = arith.constant 0 : index
    %c0_107 = arith.constant 0 : index
    %310 = vector.load %arg12[%c0_105, %c0_106, %c0_107] : memref<1x8x256xf32, #tpu.memory_space<vmem>>, vector<1x8x256xf32>
    tpu.vector_store %arg12[%c0_105, %c0_106, %c0_107], %309 {strides = array<i32>} : memref<1x8x256xf32, #tpu.memory_space<vmem>>, vector<1x8x256xf32>,
    return
  }
  func.func @transform_0(%arg0: i32) -> (i32, i32, i32) {
    %c0_i32 = arith.constant 0 : i32
    %c0_i32_0 = arith.constant 0 : i32
    %c0_i32_1 = arith.constant 0 : i32
    return %arg0, %c0_i32, %c0_i32_0 : i32, i32, i32
  }
  func.func @transform_1(%arg0: i32) -> (i32, i32) {
    %c0_i32 = arith.constant 0 : i32
    %c0_i32_0 = arith.constant 0 : i32
    %c0_i32_1 = arith.constant 0 : i32
    return %c0_i32, %c0_i32_0 : i32, i32
  }
  func.func @transform_2(%arg0: i32) -> (i32, i32) {
    %c0_i32 = arith.constant 0 : i32
    %c0_i32_0 = arith.constant 0 : i32
    %c0_i32_1 = arith.constant 0 : i32
    return %c0_i32, %c0_i32_0 : i32, i32
  }
  func.func @transform_3(%arg0: i32) -> (i32, i32) {
    %c0_i32 = arith.constant 0 : i32
    %c0_i32_0 = arith.constant 0 : i32
    %c0_i32_1 = arith.constant 0 : i32
    return %c0_i32, %c0_i32_0 : i32, i32
  }
  func.func @transform_4(%arg0: i32) -> (i32, i32) {
    %c0_i32 = arith.constant 0 : i32
    %c0_i32_0 = arith.constant 0 : i32
    %c0_i32_1 = arith.constant 0 : i32
    return %c0_i32, %c0_i32_0 : i32, i32
  }
  func.func @transform_5(%arg0: i32) -> (i32, i32) {
    %c0_i32 = arith.constant 0 : i32
    %c0_i32_0 = arith.constant 0 : i32
    %c0_i32_1 = arith.constant 0 : i32
    return %c0_i32, %c0_i32_0 : i32, i32
  }
  func.func @transform_6(%arg0: i32) -> (i32, i32) {
    %c0_i32 = arith.constant 0 : i32
    %c0_i32_0 = arith.constant 0 : i32
    %c0_i32_1 = arith.constant 0 : i32
    return %c0_i32, %c0_i32_0 : i32, i32
  }
  func.func @transform_7(%arg0: i32) -> (i32, i32) {
    %c0_i32 = arith.constant 0 : i32
    %c0_i32_0 = arith.constant 0 : i32
    %c0_i32_1 = arith.constant 0 : i32
    return %c0_i32, %c0_i32_0 : i32, i32
  }
  func.func @transform_8(%arg0: i32) -> (i32, i32) {
    %c0_i32 = arith.constant 0 : i32
    %c0_i32_0 = arith.constant 0 : i32
    %c0_i32_1 = arith.constant 0 : i32
    return %c0_i32, %c0_i32_0 : i32, i32
  }
  func.func @transform_9(%arg0: i32) -> (i32, i32) {
    %c0_i32 = arith.constant 0 : i32
    %c0_i32_0 = arith.constant 0 : i32
    %c0_i32_1 = arith.constant 0 : i32
    return %c0_i32, %c0_i32_0 : i32, i32
  }
  func.func @transform_10(%arg0: i32) -> (i32, i32) {
    %c0_i32 = arith.constant 0 : i32
    %c0_i32_0 = arith.constant 0 : i32
    %c0_i32_1 = arith.constant 0 : i32
    return %c0_i32, %c0_i32_0 : i32, i32
  }
  func.func @transform_11(%arg0: i32) -> (i32, i32, i32) {
    %c0_i32 = arith.constant 0 : i32
    %c0_i32_0 = arith.constant 0 : i32
    %c0_i32_1 = arith.constant 0 : i32
    return %arg0, %c0_i32, %c0_i32_0 : i32, i32, i32
  }
}

</mosaic_0001>

<bundles_post_ra>
// kernel: tpu_custom_call.1
= control target key start
LH: loop header
LB: loop body
LE: loop exit
PB: predicated region body
PF: predicated region fallthrough
CT: control target
= control target key end

     0   :  { %s7582_s0 = inlined_call_operand.hbm [shape: f32[2,8,256], index: 0, kind: input, shape index: {}]   ;;  %s7583_s1 = inlined_call_operand.hbm [shape: bf16[256,768], index: 1, kind: input, shape index: {}]   ;;  %s7584_s2 = inlined_call_operand.hbm [shape: bf16[256,256], index: 2, kind: input, shape index: {}]   ;;  %s7585_s3 = inlined_call_operand.hbm [shape: bf16[256,1024], index: 3, kind: input, shape index: {}]   ;;  %s7586_s4 = inlined_call_operand.hbm [shape: f32[1,1024], index: 4, kind: input, shape index: {}]   ;;  %s7587_s5 = inlined_call_operand.hbm [shape: bf16[1024,256], index: 5, kind: input, shape index: {}]   ;;  %s7588_s6 = inlined_call_operand.hbm [shape: f32[1,256], index: 6, kind: input, shape index: {}]   ;;  %s7589_s7 = inlined_call_operand.hbm [shape: f32[1,256], index: 7, kind: input, shape index: {}]   ;;  %s7590_s8 = inlined_call_operand.hbm [shape: f32[1,256], index: 8, kind: input, shape index: {}]   ;;  %s7591_s9 = inlined_call_operand.hbm [shape: f32[1,256], index: 9, kind: input, shape index: {}]   ;;  %s7592_s10 = inlined_call_operand.hbm [shape: f32[1,256], index: 10, kind: input, shape index: {}]   ;;  %s7593_s11 = inlined_call_operand.hbm [shape: f32[2,8,256], index: 11, kind: output, shape index: {}]  }
   0x1   :  { %7599 = sst [smem:[#allocation29_spill]] %s7583_s1 }
   0x2   :  { %7600 = sst [smem:[#allocation30_spill]] %s7584_s2 }
   0x3   :  { %7601 = sst [smem:[#allocation31_spill]] %s7593_s11 }
   0x4   :  { %16 = vsyncpa [#allocation3], 0 }
   0x5   :  { %18 = vsyncpa [#allocation3 + $0x1], 0 }
   0x6   :  { %19 = vsyncpa [#allocation6], 0 }
   0x7   :  { %20 = vsyncpa [#allocation9], 0 }
   0x8   :  { %21 = vsyncpa [#allocation12], 0 }
   0x9   :  { %22 = vsyncpa [#allocation15], 0 }
   0xa   :  { %23 = vsyncpa [#allocation18], 0 }
   0xb   :  { %24 = vsyncpa [#allocation4], 0 }
   0xc   :  { %26 = vsyncpa [#allocation4 + $0x1], 0  ;;  %s6784_s17 = smov 0   ;;  %s6786_s18 = smov 0  }
   0xd   :  { %s6788_s19 = smov 0   ;;  %s6790_s20 = smov 0  }
   0xe LB: > { %s6700_s21 = smov [#allocation5]   ;;  %s6805_s23 = sadd.s32 4294967295, %s6698_s20   ;;  %s6698_s20 = sphi %s6790_s20, %s7633_s20   ;;  %s6694_s19 = sphi %s6788_s19, %s7632_s19   ;;  %s6690_s18 = sphi %s6786_s18, %s7631_s18   ;;  %s6686_s17 = sphi %s6784_s17, %s7630_s17  }
   0xf   : > { %s311_s22 = sshll.u32 %s6700_s21, 4  ;;  %p5118_p0 = scmp.ge.s32.totalorder %s6698_s20, 1  ;;  %s6810_s22 = int_to_ptr.vmem [resolvable:$true] %s311_s22 }
  0x10   : > { %p7596_p1 = scmp.eq.s32.totalorder %s6805_s23, 0  ;;  %p299_p2 = scmp.lt.s32.totalorder %s6698_s20, 3 }
  0x11   : > { %s6701_s25 = smov [#allocation8]   ;;  %s7605_s1 = sld [smem:[#allocation29_spill]] }
  0x12   : > { %p6812_p3 = pnand %p5118_p0, %p299_p2  ;;  %s337_s26 = sshll.u32 %s6701_s25, 4  ;;  %s6825_s26 = int_to_ptr.vmem [resolvable:$true] %s337_s26 }
  0x14   : > { %s7602_s24 = scalar_select %p6812_p3, 1, 0 }
  0x15   : > { %p5733_p5 = pneg %p6812_p3 }
  0x16   : > { %7603 = sst [smem:[#allocation28_spill]] %s7602_s24 }
  0x17   : > { %p6821_p6 = pnand %p5733_p5, %p7596_p1  ;;  %s6302_s30 = scalar_lea.hbm %s7605_s1, 12288 }
  0x18   : > { %p6303_p7 = scmp.ne.s32.totalorder %s7605_s1, %s6302_s30  ;;  %p6309_p11 = scmp.lt.u32.totalorder %s6302_s30, %s7605_s1 }
  0x19   : > { %p6835_p8 = pneg %p6821_p6 }
  0x1b   : > { %p6305_p9 = pnand %p6835_p8, %p6303_p7 }
  0x1d   : > { %p6306_p10 = pneg %p6305_p9 }
  0x1f   : > { %p6311_p12 = pnand %p6309_p11, %p6306_p10 }
  0x21   : > { %6314 = shalt.err (!%p6311_p12)
}
  0x22   : > { %s6315_s21 = scalar_lea.vmem %s6810_s22, 12288  ;;  %p6323_p5 = scmp.lt.s32.totalorder %s6810_s22, %s6810_s22 }
  0x23   : > { %p6316_p13 = scmp.ne.s32.totalorder %s6810_s22, %s6315_s21  ;;  %p6324_p4 = scmp.lt.s32.totalorder %s6315_s21, %s6315_s21 }
  0x25   : > { %p6318_p0 = pnand %p6316_p13, %p6835_p8  ;;  %p6325_p7 = por %p6324_p4, %p6323_p5 }
  0x27   : > { %p6319_p2 = pneg %p6318_p0 }
  0x29   : > { %p6326_p9 = pnand %p6325_p7, %p6319_p2 }
  0x2b   : > { %6329 = shalt.err (!%p6326_p9)
}
  0x2c   : > { %s6702_s25 = smov 384   ;;  %s6703_s28 = smov 24  }
  0x2d   : > { %5736 = dma.hbm_to_vmem [thread:$0]  (!%p6821_p6), %s7605_s1, 12288, %s6810_s22, [#allocation6], %s6702_s25, %s6702_s25, %s6703_s28  }
  0x2e   : > { %s6330_s15 = scalar_lea.hbm %s7585_s3, 16384 }
  0x2f   : > { %p6331_p4 = scmp.ne.s32.totalorder %s7585_s3, %s6330_s15  ;;  %p6337_p12 = scmp.lt.u32.totalorder %s6330_s15, %s7585_s3 }
  0x31   : > { %p6333_p10 = pnand %p6331_p4, %p6835_p8 }
  0x33   : > { %p6334_p11 = pneg %p6333_p10 }
  0x35   : > { %p6339_p13 = pnand %p6337_p12, %p6334_p11 }
  0x37   : > { %6342 = shalt.err (!%p6339_p13)
}
  0x38   : > { %s6343_s22 = scalar_lea.vmem %s6825_s26, 16384  ;;  %p6351_p7 = scmp.lt.s32.totalorder %s6825_s26, %s6825_s26 }
  0x39   : > { %p6344_p0 = scmp.ne.s32.totalorder %s6825_s26, %s6343_s22  ;;  %p6352_p9 = scmp.lt.s32.totalorder %s6343_s22, %s6343_s22 }
  0x3b   : > { %p6346_p2 = pnand %p6344_p0, %p6835_p8  ;;  %p6353_p4 = por %p6352_p9, %p6351_p7 }
  0x3d   : > { %p6347_p5 = pneg %p6346_p2 }
  0x3f   : > { %p6354_p10 = pnand %p6353_p4, %p6347_p5 }
  0x41   : > { %6357 = shalt.err (!%p6354_p10)
}
  0x42   : > { %s6704_s11 = smov 512   ;;  %s6705_s24 = smov 32  }
  0x43   : > { %5742 = dma.hbm_to_vmem [thread:$0]  (!%p6821_p6), %s7585_s3, 16384, %s6825_s26, [#allocation9], %s6704_s11, %s6704_s11, %s6705_s24  }
  0x44   : > { %s6706_s29 = smov [#allocation11]   ;;  %s6707_s12 = smov [#allocation14]  }
  0x45   : > { %s361_s30 = sshll.u32 %s6706_s29, 4  ;;  %s386_s13 = sshll.u32 %s6707_s12, 4  ;;  %s362_s30 = int_to_ptr.vmem [resolvable:$true] %s361_s30  ;;  %s6879_s13 = int_to_ptr.vmem [resolvable:$true] %s386_s13 }
  0x46   : > { %s6358_s21 = scalar_lea.hbm %s7587_s5, 16384 }
  0x47   : > { %p6359_p11 = scmp.ne.s32.totalorder %s7587_s5, %s6358_s21  ;;  %p6365_p0 = scmp.lt.u32.totalorder %s6358_s21, %s7587_s5 }
  0x49   : > { %p6361_p12 = pnand %p6359_p11, %p6835_p8 }
  0x4b   : > { %p6362_p13 = pneg %p6361_p12 }
  0x4d   : > { %p6367_p2 = pnand %p6365_p0, %p6362_p13 }
  0x4f   : > { %6370 = shalt.err (!%p6367_p2)
}
  0x50   : > { %s6371_s11 = scalar_lea.vmem %s362_s30, 16384  ;;  %p6379_p4 = scmp.lt.s32.totalorder %s362_s30, %s362_s30 }
  0x51   : > { %p6372_p5 = scmp.ne.s32.totalorder %s362_s30, %s6371_s11  ;;  %p6380_p10 = scmp.lt.s32.totalorder %s6371_s11, %s6371_s11 }
  0x53   : > { %p6374_p7 = pnand %p6372_p5, %p6835_p8  ;;  %p6381_p1 = por %p6380_p10, %p6379_p4 }
  0x55   : > { %p6375_p9 = pneg %p6374_p7 }
  0x57   : > { %p6382_p3 = pnand %p6381_p1, %p6375_p9 }
  0x59   : > { %6385 = shalt.err (!%p6382_p3)
}
  0x5a   : > { %s6708_s1 = smov 128   ;;  %s6709_s24 = smov 8  }
  0x5b   : > { %5748 = dma.hbm_to_vmem [thread:$0]  (!%p6821_p6), %s7587_s5, 16384, %s362_s30, [#allocation12], %s6708_s1, %s6708_s1, %s6709_s24  }
  0x5c   : > { %s6386_s16 = scalar_lea.hbm %s7589_s7, 32 }
  0x5d   : > { %p6387_p1 = scmp.ne.s32.totalorder %s7589_s7, %s6386_s16  ;;  %p6393_p12 = scmp.lt.u32.totalorder %s6386_s16, %s7589_s7 }
  0x5f   : > { %p6389_p3 = pnand %p6387_p1, %p6835_p8 }
  0x61   : > { %p6390_p11 = pneg %p6389_p3 }
  0x63   : > { %p6395_p13 = pnand %p6393_p12, %p6390_p11 }
  0x65   : > { %6398 = shalt.err (!%p6395_p13)
}
  0x66   : > { %s6399_s30 = scalar_lea.vmem %s6879_s13, 32  ;;  %p6407_p7 = scmp.lt.s32.totalorder %s6879_s13, %s6879_s13 }
  0x67   : > { %p6400_p0 = scmp.ne.s32.totalorder %s6879_s13, %s6399_s30  ;;  %p6408_p9 = scmp.lt.s32.totalorder %s6399_s30, %s6399_s30 }
  0x69   : > { %p6402_p2 = pnand %p6400_p0, %p6835_p8  ;;  %p6409_p4 = por %p6408_p9, %p6407_p7 }
  0x6b   : > { %p6403_p5 = pneg %p6402_p2 }
  0x6d   : > { %p6410_p10 = pnand %p6409_p4, %p6403_p5 }
  0x6f   : > { %6413 = shalt.err (!%p6410_p10)
}
  0x70   : > { %5754 = dma.hbm_to_vmem [thread:$0]  (!%p6821_p6), %s7589_s7, 32, %s6879_s13, [#allocation15]  }
  0x71   : > { %s6710_s29 = smov [#allocation17]   ;;  %s6711_s15 = smov [#allocation7]  }
  0x72   : > { %s408_s12 = sshll.u32 %s6710_s29, 4  ;;  %s324_s16 = sshll.u32 %s6711_s15, 4  ;;  %s409_s12 = int_to_ptr.vmem [resolvable:$true] %s408_s12  ;;  %s6925_s16 = int_to_ptr.vmem [resolvable:$true] %s324_s16 }
  0x73   : > { %s6414_s25 = scalar_lea.hbm %s7591_s9, 32 }
  0x74   : > { %p6415_p1 = scmp.ne.s32.totalorder %s7591_s9, %s6414_s25  ;;  %p6421_p12 = scmp.lt.u32.totalorder %s6414_s25, %s7591_s9 }
  0x76   : > { %p6417_p3 = pnand %p6415_p1, %p6835_p8 }
  0x78   : > { %p6418_p11 = pneg %p6417_p3 }
  0x7a   : > { %p6423_p13 = pnand %p6421_p12, %p6418_p11 }
  0x7c   : > { %6426 = shalt.err (!%p6423_p13)
}
  0x7d   : > { %s6427_s28 = scalar_lea.vmem %s409_s12, 32  ;;  %p6435_p7 = scmp.lt.s32.totalorder %s409_s12, %s409_s12 }
  0x7e   : > { %p6428_p0 = scmp.ne.s32.totalorder %s409_s12, %s6427_s28  ;;  %p6436_p9 = scmp.lt.s32.totalorder %s6427_s28, %s6427_s28 }
  0x80   : > { %p6430_p2 = pnand %p6428_p0, %p6835_p8  ;;  %p6437_p4 = por %p6436_p9, %p6435_p7 }
  0x82   : > { %p6431_p5 = pneg %p6430_p2 }
  0x84   : > { %p6438_p10 = pnand %p6437_p4, %p6431_p5 }
  0x86   : > { %6441 = shalt.err (!%p6438_p10)
}
  0x87   : > { %5760 = dma.hbm_to_vmem [thread:$0]  (!%p6821_p6), %s7591_s9, 32, %s409_s12, [#allocation18]  }
  0x88   : > { %s7607_s2 = sld [smem:[#allocation30_spill]] }
  0x8e   : > { %s6442_s25 = scalar_lea.hbm %s7607_s2, 4096 }
  0x8f   : > { %p6443_p1 = scmp.ne.s32.totalorder %s7607_s2, %s6442_s25  ;;  %p6449_p12 = scmp.lt.u32.totalorder %s6442_s25, %s7607_s2 }
  0x91   : > { %p6445_p3 = pnand %p6443_p1, %p6835_p8 }
  0x93   : > { %p6446_p11 = pneg %p6445_p3 }
  0x95   : > { %p6451_p13 = pnand %p6449_p12, %p6446_p11 }
  0x97   : > { %6454 = shalt.err (!%p6451_p13)
}
  0x98   : > { %s6455_s12 = scalar_lea.vmem %s6925_s16, 4096  ;;  %p6463_p7 = scmp.lt.s32.totalorder %s6925_s16, %s6925_s16 }
  0x99   : > { %p6456_p0 = scmp.ne.s32.totalorder %s6925_s16, %s6455_s12  ;;  %p6464_p9 = scmp.lt.s32.totalorder %s6455_s12, %s6455_s12 }
  0x9b   : > { %p6458_p2 = pnand %p6456_p0, %p6835_p8  ;;  %p6465_p4 = por %p6464_p9, %p6463_p7 }
  0x9d   : > { %p6459_p5 = pneg %p6458_p2 }
  0x9f   : > { %p6466_p10 = pnand %p6465_p4, %p6459_p5 }
  0xa1   : > { %6469 = shalt.err (!%p6466_p10)
}
  0xa2   : > { %5739 = dma.hbm_to_vmem [thread:$0]  (!%p6821_p6), %s7607_s2, 4096, %s6925_s16, [#allocation6], %s6708_s1, %s6708_s1, %s6709_s24  }
  0xa3   : > { %s6712_s15 = smov [#allocation10]   ;;  %s6713_s22 = smov [#allocation13]  }
  0xa4   : > { %s351_s21 = sshll.u32 %s6712_s15, 4  ;;  %s375_s25 = sshll.u32 %s6713_s22, 4  ;;  %s352_s21 = int_to_ptr.vmem [resolvable:$true] %s351_s21  ;;  %s6971_s25 = int_to_ptr.vmem [resolvable:$true] %s375_s25 }
  0xa5   : > { %s6470_s11 = scalar_lea.hbm %s7586_s4, 128 }
  0xa6   : > { %p6471_p1 = scmp.ne.s32.totalorder %s7586_s4, %s6470_s11  ;;  %p6477_p12 = scmp.lt.u32.totalorder %s6470_s11, %s7586_s4 }
  0xa8   : > { %p6473_p3 = pnand %p6471_p1, %p6835_p8 }
  0xaa   : > { %p6474_p11 = pneg %p6473_p3 }
  0xac   : > { %p6479_p13 = pnand %p6477_p12, %p6474_p11 }
  0xae   : > { %6482 = shalt.err (!%p6479_p13)
}
  0xaf   : > { %s6483_s24 = scalar_lea.vmem %s352_s21, 128  ;;  %p6491_p7 = scmp.lt.s32.totalorder %s352_s21, %s352_s21 }
  0xb0   : > { %p6484_p0 = scmp.ne.s32.totalorder %s352_s21, %s6483_s24  ;;  %p6492_p9 = scmp.lt.s32.totalorder %s6483_s24, %s6483_s24 }
  0xb2   : > { %p6486_p2 = pnand %p6484_p0, %p6835_p8  ;;  %p6493_p4 = por %p6492_p9, %p6491_p7 }
  0xb4   : > { %p6487_p5 = pneg %p6486_p2 }
  0xb6   : > { %p6494_p10 = pnand %p6493_p4, %p6487_p5 }
  0xb8   : > { %6497 = shalt.err (!%p6494_p10)
}
  0xb9   : > { %5745 = dma.hbm_to_vmem [thread:$0]  (!%p6821_p6), %s7586_s4, 128, %s352_s21, [#allocation9]  }
  0xba   : > { %s6498_s26 = scalar_lea.hbm %s7588_s6, 32 }
  0xbb   : > { %p6499_p1 = scmp.ne.s32.totalorder %s7588_s6, %s6498_s26  ;;  %p6505_p12 = scmp.lt.u32.totalorder %s6498_s26, %s7588_s6 }
  0xbd   : > { %p6501_p3 = pnand %p6499_p1, %p6835_p8 }
  0xbf   : > { %p6502_p11 = pneg %p6501_p3 }
  0xc1   : > { %p6507_p13 = pnand %p6505_p12, %p6502_p11 }
  0xc3   : > { %6510 = shalt.err (!%p6507_p13)
}
  0xc4   : > { %s6511_s21 = scalar_lea.vmem %s6971_s25, 32  ;;  %p6519_p7 = scmp.lt.s32.totalorder %s6971_s25, %s6971_s25 }
  0xc5   : > { %p6512_p0 = scmp.ne.s32.totalorder %s6971_s25, %s6511_s21  ;;  %p6520_p9 = scmp.lt.s32.totalorder %s6511_s21, %s6511_s21 }
  0xc7   : > { %p6514_p2 = pnand %p6512_p0, %p6835_p8  ;;  %p6521_p4 = por %p6520_p9, %p6519_p7 }
  0xc9   : > { %p6515_p5 = pneg %p6514_p2 }
  0xcb   : > { %p6522_p10 = pnand %p6521_p4, %p6515_p5 }
  0xcd   : > { %6525 = shalt.err (!%p6522_p10)
}
  0xce   : > { %5751 = dma.hbm_to_vmem [thread:$0]  (!%p6821_p6), %s7588_s6, 32, %s6971_s25, [#allocation12]  }
  0xcf   : > { %s6714_s24 = smov [#allocation16]   ;;  %s6715_s29 = smov [#allocation19]  }
  0xd0   : > { %s397_s16 = sshll.u32 %s6714_s24, 4  ;;  %s419_s15 = sshll.u32 %s6715_s29, 4  ;;  %s398_s16 = int_to_ptr.vmem [resolvable:$true] %s397_s16  ;;  %s7014_s15 = int_to_ptr.vmem [resolvable:$true] %s419_s15 }
  0xd1   : > { %s6526_s30 = scalar_lea.hbm %s7590_s8, 32 }
  0xd2   : > { %p6527_p1 = scmp.ne.s32.totalorder %s7590_s8, %s6526_s30  ;;  %p6533_p12 = scmp.lt.u32.totalorder %s6526_s30, %s7590_s8 }
  0xd4   : > { %p6529_p3 = pnand %p6527_p1, %p6835_p8 }
  0xd6   : > { %p6530_p11 = pneg %p6529_p3 }
  0xd8   : > { %p6535_p13 = pnand %p6533_p12, %p6530_p11 }
  0xda   : > { %6538 = shalt.err (!%p6535_p13)
}
  0xdb   : > { %s6539_s21 = scalar_lea.vmem %s398_s16, 32  ;;  %p6547_p7 = scmp.lt.s32.totalorder %s398_s16, %s398_s16 }
  0xdc   : > { %p6540_p0 = scmp.ne.s32.totalorder %s398_s16, %s6539_s21  ;;  %p6548_p9 = scmp.lt.s32.totalorder %s6539_s21, %s6539_s21 }
  0xde   : > { %p6542_p2 = pnand %p6540_p0, %p6835_p8  ;;  %p6549_p4 = por %p6548_p9, %p6547_p7 }
  0xe0   : > { %p6543_p5 = pneg %p6542_p2 }
  0xe2   : > { %p6550_p10 = pnand %p6549_p4, %p6543_p5 }
  0xe4   : > { %6553 = shalt.err (!%p6550_p10)
}
  0xe5   : > { %5757 = dma.hbm_to_vmem [thread:$0]  (!%p6821_p6), %s7590_s8, 32, %s398_s16, [#allocation15]  }
  0xe6   : > { %s6554_s22 = scalar_lea.hbm %s7592_s10, 32 }
  0xe7   : > { %p6555_p1 = scmp.ne.s32.totalorder %s7592_s10, %s6554_s22  ;;  %p6561_p12 = scmp.lt.u32.totalorder %s6554_s22, %s7592_s10 }
  0xe9   : > { %p6557_p3 = pnand %p6555_p1, %p6835_p8 }
  0xeb   : > { %p6558_p11 = pneg %p6557_p3 }
  0xed   : > { %p6563_p13 = pnand %p6561_p12, %p6558_p11 }
  0xef   : > { %6566 = shalt.err (!%p6563_p13)
}
  0xf0   : > { %s6567_s16 = scalar_lea.vmem %s7014_s15, 32  ;;  %p6575_p7 = scmp.lt.s32.totalorder %s7014_s15, %s7014_s15 }
  0xf1   : > { %p6568_p0 = scmp.ne.s32.totalorder %s7014_s15, %s6567_s16  ;;  %p6576_p9 = scmp.lt.s32.totalorder %s6567_s16, %s6567_s16 }
  0xf3   : > { %p6570_p2 = pnand %p6568_p0, %p6835_p8  ;;  %p6577_p4 = por %p6576_p9, %p6575_p7 }
  0xf5   : > { %p6571_p5 = pneg %p6570_p2 }
  0xf7   : > { %p6578_p10 = pnand %p6577_p4, %p6571_p5 }
  0xf9   : > { %6581 = shalt.err (!%p6578_p10)
}
  0xfa   : > { %5763 = dma.hbm_to_vmem [thread:$0]  (!%p6821_p6), %s7592_s10, 32, %s7014_s15, [#allocation18]  }
  0xfb   : > { %s5117_s27 = sadd.s32 4294967294, %s6698_s20   ;;  %s7059_s14 = sadd.s32 1, %s6698_s20  }
  0xfc   : > { %s36_s21 = ssub.s32 %s6698_s20, %s7059_s14  ;;  %s39_s28 = sadd.s32 1, %s6694_s19 }
  0xfd   : > { %p37_p8 = scmp.eq.s32.totalorder %s36_s21, 0  ;;  %p46_p1 = scmp.ne.s32.totalorder %s6694_s19, %s6690_s18 }
  0xfe   : > { %p47_p3 = scmp.eq.s32.totalorder %s6698_s20, 0  ;;  %p52_p11 = scmp.ne.s32.totalorder %s6690_s18, %s6686_s17 }
  0xff   : > { %s7070_s1 = scalar_select %p37_p8, %s6694_s19, %s39_s28  }
 0x100   : > { %p7072_p12 = por %p47_p3, %p46_p1  ;;  %p7609_p13 = scmp.eq.s32.totalorder %s6805_s23, 0 }
 0x101   : > { %p286_p0 = scmp.eq.s32.totalorder %s6805_s23, 1  ;;  %p292_p2 = scmp.eq.s32.totalorder %s5117_s27, 1 }
 0x102   : > { %p7078_p6 = por %p7609_p13, %p52_p11  ;;  %p5782_p5 = scmp.lt.s32.totalorder %s6698_s20, 2 }
 0x103   : > { %s430_s29 = sand.u32 1, %s6694_s19   ;;  %p7085_p7 = por %p286_p0, %p46_p1 }
 0x104   : > { %p7089_p9 = por %p292_p2, %p52_p11  ;;  %s5130_s30 = sshll.u32 %s430_s29, 4 }
 0x105   : > { %s7611_s22 = scalar_select %p7085_p7, 1, 0 }
 0x106   : > { %s7612_s26 = scalar_select %p7089_p9, 1, 0 }
 0x107   : > { %s5559_s11 = sshll.u32 %s6698_s20, 8  ;;  %s434_s25 = scalar_lea.vmem [#allocation2], %s5130_s30 }
 0x108   : > { %s7097_s12 = scalar_lea.hbm %s7582_s0, %s5559_s11  ;;  %s442_s27 = sshll.u32 %s434_s25, 4  ;;  %s7099_s27 = int_to_ptr.vmem [resolvable:$true] %s442_s27 }
 0x109   : > { %p7103_p4 = pnand %p5782_p5, %p7072_p12  ;;  %s431_s28 = scalar_lea.sflag [#allocation3], %s430_s29 }
 0x10a   : > { %s6582_s2 = scalar_lea.hbm %s7097_s12, 256  ;;  %s6587_s13 = scalar_lea.hbm %s7582_s0, 512 }
 0x10b   : > { %p6583_p10 = scmp.ne.s32.totalorder %s7097_s12, %s6582_s2  ;;  %p6584_p8 = pneg %p7103_p4 }
 0x10c   : > { %p6588_p11 = scmp.lt.u32.totalorder %s7097_s12, %s7582_s0  ;;  %p6589_p12 = scmp.lt.u32.totalorder %s6587_s13, %s6582_s2 }
 0x10d   : > { %p6585_p1 = pnand %p6584_p8, %p6583_p10  ;;  %p6591_p0 = scmp.lt.u32.totalorder %s6582_s2, %s7097_s12 }
 0x10e   : > { %p6590_p13 = por %p6589_p12, %p6588_p11 }
 0x10f   : > { %p6586_p3 = pneg %p6585_p1 }
 0x110   : > { %p6592_p2 = por %p6591_p0, %p6590_p13 }
 0x112   : > { %p6593_p5 = pnand %p6592_p2, %p6586_p3 }
 0x114   : > { %6596 = shalt.err (!%p6593_p5)
}
 0x115   : > { %s6597_s29 = scalar_lea.vmem %s7099_s27, 256  ;;  %s6716_s25 = smov [#allocation2]  }
 0x116   : > { %p6598_p10 = scmp.ne.s32.totalorder %s7099_s27, %s6597_s29  ;;  %s6602_s30 = sshll.u32 %s6716_s25, 4  ;;  %s6603_s30 = int_to_ptr.vmem [resolvable:$false] %s6602_s30 }
 0x117   : > { %s6604_s11 = scalar_lea.vmem %s6603_s30, 512  ;;  %p6605_p7 = scmp.lt.s32.totalorder %s7099_s27, %s6603_s30 }
 0x118   : > { %p6600_p1 = pnand %p6598_p10, %p6584_p8  ;;  %p6606_p11 = scmp.lt.s32.totalorder %s6604_s11, %s6597_s29 }
 0x11a   : > { %p6601_p9 = pneg %p6600_p1  ;;  %p6607_p12 = por %p6606_p11, %p6605_p7 }
 0x11c   : > { %p6608_p13 = pnand %p6607_p12, %p6601_p9 }
 0x11e   : > { %6611 = shalt.err (!%p6608_p13)
}
 0x11f   : > { %5767 = dma.hbm_to_vmem [thread:$0]  (!%p7103_p4), %s7097_s12, 256, %s7099_s27, %s431_s28  }
 0x120   : > { %s7614_s2 = sld [smem:[#allocation28_spill]] }
 0x126   : > { %p7615_p3 = scmp.ne.s32.totalorder %s7614_s2, 0 }
 0x127   : > { %s7135_s13 = sand.u32 (!%p7615_p3), 1, %s6690_s18  }
 0x128   : > { %451 = sbr.rel (%p7615_p3) target bundleno = 5209 (0x1459), region = 64  ;;  %s5134_s24 = sshll.u32 (!%p7615_p3), %s7135_s13, 4 }
 0x129   : > { %s454_s16 = scalar_lea.sflag (!%p7615_p3), [#allocation3], %s7135_s13  ;;  %s7141_s29 = scalar_lea.vmem (!%p7615_p3), [#allocation2], %s5134_s24 }
 0x12f   : > { %6657 = dma.done.wait (%p7078_p6), %s454_s16, 256  }
 0x130   : > { %6659 = vsyncadd (%p7078_p6), %s454_s16, 4294967040  ;;  %p7616_p7 = scmp.eq.s32.totalorder %s6805_s23, 0 }
 0x132   : > { %6661 = dma.done.wait (%p7616_p7), [#allocation6], 16384   ;;  %p7617_p9 = pmov %p7616_p7 }
 0x133   : > { %p7618_p4 = pmov %p7616_p7 }
 0x134   : > { %6663 = vsyncadd (%p7617_p9), [#allocation6], 4294950912 }
 0x135   : > { %6665 = dma.done.wait (%p7618_p4), [#allocation9], 16512   ;;  %p7619_p8 = pmov %p7618_p4 }
 0x136   : > { %p7620_p0 = pmov %p7618_p4 }
 0x137   : > { %6667 = vsyncadd (%p7619_p8), [#allocation9], 4294950784 }
 0x138   : > { %6669 = dma.done.wait (%p7620_p0), [#allocation12], 16416   ;;  %p7621_p2 = pmov %p7620_p0 }
 0x139   : > { %p7622_p6 = pmov %p7620_p0 }
 0x13a   : > { %6671 = vsyncadd (%p7621_p2), [#allocation12], 4294950880 }
 0x13b   : > { %6673 = dma.done.wait (%p7622_p6), [#allocation15], 64   ;;  %p7623_p5 = pmov %p7620_p0 }
 0x13c   : > { %p7624_p10 = pmov %p7620_p0 }
 0x13d   : > { %6675 = vsyncadd (%p7623_p5), [#allocation15], 4294967232 }
 0x13e   : > { %6677 = dma.done.wait (%p7624_p10), [#allocation18], 64   ;;  %p7625_p1 = pmov %p7620_p0 }
 0x13f   : > { %v5848_v0 = vld [vmem:[#allocation5 + $0x4] ss:$24 sps:$4 sm:$0xff]   ;;  %v5850_v1 = vld [vmem:[#allocation5] ss:$24 sps:$4 sm:$0xff]   ;;  %v5851_v2 = vld [vmem:[#allocation5 + $0x34] ss:$24 sps:$4 sm:$0xff]  }
 0x140   : > { %6679 = vsyncadd (%p7625_p1), [#allocation18], 4294967232  ;;  %1117 = vmatprep.subr.bf16.mxu0 %v5848_v0  ;;  %v5853_v3 = vld [vmem:[#allocation5 + $0x30] ss:$24 sps:$4 sm:$0xff]   ;;  %v5854_v4 = vld [vmem:[#allocation5 + $0xc] ss:$24 sps:$4 sm:$0xff]  }
 0x141   : > { %1118 = vmatpush1.bf16.msra.mxu0 %v5850_v1  ;;  %v5856_v5 = vld [vmem:[#allocation5 + $0x8] ss:$24 sps:$4 sm:$0xff]   ;;  %v5857_v6 = vld [vmem:[#allocation5 + $0x64] ss:$24 sps:$4 sm:$0xff]   ;;  %1158 = vmatprep.subr.bf16.mxu1 %v5854_v4  ;;  %v5862_v8 = vld [vmem:[#allocation5 + $0x38] ss:$24 sps:$4 sm:$0xff]  }
 0x142   : > { %1119 = vmatprep.subr.bf16.mxu0 %v5851_v2  ;;  %1159 = vmatpush1.bf16.msra.mxu1 %v5856_v5  ;;  %v5860_v7 = vld [vmem:[#allocation5 + $0x3c] ss:$24 sps:$4 sm:$0xff]   ;;  %v5859_v9 = vld [vmem:[#allocation5 + $0x60] ss:$24 sps:$4 sm:$0xff]   ;;  %v5866_v11 = vld [vmem:[#allocation5 + $0x6c] ss:$24 sps:$4 sm:$0xff]  }
 0x143   : > { %v5863_v10 = vld [vmem:[#allocation5 + $0x94] ss:$24 sps:$4 sm:$0xff]   ;;  %1160 = vmatprep.subr.bf16.mxu1 %v5860_v7  ;;  %v5868_v12 = vld [vmem:[#allocation5 + $0x68] ss:$24 sps:$4 sm:$0xff]   ;;  %v5869_v15 = vld [vmem:[#allocation5 + $0xc4] ss:$24 sps:$4 sm:$0xff]  }
 0x144   : > { %v5865_v13 = vld [vmem:[#allocation5 + $0x90] ss:$24 sps:$4 sm:$0xff]   ;;  %v5872_v14 = vld [vmem:[#allocation5 + $0x9c] ss:$24 sps:$4 sm:$0xff]   ;;  %v5871_v17 = vld [vmem:[#allocation5 + $0xc0] ss:$24 sps:$4 sm:$0xff]  }
 0x145   : > { %1120 = vmatpush1.bf16.msra.mxu0 %v5853_v3  ;;  %v5874_v16 = vld [vmem:[#allocation5 + $0x98] ss:$24 sps:$4 sm:$0xff]   ;;  %v5878_v18 = vld [vmem:[#allocation5 + $0xcc] ss:$24 sps:$4 sm:$0xff]   ;;  %v5880_v20 = vld [vmem:[#allocation5 + $0xc8] ss:$24 sps:$4 sm:$0xff]  }
 0x146   : > { %1121 = vmatprep.subr.bf16.mxu0 %v5857_v6  ;;  %1161 = vmatpush1.bf16.msra.mxu1 %v5862_v8  ;;  %v5875_v19 = vld [vmem:[#allocation5 + $0xf4] ss:$24 sps:$4 sm:$0xff]   ;;  %v5877_v21 = vld [vmem:[#allocation5 + $0xf0] ss:$24 sps:$4 sm:$0xff]   ;;  %v5881_v23 = vld [vmem:[#allocation5 + $0x124] ss:$24 sps:$4 sm:$0xff]  }
 0x147   : > { %1162 = vmatprep.subr.bf16.mxu1 %v5866_v11  ;;  %v5884_v22 = vld [vmem:[#allocation5 + $0xfc] ss:$24 sps:$4 sm:$0xff]   ;;  %v5886_v24 = vld [vmem:[#allocation5 + $0xf8] ss:$24 sps:$4 sm:$0xff]   ;;  %v5890_v26 = vld [vmem:[#allocation5 + $0x12c] ss:$24 sps:$4 sm:$0xff]  }
 0x148   : > { %v5883_v25 = vld [vmem:[#allocation5 + $0x120] ss:$24 sps:$4 sm:$0xff]   ;;  %v5887_v27 = vld [vmem:[#allocation5 + $0x154] ss:$24 sps:$4 sm:$0xff]   ;;  %v5889_v29 = vld [vmem:[#allocation5 + $0x150] ss:$24 sps:$4 sm:$0xff]  }
 0x149   : > { %1122 = vmatpush1.bf16.msra.mxu0 %v5859_v9  ;;  %v5892_v28 = vld [vmem:[#allocation5 + $0x128] ss:$24 sps:$4 sm:$0xff]   ;;  %v5896_v30 = vld [vmem:[#allocation5 + $0x15c] ss:$24 sps:$4 sm:$0xff]   ;;  %v5898_v32 = vld [vmem:[#allocation5 + $0x158] ss:$24 sps:$4 sm:$0xff]  }
 0x14a   : > { %1123 = vmatprep.subr.bf16.mxu0 %v5863_v10  ;;  %1163 = vmatpush1.bf16.msra.mxu1 %v5868_v12  ;;  %v5893_v31 = vld [vmem:[#allocation5 + $0x184] ss:$24 sps:$4 sm:$0xff]   ;;  %v5895_v33 = vld [vmem:[#allocation5 + $0x180] ss:$24 sps:$4 sm:$0xff]   ;;  %v5899_v35 = vld [vmem:[#allocation5 + $0x1b4] ss:$24 sps:$4 sm:$0xff]  }
 0x14b   : > { %1164 = vmatprep.subr.bf16.mxu1 %v5872_v14  ;;  %v5902_v34 = vld [vmem:[#allocation5 + $0x18c] ss:$24 sps:$4 sm:$0xff]   ;;  %v5904_v36 = vld [vmem:[#allocation5 + $0x188] ss:$24 sps:$4 sm:$0xff]   ;;  %v5908_v38 = vld [vmem:[#allocation5 + $0x1bc] ss:$24 sps:$4 sm:$0xff]  }
 0x14c   : > { %v5901_v37 = vld [vmem:[#allocation5 + $0x1b0] ss:$24 sps:$4 sm:$0xff]   ;;  %v5905_v39 = vld [vmem:[#allocation5 + $0x1e4] ss:$24 sps:$4 sm:$0xff]   ;;  %v5907_v41 = vld [vmem:[#allocation5 + $0x1e0] ss:$24 sps:$4 sm:$0xff]  }
 0x14d   : > { %1124 = vmatpush1.bf16.msra.mxu0 %v5865_v13  ;;  %v5910_v40 = vld [vmem:[#allocation5 + $0x1b8] ss:$24 sps:$4 sm:$0xff]   ;;  %v5914_v42 = vld [vmem:[#allocation5 + $0x1ec] ss:$24 sps:$4 sm:$0xff]   ;;  %v5916_v45 = vld [vmem:[#allocation5 + $0x1e8] ss:$24 sps:$4 sm:$0xff]  }
 0x14e   : > { %1125 = vmatprep.subr.bf16.mxu0 %v5869_v15  ;;  %1165 = vmatpush1.bf16.msra.mxu1 %v5874_v16  ;;  %v5911_v43 = vld [vmem:[#allocation5 + $0x214] ss:$24 sps:$4 sm:$0xff]   ;;  %v5913_v44 = vld [vmem:[#allocation5 + $0x210] ss:$24 sps:$4 sm:$0xff]   ;;  %v5917_v47 = vld [vmem:[#allocation5 + $0x244] ss:$24 sps:$4 sm:$0xff]  }
 0x14f   : > { %1166 = vmatprep.subr.bf16.mxu1 %v5878_v18  ;;  %v538_v46 = vld [vmem:[%s7141_s29 + $0x8] sm:$0xff]  ;;  %v537_v0 = vld [vmem:[%s7141_s29] sm:$0xff]  ;;  %v6717_v4 = vmov 0.0   ;;  %vm6718_vm0 = vmmov 0   ;;  %vm1243_vm1 = vcmask 261120   ;;  %s6719_s15 = smov 96  }
 0x150   : > { %v540_v48 = vpack.c.bf16 %v538_v46, %v538_v46  ;;  %v5920_v49 = vld [vmem:[#allocation5 + $0x21c] ss:$24 sps:$4 sm:$0xff]   ;;  %v5922_v50 = vld [vmem:[#allocation5 + $0x218] ss:$24 sps:$4 sm:$0xff]   ;;  %v5926_v52 = vld [vmem:[#allocation5 + $0x24c] ss:$24 sps:$4 sm:$0xff]   ;;  %v7169_v3 = vpack.c.bf16 %v537_v0, %v537_v0 }
 0x151   : > { %1126 = vmatpush1.bf16.msra.mxu0 %v5871_v17  ;;  %v5919_v51 = vld [vmem:[#allocation5 + $0x240] ss:$24 sps:$4 sm:$0xff]   ;;  %v5923_v53 = vld [vmem:[#allocation5 + $0x274] ss:$24 sps:$4 sm:$0xff]   ;;  %v5925_v55 = vld [vmem:[#allocation5 + $0x270] ss:$24 sps:$4 sm:$0xff]  }
 0x152   : > { %1127 = vmatprep.subr.bf16.mxu0 %v5875_v19  ;;  %1167 = vmatpush1.bf16.msra.mxu1 %v5880_v20  ;;  %v5928_v54 = vld [vmem:[#allocation5 + $0x248] ss:$24 sps:$4 sm:$0xff]   ;;  %v5932_v56 = vld [vmem:[#allocation5 + $0x27c] ss:$24 sps:$4 sm:$0xff]   ;;  %v5934_v58 = vld [vmem:[#allocation5 + $0x278] ss:$24 sps:$4 sm:$0xff]  }
 0x153   : > { %1168 = vmatprep.subr.bf16.mxu1 %v5884_v22  ;;  %1149 = vmatprep.mubr.bf16.mxu0 %v540_v48  ;;  %v5929_v57 = vld [vmem:[#allocation5 + $0x2a4] ss:$24 sps:$4 sm:$0xff]   ;;  %v5931_v59 = vld [vmem:[#allocation5 + $0x2a0] ss:$24 sps:$4 sm:$0xff]   ;;  %v5935_v61 = vld [vmem:[#allocation5 + $0x2d4] ss:$24 sps:$4 sm:$0xff]  }
 0x154   : > { %1190 = vmatprep.mubr.bf16.mxu1 %v540_v48  ;;  %v5938_v60 = vld [vmem:[#allocation5 + $0x2ac] ss:$24 sps:$4 sm:$0xff]   ;;  %v5940_v62 = vld [vmem:[#allocation5 + $0x2a8] ss:$24 sps:$4 sm:$0xff]   ;;  %v5941_v1 = vld [vmem:[#allocation5 + $0x2dc] ss:$24 sps:$4 sm:$0xff]  }
 0x155   : > { %1128 = vmatpush1.bf16.msra.mxu0 %v5877_v21  ;;  %v5937_v63 = vld [vmem:[#allocation5 + $0x2d0] ss:$24 sps:$4 sm:$0xff]   ;;  %v5946_v6 = vld [vmem:[#allocation5 + $0x14] ss:$24 sps:$4 sm:$0xff]   ;;  %v5949_v7 = vld [vmem:[#allocation5 + $0x44] ss:$24 sps:$4 sm:$0xff]  }
 0x156   : > { %1129 = vmatprep.subr.bf16.mxu0 %v5881_v23  ;;  %1169 = vmatpush1.bf16.msra.mxu1 %v5886_v24  ;;  %v5943_v2 = vld [vmem:[#allocation5 + $0x2d8] ss:$24 sps:$4 sm:$0xff]   ;;  %v5952_v9 = vld [vmem:[#allocation5 + $0x74] ss:$24 sps:$4 sm:$0xff]   ;;  %v5955_v11 = vld [vmem:[#allocation5 + $0xa4] ss:$24 sps:$4 sm:$0xff]  }
 0x157   : > { %1170 = vmatprep.subr.bf16.mxu1 %v5890_v26  ;;  %v5944_v5 = vld [vmem:[#allocation5 + $0x10] ss:$24 sps:$4 sm:$0xff]   ;;  %v5947_v8 = vld [vmem:[#allocation5 + $0x40] ss:$24 sps:$4 sm:$0xff]   ;;  %v5958_v13 = vld [vmem:[#allocation5 + $0xd4] ss:$24 sps:$4 sm:$0xff]  }
 0x158   : > { %v5950_v10 = vld [vmem:[#allocation5 + $0x70] ss:$24 sps:$4 sm:$0xff]   ;;  %v5953_v12 = vld [vmem:[#allocation5 + $0xa0] ss:$24 sps:$4 sm:$0xff]   ;;  %v5961_v15 = vld [vmem:[#allocation5 + $0x104] ss:$24 sps:$4 sm:$0xff]  }
 0x159   : > { %1130 = vmatpush1.bf16.msra.mxu0 %v5883_v25  ;;  %v5956_v14 = vld [vmem:[#allocation5 + $0xd0] ss:$24 sps:$4 sm:$0xff]   ;;  %v5959_v16 = vld [vmem:[#allocation5 + $0x100] ss:$24 sps:$4 sm:$0xff]   ;;  %v5964_v17 = vld [vmem:[#allocation5 + $0x134] ss:$24 sps:$4 sm:$0xff]  }
 0x15a   : > { %1131 = vmatprep.subr.bf16.mxu0 %v5887_v27  ;;  %1171 = vmatpush1.bf16.msra.mxu1 %v5892_v28  ;;  %v5962_v18 = vld [vmem:[#allocation5 + $0x130] ss:$24 sps:$4 sm:$0xff]   ;;  %v5967_v19 = vld [vmem:[#allocation5 + $0x164] ss:$24 sps:$4 sm:$0xff]   ;;  %v5965_v20 = vld [vmem:[#allocation5 + $0x160] ss:$24 sps:$4 sm:$0xff]  }
 0x15b   : > { %1172 = vmatprep.subr.bf16.mxu1 %v5896_v30  ;;  %v5968_v21 = vld [vmem:[#allocation5 + $0x190] ss:$24 sps:$4 sm:$0xff]   ;;  %v5970_v22 = vld [vmem:[#allocation5 + $0x194] ss:$24 sps:$4 sm:$0xff]   ;;  %v5973_v23 = vld [vmem:[#allocation5 + $0x1c4] ss:$24 sps:$4 sm:$0xff]  }
 0x15c   : > { %v5971_v24 = vld [vmem:[#allocation5 + $0x1c0] ss:$24 sps:$4 sm:$0xff]   ;;  %v5976_v25 = vld [vmem:[#allocation5 + $0x1f4] ss:$24 sps:$4 sm:$0xff]   ;;  %v5974_v26 = vld [vmem:[#allocation5 + $0x1f0] ss:$24 sps:$4 sm:$0xff]  }
 0x15d   : > { %1132 = vmatpush1.bf16.msra.mxu0 %v5889_v29  ;;  %v5979_v28 = vld [vmem:[#allocation5 + $0x224] ss:$24 sps:$4 sm:$0xff]   ;;  %vm1290_vm2 = vcmask 64512   ;;  %vm1306_vm3 = vcmask 1043456   ;;  %s6720_s12 = smov 64   ;;  %s6721_s27 = smov 32  }
 0x15e   : > { %1133 = vmatprep.subr.bf16.mxu0 %v5893_v31  ;;  %1173 = vmatpush1.bf16.msra.mxu1 %v5898_v32  ;;  %v5991_v46 = vld [vmem:[#allocation5 + $0x2e4] ss:$24 sps:$4 sm:$0xff]   ;;  %s5560_s21 = sshll.u32 %s6805_s23, 8  ;;  %s535_s28 = scalar_lea.vmem [#allocation20], %s5134_s24 }
 0x15f   : > { %1174 = vmatprep.subr.bf16.mxu1 %v5902_v34  ;;  %s4952_s25 = sshll.u32 %s535_s28, 4  ;;  %s7626_s2 = sld [smem:[#allocation31_spill]]  ;;  %s7540_s25 = int_to_ptr.vmem [resolvable:$true] %s4952_s25 }
 0x160   : > { %s4938_s23 = scalar_lea.sflag [#allocation4], %s7135_s13  ;;  %p7627_p12 = scmp.ne.s32.totalorder %s7611_s22, 0 }
 0x161   : > { %1134 = vmatpush1.bf16.msra.mxu0 %v5895_v33  ;;  %s6723_s24 = smov [#allocation20]  }
 0x162   : > { %1135 = vmatprep.subr.bf16.mxu0 %v5899_v35  ;;  %1175 = vmatpush1.bf16.msra.mxu1 %v5904_v36  ;;  %v5977_v35 = vld [vmem:[#allocation5 + $0x220] ss:$24 sps:$4 sm:$0xff]  }
 0x163   : > { %1176 = vmatprep.subr.bf16.mxu1 %v5908_v38  ;;  %v5982_v38 = vld [vmem:[#allocation5 + $0x254] ss:$24 sps:$4 sm:$0xff]  }
 0x165   : > { %1136 = vmatpush1.bf16.msra.mxu0 %v5901_v37  ;;  %s7538_s16 = scalar_lea.hbm %s7626_s2, %s5560_s21 }
 0x166   : > { %1137 = vmatprep.subr.bf16.mxu0 %v5905_v39  ;;  %1177 = vmatpush1.bf16.msra.mxu1 %v5910_v40 }
 0x167   : > { %1178 = vmatprep.subr.bf16.mxu1 %v5914_v42  ;;  %v5985_v42 = vld [vmem:[#allocation5 + $0x284] ss:$24 sps:$4 sm:$0xff]  }
 0x169   : > { %1138 = vmatpush1.bf16.msra.mxu0 %v5907_v41  ;;  %v5980_v41 = vld [vmem:[#allocation5 + $0x250] ss:$24 sps:$4 sm:$0xff]  }
 0x16a   : > { %1139 = vmatprep.subr.bf16.mxu0 %v5911_v43  ;;  %1179 = vmatpush1.bf16.msra.mxu1 %v5916_v45  ;;  %v5983_v43 = vld [vmem:[#allocation5 + $0x280] ss:$24 sps:$4 sm:$0xff]   ;;  %v5986_v45 = vld [vmem:[#allocation5 + $0x2b0] ss:$24 sps:$4 sm:$0xff]  }
 0x16b   : > { %1180 = vmatprep.subr.bf16.mxu1 %v5920_v49 }
 0x16d   : > { %1140 = vmatpush1.bf16.msra.mxu0 %v5913_v44  ;;  %v5988_v44 = vld [vmem:[#allocation5 + $0x2b4] ss:$24 sps:$4 sm:$0xff]  }
 0x16e   : > { %1141 = vmatprep.subr.bf16.mxu0 %v5917_v47  ;;  %1181 = vmatpush1.bf16.msra.mxu1 %v5922_v50  ;;  %v5989_v47 = vld [vmem:[#allocation5 + $0x2e0] ss:$24 sps:$4 sm:$0xff]  }
 0x16f   : > { %1182 = vmatprep.subr.bf16.mxu1 %v5926_v52 }
 0x171   : > { %1142 = vmatpush1.bf16.msra.mxu0 %v5919_v51 }
 0x172   : > { %1143 = vmatprep.subr.bf16.mxu0 %v5923_v53  ;;  %1183 = vmatpush1.bf16.msra.mxu1 %v5928_v54 }
 0x173   : > { %1184 = vmatprep.subr.bf16.mxu1 %v5932_v56 }
 0x175   : > { %1144 = vmatpush1.bf16.msra.mxu0 %v5925_v55 }
 0x176   : > { %1145 = vmatprep.subr.bf16.mxu0 %v5929_v57  ;;  %1185 = vmatpush1.bf16.msra.mxu1 %v5934_v58 }
 0x177   : > { %1186 = vmatprep.subr.bf16.mxu1 %v5938_v60 }
 0x179   : > { %1146 = vmatpush1.bf16.msra.mxu0 %v5931_v59 }
 0x17a   : > { %1147 = vmatprep.subr.bf16.mxu0 %v5935_v61  ;;  %1187 = vmatpush1.bf16.msra.mxu1 %v5940_v62 }
 0x17b   : > { %1188 = vmatprep.subr.bf16.mxu1 %v5941_v1 }
 0x17d   : > { %1148 = vmatpush1.bf16.msra.mxu0 %v5937_v63 }
 0x17e   : > { %1189 = vmatpush1.bf16.msra.mxu1 %v5943_v2  ;;  %1199 = vmatprep.subr.bf16.mxu0 %v5946_v6 }
 0x17f   : > { %5593 = vmatprep.subr.bf16.mxu1 %v6717_v4 }
 0x180   : > { %1150 = vmatmul.mubr.bf16.vlgmr.msra.gmra.mrb[0].mxu0 %v7169_v3 }
 0x181   : > { %1231 = vmatprep.mubr.bf16.mxu0 %v540_v48  ;;  %1191 = vmatmul.mubr.bf16.vlgmr.msra.gmra.mrb[0].mxu1 %v7169_v3 }
 0x182   : > { %5595 = vmatprep.mubr.msk.bf16.mxu1 %vm6718_vm0, %v6717_v4  ;;  %1200 = vmatpush1.bf16.msra.mxu0 %v5944_v5 }
 0x183   : > { %1201 = vmatprep.subr.bf16.mxu0 %v5949_v7 }
 0x186   : > { %1202 = vmatpush1.bf16.msra.mxu0 %v5947_v8 }
 0x187   : > { %1203 = vmatprep.subr.bf16.mxu0 %v5952_v9 }
 0x18a   : > { %1204 = vmatpush1.bf16.msra.mxu0 %v5950_v10 }
 0x18b   : > { %1205 = vmatprep.subr.bf16.mxu0 %v5955_v11 }
 0x18e   : > { %1206 = vmatpush1.bf16.msra.mxu0 %v5953_v12 }
 0x18f   : > { %1207 = vmatprep.subr.bf16.mxu0 %v5958_v13 }
 0x192   : > { %1208 = vmatpush1.bf16.msra.mxu0 %v5956_v14 }
 0x193   : > { %1209 = vmatprep.subr.bf16.mxu0 %v5961_v15 }
 0x196   : > { %1210 = vmatpush1.bf16.msra.mxu0 %v5959_v16 }
 0x197   : > { %1211 = vmatprep.subr.bf16.mxu0 %v5964_v17 }
 0x19a   : > { %1212 = vmatpush1.bf16.msra.mxu0 %v5962_v18 }
 0x19b   : > { %1213 = vmatprep.subr.bf16.mxu0 %v5967_v19 }
 0x19e   : > { %1214 = vmatpush1.bf16.msra.mxu0 %v5965_v20 }
 0x19f   : > { %1215 = vmatprep.subr.bf16.mxu0 %v5970_v22  ;;  %v5992_v22 = vld [vmem:[#allocation7 + $0x20] ss:$8 sps:$4 sm:$0xff]  }
 0x1a2   : > { %1216 = vmatpush1.bf16.msra.mxu0 %v5968_v21 }
 0x1a3   : > { %1217 = vmatprep.subr.bf16.mxu0 %v5973_v23  ;;  %v5994_v23 = vld [vmem:[#allocation7 + $0x24] ss:$8 sps:$4 sm:$0xff]  }
 0x1a6   : > { %1218 = vmatpush1.bf16.msra.mxu0 %v5971_v24  ;;  %v5997_v24 = vld [vmem:[#allocation7 + $0x34] ss:$8 sps:$4 sm:$0xff]  }
 0x1a7   : > { %1219 = vmatprep.subr.bf16.mxu0 %v5976_v25  ;;  %v5995_v25 = vld [vmem:[#allocation7 + $0x30] ss:$8 sps:$4 sm:$0xff]  }
 0x1aa   : > { %1220 = vmatpush1.bf16.msra.mxu0 %v5974_v26  ;;  %v6000_v26 = vld [vmem:[#allocation7 + $0x4] ss:$8 sps:$4 sm:$0xff]  }
 0x1ab   : > { %1221 = vmatprep.subr.bf16.mxu0 %v5979_v28 }
 0x1ae   : > { %1222 = vmatpush1.bf16.msra.mxu0 %v5977_v35 }
 0x1af   : > { %1223 = vmatprep.subr.bf16.mxu0 %v5982_v38 }
 0x1b2   : > { %1224 = vmatpush1.bf16.msra.mxu0 %v5980_v41 }
 0x1b3   : > { %1225 = vmatprep.subr.bf16.mxu0 %v5985_v42  ;;  %v6001_v42 = vld [vmem:[#allocation7 + $0x10] ss:$8 sps:$4 sm:$0xff]  }
 0x1b6   : > { %1226 = vmatpush1.bf16.msra.mxu0 %v5983_v43 }
 0x1b7   : > { %1227 = vmatprep.subr.bf16.mxu0 %v5988_v44 }
 0x1ba   : > { %1228 = vmatpush1.bf16.msra.mxu0 %v5986_v45 }
 0x1bb   : > { %1229 = vmatprep.subr.bf16.mxu0 %v5991_v46 }
 0x1be   : > { %1230 = vmatpush1.bf16.msra.mxu0 %v5989_v47 }
 0x1c1   : > { %1232 = vmatmul.mubr.bf16.vlgmr.msra.gmra.mrb[4].mxu0 %v7169_v3 }
 0x253   : > { %v1151_v27 = vpop.f32.mrb[0].mxu0 }
 0x254   : > { %v7176_v29 = vpack.c.bf16 %v1151_v27, %v1151_v27  ;;  %v7178_v30 = vpop.f32.mrb[1].mxu0  ;;  %v1192_v34 = vpop.f32.mrb[0].mxu1  ;;  %v6722_v27 = vmov 0  }
 0x255   : > { %v1155_v31 = vpop.f32.mrb[2].mxu0  ;;  %v7182_v36 = vpack.c.bf16 %v1192_v34, %v1192_v34  ;;  %v7184_v37 = vpop.f32.mrb[1].mxu1  ;;  %1774 = vmatprep.mubr.bf16.mxu0 %v6722_v27 }
 0x256   : > { %v1156_v32 = vpop.f32.mrb[3].mxu0  ;;  %v1248_v33 = vsel %vm1243_vm1, %v7176_v29, 0  ;;  %v1196_v39 = vpop.f32.mrb[2].mxu1 }
 0x257   : > { %5594 = vmatpush3.bf16.xpose.msra.mxu1 %v1248_v33  ;;  %v1197_v40 = vpop.f32.mrb[3].mxu1  ;;  %1357 = vrot.lane.b32.xlu1 %v7182_v36, %s6719_s15 }
 0x258   : > { %5599 = vmatprep.subr.bf16.mxu1 %v6717_v4  ;;  %v6003_v40 = vld [vmem:[#allocation7 + $0x14] ss:$8 sps:$4 sm:$0xff]  }
 0x25e   : > { %5596 = vmatmul.mubr.msk.bf16.vlgmr.msra.gmra.mrb[4].mxu1 %vm1243_vm1, %v7182_v36 }
 0x25f   : > { %5601 = vmatprep.mubr.msk.bf16.mxu1 %vm6718_vm0, %v6717_v4 }
 0x294   : > { %v1233_v53 = vpop.f32.mrb[4].mxu0 }
 0x295   : > { %v7195_v54 = vpop.f32.mrb[5].mxu0  ;;  %v7197_v55 = vpack.c.bf16 %v1233_v53, %v1233_v53 }
 0x296   : > { %v1237_v56 = vpop.f32.mrb[6].mxu0 }
 0x297   : > { %v1238_v57 = vpop.f32.mrb[7].mxu0  ;;  %v1308_v58 = vsel %vm1306_vm3, %v7197_v55, 0 }
 0x298   : > { %5600 = vmatpush3.bf16.msra.mxu1 %v1308_v58 }
 0x299   : > { %5605 = vmatprep.subr.bf16.mxu1 %v6717_v4 }
 0x2c9   : > { %v1358_v5 = vpop.permute.xlu1 %1357 }
 0x331   : > { %v1284_v48 = vpop.f32.mrb[4].mxu1 }
 0x332   : > { %v5597_v49 = vpop.f32.mrb[5].mxu1  ;;  %v1291_v50 = vsel %vm1290_vm2, %v1284_v48, -inf }
 0x333   : > { %1292 = vmax.xlane.f32.xlu0 %v1291_v50  ;;  %v1287_v51 = vpop.f32.mrb[6].mxu1 }
 0x334   : > { %v5598_v52 = vpop.f32.mrb[7].mxu1 }
 0x349   : > { %1360 = vrot.lane.b32.xlu0 %v7176_v29, %s6719_s15 }
 0x34d   : > { %1421 = vrot.lane.b32.xlu0 %v7197_v55, %s6719_s15 }
 0x3c0   : > { %v1293_v59 = vpop.xlane.xlu0 %1292 }
 0x3c1   : > { %v1294_v60 = vsub.f32 %v1284_v48, %v1293_v59 }
 0x3c3   : > { %v1295_v61 = vmul.f32 1.442695, %v1294_v60 }
 0x3c4   : > { %v1361_v63 = vpop.permute.xlu0 %1360 }
 0x3c5   : > { %6232 = vpow2.f32 %v1295_v61  ;;  %v1366_v1 = vsel %vm1243_vm1, %v1361_v63, 0 }
 0x3c8   : > { %v1422_v2 = vpop.permute.xlu0 %1421 }
 0x3c9   : > { %v1427_v3 = vsel %vm1306_vm3, %v1422_v2, 0 }
 0x3cf   : > { %v6233_v62 = vpop.eup %6232 }
 0x3d0   : > { %v1302_v0 = vpack.c.bf16 %v6233_v62, %v6233_v62  ;;  %v1297_v15 = vsel %vm1290_vm2, %v6233_v62, 0.0 }
 0x3d2   : > { %5602 = vmatmul.mubr.msk.bf16.vlgmr.msra.gmra.mrb[8].mxu1 %vm1290_vm2, %v1302_v0 }
 0x3d3   : > { %5606 = vmatpush3.bf16.xpose.msra.mxu1 %v1366_v1  ;;  %5607 = vmatprep.mubr.msk.bf16.mxu1 %vm6718_vm0, %v6717_v4 }
 0x3d4   : > { %5611 = vmatprep.subr.bf16.mxu1 %v6717_v4 }
 0x3da   : > { %5608 = vmatmul.mubr.msk.bf16.vlgmr.msra.gmra.mrb[12].mxu1 %vm1243_vm1, %v1358_v5 }
 0x3db   : > { %5612 = vmatpush3.bf16.msra.mxu1 %v1427_v3  ;;  %5613 = vmatprep.mubr.msk.bf16.mxu1 %vm6718_vm0, %v6717_v4 }
 0x3dc   : > { %1498 = vmatprep.subr.bf16.mxu1 %v5994_v23 }
 0x4a5   : > { %v1344_v6 = vpop.f32.mrb[8].mxu1 }
 0x4a6   : > { %v5603_v7 = vpop.f32.mrb[9].mxu1 }
 0x4a7   : > { %v1347_v8 = vpop.f32.mrb[10].mxu1 }
 0x4a8   : > { %v5604_v9 = vpop.f32.mrb[11].mxu1 }
 0x4ad   : > { %v1402_v10 = vpop.f32.mrb[12].mxu1 }
 0x4ae   : > { %v5609_v11 = vpop.f32.mrb[13].mxu1  ;;  %v1408_v12 = vsel %vm1290_vm2, %v1402_v10, -inf }
 0x4af   : > { %1409 = vmax.xlane.f32.xlu1 %v1408_v12  ;;  %v1405_v13 = vpop.f32.mrb[14].mxu1 }
 0x4b0   : > { %v5610_v14 = vpop.f32.mrb[15].mxu1  ;;  %v6004_v13 = vld [vmem:[#allocation7 + $0x40] ss:$8 sps:$4 sm:$0xff]  }
 0x4b1   : > { %v6006_v14 = vld [vmem:[#allocation7 + $0x44] ss:$8 sps:$4 sm:$0xff]  }
 0x4b2   : > { %1742 = vmatprep.subr.bf16.mxu0 %v6006_v14  ;;  %v6018_v14 = vld [vmem:[#allocation7 + $0x84] ss:$8 sps:$4 sm:$0xff]  }
 0x4b3   : > { %1298 = vadd.xlane.f32.xlu1 %v1297_v15  ;;  %1743 = vmatpush1.bf16.msra.mxu0 %v6004_v13  ;;  %v6009_v15 = vld [vmem:[#allocation7 + $0x54] ss:$8 sps:$4 sm:$0xff]   ;;  %v6016_v13 = vld [vmem:[#allocation7 + $0x80] ss:$8 sps:$4 sm:$0xff]  }
 0x4b4   : > { %1744 = vmatprep.subr.bf16.mxu0 %v6009_v15 }
 0x4c4   : > { %1605 = vrot.lane.b32.xlu1 %v7176_v29, %s6720_s12 }
 0x53c   : > { %v1410_v16 = vpop.xlane.xlu1 %1409 }
 0x53d   : > { %v1411_v17 = vsub.f32 %v1402_v10, %v1410_v16  ;;  %v6007_v16 = vld [vmem:[#allocation7 + $0x50] ss:$8 sps:$4 sm:$0xff]  }
 0x53e   : > { %1745 = vmatpush1.bf16.msra.mxu0 %v6007_v16 }
 0x53f   : > { %v1412_v18 = vmul.f32 1.442695, %v1411_v17  ;;  %5635 = vmatprep.subr.bf16.mxu0 %v6717_v4 }
 0x540   : > { %v1299_v31 = vpop.xlane.xlu1 %1298 }
 0x541   : > { %6234 = vpow2.f32 %v1412_v18 }
 0x544   : > { %v1606_v45 = vpop.permute.xlu1 %1605 }
 0x545   : > { %v1611_v47 = vsel %vm1243_vm1, %v1606_v45, 0 }
 0x54b   : > { %v6235_v19 = vpop.eup %6234 }
 0x54c   : > { %v1414_v20 = vsel %vm1290_vm2, %v6235_v19, 0.0  ;;  %v1419_v21 = vpack.c.bf16 %v6235_v19, %v6235_v19 }
 0x54d   : > { %1415 = vadd.xlane.f32.xlu0 %v1414_v20 }
 0x54e   : > { %5614 = vmatmul.mubr.msk.bf16.vlgmr.msra.gmra.mrb[16].mxu1 %vm1290_vm2, %v1419_v21 }
 0x54f   : > { %1499 = vmatpush1.bf16.msra.mxu1 %v5992_v22  ;;  %1530 = vmatprep.mubr.bf16.mxu1 %v6722_v27 }
 0x550   : > { %1500 = vmatprep.subr.bf16.mxu1 %v5997_v24 }
 0x553   : > { %1501 = vmatpush1.bf16.msra.mxu1 %v5995_v25 }
 0x554   : > { %1562 = vmatprep.subr.bf16.mxu1 %v6000_v26 }
 0x563   : > { %1603 = vrot.lane.b32.xlu0 %v7182_v36, %s6720_s12 }
 0x567   : > { %1665 = vrot.lane.b32.xlu0 %v7197_v55, %s6720_s12 }
 0x56b   : > { %1787 = vrot.lane.b32.xlu0 %v7176_v29, %s6721_s27 }
 0x56f   : > { %1785 = vrot.lane.b32.xlu0 %v7182_v36, %s6721_s27  ;;  %v5998_v36 = vld [vmem:[#allocation7] ss:$8 sps:$4 sm:$0xff]  }
 0x5da   : > { %v1416_v28 = vpop.xlane.xlu0 %1415 }
 0x5db   : > { %6236 = vrcp.f32 %v1416_v28 }
 0x5dc   : > { %6238 = vrcp.f32 %v1299_v31 }
 0x5de   : > { %v1604_v46 = vpop.permute.xlu0 %1603 }
 0x5e2   : > { %v1666_v48 = vpop.permute.xlu0 %1665 }
 0x5e3   : > { %v1671_v49 = vsel %vm1306_vm3, %v1666_v48, 0 }
 0x5e5   : > { %v6237_v29 = vpop.eup %6236 }
 0x5e6   : > { %v6239_v41 = vpop.eup %6238  ;;  %v1788_v8 = vpop.permute.xlu0 %1787 }
 0x5e7   : > { %v1350_v43 = vmul.f32 %v6239_v41, %v1344_v6  ;;  %v1793_v11 = vsel %vm1243_vm1, %v1788_v8, 0 }
 0x5e9   : > { %v1351_v44 = vpack.c.bf16 %v1350_v43, %v1350_v43  ;;  %v6012_v43 = vld [vmem:[#allocation7 + $0x64] ss:$8 sps:$4 sm:$0xff]  }
 0x5ea   : > { %v1786_v12 = vpop.permute.xlu0 %1785 }
 0x621   : > { %v1463_v32 = vpop.f32.mrb[16].mxu1 }
 0x622   : > { %v1469_v33 = vmul.f32 %v6237_v29, %v1463_v32  ;;  %v5615_v34 = vpop.f32.mrb[17].mxu1 }
 0x623   : > { %v1466_v35 = vpop.f32.mrb[18].mxu1 }
 0x624   : > { %v1470_v38 = vpack.c.bf16 %v1469_v33, %v1469_v33  ;;  %v5616_v39 = vpop.f32.mrb[19].mxu1 }
 0x626   : > { %5250 = vmatmul.mubr.msk.bf16.vlgmr.msra.gmra.mrb[20].mxu1 %vm1243_vm1, %v1470_v38  ;;  %v7267_v38 = vpack.c.bf16 %v7178_v30, %v7178_v30  ;;  %v6010_v30 = vld [vmem:[#allocation7 + $0x60] ss:$8 sps:$4 sm:$0xff]  }
 0x627   : > { %1563 = vmatpush1.bf16.msra.mxu1 %v5998_v36  ;;  %1594 = vmatprep.mubr.bf16.mxu1 %v6722_v27 }
 0x628   : > { %1564 = vmatprep.subr.bf16.mxu1 %v6003_v40 }
 0x62b   : > { %1565 = vmatpush1.bf16.msra.mxu1 %v6001_v42  ;;  %v7277_v42 = vpack.c.bf16 %v7184_v37, %v7184_v37  ;;  %v6013_v37 = vld [vmem:[#allocation7 + $0x70] ss:$8 sps:$4 sm:$0xff]  }
 0x62c   : > { %5617 = vmatprep.subr.bf16.mxu1 %v6717_v4 }
 0x62e   : > { %5255 = vmatmul.mubr.msk.bf16.vlgmr.msra.gmra.mrb[24].mxu1 %vm1243_vm1, %v1351_v44 }
 0x62f   : > { %5619 = vmatprep.mubr.msk.bf16.mxu1 %vm6718_vm0, %v6717_v4 }
 0x634   : > { %5618 = vmatpush3.bf16.xpose.msra.mxu1 %v1611_v47 }
 0x635   : > { %5623 = vmatprep.subr.bf16.mxu1 %v6717_v4 }
 0x63b   : > { %5620 = vmatmul.mubr.msk.bf16.vlgmr.msra.gmra.mrb[28].mxu1 %vm1243_vm1, %v1604_v46 }
 0x63c   : > { %5624 = vmatpush3.bf16.msra.mxu1 %v1671_v49  ;;  %5625 = vmatprep.mubr.msk.bf16.mxu1 %vm6718_vm0, %v6717_v4 }
 0x63d   : > { %5629 = vmatprep.subr.bf16.mxu1 %v6717_v4 }
 0x6f9   : > { %v1532_v50 = vpop.f32.mrb[20].mxu1 }
 0x6fa   : > { %v1534_v51 = vpop.f32.mrb[21].mxu1 }
 0x6fb   : > { %v1536_v52 = vpop.f32.mrb[22].mxu1 }
 0x6fc   : > { %v1537_v53 = vpop.f32.mrb[23].mxu1 }
 0x701   : > { %v1596_v56 = vpop.f32.mrb[24].mxu1 }
 0x702   : > { %v7244_v57 = vadd.f32 %v1596_v56, %v1532_v50  ;;  %v1598_v58 = vpop.f32.mrb[25].mxu1  ;;  %v6015_v50 = vld [vmem:[#allocation7 + $0x74] ss:$8 sps:$4 sm:$0xff]   ;;  %v7287_v56 = vpack.c.bf16 %v7195_v54, %v7195_v54 }
 0x703   : > { %v7246_v59 = vadd.f32 %v1598_v58, %v1534_v51  ;;  %v1600_v60 = vpop.f32.mrb[26].mxu1 }
 0x704   : > { %v1601_v61 = vpop.f32.mrb[27].mxu1 }
 0x70e   : > { %v1647_v62 = vpop.f32.mrb[28].mxu1 }
 0x70f   : > { %v5621_v63 = vpop.f32.mrb[29].mxu1  ;;  %v1653_v0 = vsel %vm1290_vm2, %v1647_v62, -inf }
 0x710   : > { %1654 = vmax.xlane.f32.xlu1 %v1653_v0  ;;  %v1650_v1 = vpop.f32.mrb[30].mxu1 }
 0x711   : > { %v5622_v2 = vpop.f32.mrb[31].mxu1 }
 0x79d   : > { %v1655_v3 = vpop.xlane.xlu1 %1654 }
 0x79e   : > { %v1656_v5 = vsub.f32 %v1647_v62, %v1655_v3  ;;  %v2032_v62 = vsel %vm1306_vm3, %v7287_v56, 0 }
 0x7a0   : > { %v1657_v6 = vmul.f32 1.442695, %v1656_v5 }
 0x7a2   : > { %6240 = vpow2.f32 %v1657_v6 }
 0x7ac   : > { %v6241_v7 = vpop.eup %6240 }
 0x7ad   : > { %v1659_v9 = vsel %vm1290_vm2, %v6241_v7, 0.0  ;;  %v1664_v10 = vpack.c.bf16 %v6241_v7, %v6241_v7 }
 0x7ae   : > { %1660 = vadd.xlane.f32.xlu0 %v1659_v9 }
 0x7af   : > { %5626 = vmatmul.mubr.msk.bf16.vlgmr.msra.gmra.mrb[32].mxu1 %vm1290_vm2, %v1664_v10 }
 0x7b0   : > { %5630 = vmatpush3.bf16.xpose.msra.mxu1 %v1793_v11  ;;  %5631 = vmatprep.mubr.msk.bf16.mxu1 %vm6718_vm0, %v6717_v4 }
 0x7b1   : > { %1924 = vmatprep.subr.bf16.mxu1 %v6012_v43 }
 0x7b7   : > { %5632 = vmatmul.mubr.msk.bf16.vlgmr.msra.gmra.mrb[36].mxu1 %vm1243_vm1, %v1786_v12 }
 0x7b8   : > { %1956 = vmatprep.mubr.bf16.mxu1 %v6722_v27  ;;  %1925 = vmatpush1.bf16.msra.mxu1 %v6010_v30 }
 0x7b9   : > { %1926 = vmatprep.subr.bf16.mxu1 %v6015_v50  ;;  %v6022_v50 = vld [vmem:[#allocation7 + $0xa0] ss:$8 sps:$4 sm:$0xff]  }
 0x7bc   : > { %1927 = vmatpush1.bf16.msra.mxu1 %v6013_v37  ;;  %v6024_v37 = vld [vmem:[#allocation7 + $0xa4] ss:$8 sps:$4 sm:$0xff]  }
 0x7bd   : > { %5647 = vmatprep.subr.bf16.mxu1 %v6717_v4 }
 0x83b   : > { %v1661_v17 = vpop.xlane.xlu0 %1660 }
 0x83c   : > { %6242 = vrcp.f32 %v1661_v17 }
 0x846   : > { %v6243_v18 = vpop.eup %6242 }
 0x882   : > { %v1707_v19 = vpop.f32.mrb[32].mxu1 }
 0x883   : > { %v1713_v20 = vmul.f32 %v6243_v18, %v1707_v19  ;;  %v5627_v21 = vpop.f32.mrb[33].mxu1 }
 0x884   : > { %v1710_v22 = vpop.f32.mrb[34].mxu1  ;;  %v6021_v21 = vld [vmem:[#allocation7 + $0x94] ss:$8 sps:$4 sm:$0xff]  }
 0x885   : > { %v1714_v23 = vpack.c.bf16 %v1713_v20, %v1713_v20  ;;  %v5628_v24 = vpop.f32.mrb[35].mxu1  ;;  %v6019_v22 = vld [vmem:[#allocation7 + $0x90] ss:$8 sps:$4 sm:$0xff]  }
 0x887   : > { %5262 = vmatmul.mubr.msk.bf16.vlgmr.msra.gmra.mrb[8].mxu0 %vm1243_vm1, %v1714_v23 }
 0x888   : > { %5637 = vmatprep.mubr.msk.bf16.mxu0 %vm6718_vm0, %v6717_v4 }
 0x88a   : > { %v1829_v25 = vpop.f32.mrb[36].mxu1 }
 0x88b   : > { %v5633_v26 = vpop.f32.mrb[37].mxu1  ;;  %v1835_v28 = vsel %vm1290_vm2, %v1829_v25, -inf }
 0x88c   : > { %1836 = vmax.xlane.f32.xlu1 %v1835_v28  ;;  %v1832_v31 = vpop.f32.mrb[38].mxu1 }
 0x88d   : > { %v5634_v29 = vpop.f32.mrb[39].mxu1 }
 0x89d   : > { %1847 = vrot.lane.b32.xlu1 %v7197_v55, %s6721_s27  ;;  %v1974_v55 = vsel %vm1243_vm1, %v7267_v38, 0 }
 0x919   : > { %v1837_v32 = vpop.xlane.xlu1 %1836 }
 0x91a   : > { %v1838_v33 = vsub.f32 %v1829_v25, %v1837_v32 }
 0x91c   : > { %v1839_v34 = vmul.f32 1.442695, %v1838_v33 }
 0x91d   : > { %v1848_v35 = vpop.permute.xlu1 %1847 }
 0x91e   : > { %6244 = vpow2.f32 %v1839_v34  ;;  %v1853_v36 = vsel %vm1306_vm3, %v1848_v35, 0 }
 0x91f   : > { %5636 = vmatpush3.bf16.msra.mxu0 %v1853_v36 }
 0x920   : > { %5641 = vmatprep.subr.bf16.mxu0 %v6717_v4 }
 0x928   : > { %v6245_v39 = vpop.eup %6244 }
 0x929   : > { %v1841_v40 = vsel %vm1290_vm2, %v6245_v39, 0.0  ;;  %v1846_v41 = vpack.c.bf16 %v6245_v39, %v6245_v39 }
 0x92a   : > { %1842 = vadd.xlane.f32.xlu1 %v1841_v40 }
 0x92b   : > { %5638 = vmatmul.mubr.msk.bf16.vlgmr.msra.gmra.mrb[12].mxu0 %vm1290_vm2, %v1846_v41 }
 0x92c   : > { %5642 = vmatpush3.bf16.xpose.msra.mxu0 %v1974_v55  ;;  %5643 = vmatprep.mubr.msk.bf16.mxu0 %vm6718_vm0, %v6717_v4 }
 0x92d   : > { %2103 = vmatprep.subr.bf16.mxu0 %v6018_v14 }
 0x933   : > { %5644 = vmatmul.mubr.msk.bf16.vlgmr.msra.gmra.mrb[16].mxu0 %vm1243_vm1, %v7277_v42 }
 0x934   : > { %2135 = vmatprep.mubr.bf16.mxu0 %v6722_v27  ;;  %2104 = vmatpush1.bf16.msra.mxu0 %v6016_v13 }
 0x935   : > { %2105 = vmatprep.subr.bf16.mxu0 %v6021_v21  ;;  %v6030_v21 = vld [vmem:[#allocation7 + $0xc4] ss:$8 sps:$4 sm:$0xff]  }
 0x938   : > { %2106 = vmatpush1.bf16.msra.mxu0 %v6019_v22 }
 0x939   : > { %5659 = vmatprep.subr.bf16.mxu0 %v6717_v4 }
 0x95a   : > { %v1776_v44 = vpop.f32.mrb[8].mxu0 }
 0x95b   : > { %v1783_v45 = vadd.f32 %v1776_v44, %v7244_v57  ;;  %v1778_v46 = vpop.f32.mrb[9].mxu0 }
 0x95c   : > { %v1784_v47 = vadd.f32 %v1778_v46, %v7246_v59  ;;  %v1780_v48 = vpop.f32.mrb[10].mxu0 }
 0x95d   : > { %v1781_v49 = vpop.f32.mrb[11].mxu0 }
 0x9b7   : > { %v1843_v51 = vpop.xlane.xlu1 %1842 }
 0x9b8   : > { %6246 = vrcp.f32 %v1843_v51 }
 0x9c2   : > { %v6247_v52 = vpop.eup %6246 }
 0x9fe   : > { %v1889_v53 = vpop.f32.mrb[12].mxu0 }
 0x9ff   : > { %v1895_v57 = vmul.f32 %v6247_v52, %v1889_v53  ;;  %v5639_v58 = vpop.f32.mrb[13].mxu0 }
 0xa00   : > { %v1892_v60 = vpop.f32.mrb[14].mxu0 }
 0xa01   : > { %v1896_v59 = vpack.c.bf16 %v1895_v57, %v1895_v57  ;;  %v5640_v61 = vpop.f32.mrb[15].mxu0 }
 0xa02   : > { %v6025_v61 = vld [vmem:[#allocation7 + $0xb0] ss:$8 sps:$4 sm:$0xff]  }
 0xa03   : > { %5269 = vmatmul.mubr.msk.bf16.vlgmr.msra.gmra.mrb[40].mxu1 %vm1243_vm1, %v1896_v59  ;;  %v6027_v59 = vld [vmem:[#allocation7 + $0xb4] ss:$8 sps:$4 sm:$0xff]  }
 0xa04   : > { %5648 = vmatpush3.bf16.msra.mxu1 %v2032_v62  ;;  %5649 = vmatprep.mubr.msk.bf16.mxu1 %vm6718_vm0, %v6717_v4 }
 0xa05   : > { %5653 = vmatprep.subr.bf16.mxu1 %v6717_v4 }
 0xa06   : > { %v2010_v63 = vpop.f32.mrb[16].mxu0 }
 0xa07   : > { %v5645_v0 = vpop.f32.mrb[17].mxu0  ;;  %v2016_v54 = vsel %vm1290_vm2, %v2010_v63, -inf }
 0xa08   : > { %2017 = vmax.xlane.f32.xlu0 %v2016_v54  ;;  %v2013_v1 = vpop.f32.mrb[18].mxu0 }
 0xa09   : > { %v5646_v2 = vpop.f32.mrb[19].mxu0 }
 0xa1e   : > { %2150 = vrot.lane.b32.xlu0 %v7267_v38, %s6719_s15 }
 0xa22   : > { %2147 = vrot.lane.b32.xlu0 %v7277_v42, %s6719_s15 }
 0xa95   : > { %v2018_v3 = vpop.xlane.xlu0 %2017 }
 0xa96   : > { %v2019_v5 = vsub.f32 %v2010_v63, %v2018_v3 }
 0xa98   : > { %v2020_v6 = vmul.f32 1.442695, %v2019_v5 }
 0xa99   : > { %v2151_v8 = vpop.permute.xlu0 %2150 }
 0xa9a   : > { %6248 = vpow2.f32 %v2020_v6  ;;  %v2156_v11 = vsel %vm1243_vm1, %v2151_v8, 0 }
 0xa9d   : > { %v2148_v12 = vpop.permute.xlu0 %2147 }
 0xaa4   : > { %v6249_v7 = vpop.eup %6248 }
 0xaa5   : > { %v2022_v9 = vsel %vm1290_vm2, %v6249_v7, 0.0  ;;  %v2027_v10 = vpack.c.bf16 %v6249_v7, %v6249_v7 }
 0xaa6   : > { %2023 = vadd.xlane.f32.xlu1 %v2022_v9 }
 0xaa7   : > { %5650 = vmatmul.mubr.msk.bf16.vlgmr.msra.gmra.mrb[44].mxu1 %vm1290_vm2, %v2027_v10 }
 0xaa8   : > { %5654 = vmatpush3.bf16.xpose.msra.mxu1 %v2156_v11  ;;  %5655 = vmatprep.mubr.msk.bf16.mxu1 %vm6718_vm0, %v6717_v4 }
 0xaa9   : > { %2288 = vmatprep.subr.bf16.mxu1 %v6024_v37 }
 0xaaf   : > { %5656 = vmatmul.mubr.msk.bf16.vlgmr.msra.gmra.mrb[48].mxu1 %vm1243_vm1, %v2148_v12 }
 0xab0   : > { %2320 = vmatprep.mubr.bf16.mxu1 %v6722_v27  ;;  %2289 = vmatpush1.bf16.msra.mxu1 %v6022_v50 }
 0xab1   : > { %2290 = vmatprep.subr.bf16.mxu1 %v6027_v59 }
 0xab4   : > { %2291 = vmatpush1.bf16.msra.mxu1 %v6025_v61  ;;  %v6039_v61 = vld [vmem:[#allocation7 + $0xf4] ss:$8 sps:$4 sm:$0xff]  }
 0xab5   : > { %5671 = vmatprep.subr.bf16.mxu1 %v6717_v4 }
 0xab7   : > { %2211 = vrot.lane.b32.xlu1 %v7287_v56, %s6719_s15  ;;  %s6616_s15 = sshll.u32 %s6723_s24, 4  ;;  %s6617_s15 = int_to_ptr.vmem [resolvable:$false] %s6616_s15 }
 0xab8   : > { %p6619_p7 = scmp.lt.s32.totalorder %s7540_s25, %s6617_s15 }
 0xabb   : > { %2333 = vrot.lane.b32.xlu1 %v7267_v38, %s6720_s12 }
 0xabf   : > { %2331 = vrot.lane.b32.xlu1 %v7277_v42, %s6720_s12 }
 0xad6   : > { %v1958_v15 = vpop.f32.mrb[40].mxu1 }
 0xad7   : > { %v1965_v16 = vadd.f32 %v1958_v15, %v1783_v45  ;;  %v1960_v17 = vpop.f32.mrb[41].mxu1 }
 0xad8   : > { %v1966_v18 = vadd.f32 %v1960_v17, %v1784_v47  ;;  %v1962_v19 = vpop.f32.mrb[42].mxu1 }
 0xad9   : > { %v1963_v20 = vpop.f32.mrb[43].mxu1 }
 0xb33   : > { %v2024_v23 = vpop.xlane.xlu1 %2023 }
 0xb34   : > { %6250 = vrcp.f32 %v2024_v23 }
 0xb37   : > { %v2212_v31 = vpop.permute.xlu1 %2211 }
 0xb38   : > { %v2217_v34 = vsel %vm1306_vm3, %v2212_v31, 0  ;;  %v6033_v31 = vld [vmem:[#allocation7 + $0xd4] ss:$8 sps:$4 sm:$0xff]  }
 0xb3b   : > { %v2334_v45 = vpop.permute.xlu1 %2333 }
 0xb3c   : > { %v2339_v48 = vsel %vm1243_vm1, %v2334_v45, 0 }
 0xb3e   : > { %v6251_v24 = vpop.eup %6250 }
 0xb3f   : > { %v2332_v49 = vpop.permute.xlu1 %2331 }
 0xb7a   : > { %v2068_v25 = vpop.f32.mrb[44].mxu1 }
 0xb7b   : > { %v2074_v26 = vmul.f32 %v6251_v24, %v2068_v25  ;;  %v5651_v28 = vpop.f32.mrb[45].mxu1 }
 0xb7c   : > { %v2071_v29 = vpop.f32.mrb[46].mxu1 }
 0xb7d   : > { %v2075_v32 = vpack.c.bf16 %v2074_v26, %v2074_v26  ;;  %v5652_v33 = vpop.f32.mrb[47].mxu1  ;;  %v6031_v29 = vld [vmem:[#allocation7 + $0xd0] ss:$8 sps:$4 sm:$0xff]  }
 0xb7f   : > { %5276 = vmatmul.mubr.msk.bf16.vlgmr.msra.gmra.mrb[20].mxu0 %vm1243_vm1, %v2075_v32 }
 0xb80   : > { %5660 = vmatpush3.bf16.msra.mxu0 %v2217_v34  ;;  %5661 = vmatprep.mubr.msk.bf16.mxu0 %vm6718_vm0, %v6717_v4 }
 0xb81   : > { %5665 = vmatprep.subr.bf16.mxu0 %v6717_v4 }
 0xb82   : > { %v2192_v35 = vpop.f32.mrb[48].mxu1 }
 0xb83   : > { %v5657_v36 = vpop.f32.mrb[49].mxu1  ;;  %v2198_v39 = vsel %vm1290_vm2, %v2192_v35, -inf }
 0xb84   : > { %2199 = vmax.xlane.f32.xlu0 %v2198_v39  ;;  %v2195_v40 = vpop.f32.mrb[50].mxu1 }
 0xb85   : > { %v5658_v41 = vpop.f32.mrb[51].mxu1 }
 0xb9a   : > { %2393 = vrot.lane.b32.xlu0 %v7287_v56, %s6720_s12  ;;  %s6618_s12 = scalar_lea.vmem %s6617_s15, 512 }
 0xc11   : > { %v2200_v55 = vpop.xlane.xlu0 %2199 }
 0xc12   : > { %v2201_v30 = vsub.f32 %v2192_v35, %v2200_v55 }
 0xc14   : > { %v2202_v43 = vmul.f32 1.442695, %v2201_v30 }
 0xc15   : > { %v2394_v2 = vpop.permute.xlu0 %2393 }
 0xc16   : > { %6252 = vpow2.f32 %v2202_v43  ;;  %v2399_v7 = vsel %vm1306_vm3, %v2394_v2, 0 }
 0xc20   : > { %v6253_v44 = vpop.eup %6252 }
 0xc21   : > { %v2204_v46 = vsel %vm1290_vm2, %v6253_v44, 0.0  ;;  %v2209_v47 = vpack.c.bf16 %v6253_v44, %v6253_v44 }
 0xc22   : > { %2205 = vadd.xlane.f32.xlu1 %v2204_v46 }
 0xc23   : > { %5662 = vmatmul.mubr.msk.bf16.vlgmr.msra.gmra.mrb[24].mxu0 %vm1290_vm2, %v2209_v47 }
 0xc24   : > { %5666 = vmatpush3.bf16.xpose.msra.mxu0 %v2339_v48  ;;  %5667 = vmatprep.mubr.msk.bf16.mxu0 %vm6718_vm0, %v6717_v4 }
 0xc25   : > { %2470 = vmatprep.subr.bf16.mxu0 %v6030_v21  ;;  %v2762_v21 = vld [vmem:[#allocation8 + $0x88] sm:$0xff] }
 0xc2b   : > { %5668 = vmatmul.mubr.msk.bf16.vlgmr.msra.gmra.mrb[28].mxu0 %vm1243_vm1, %v2332_v49 }
 0xc2c   : > { %2502 = vmatprep.mubr.bf16.mxu0 %v6722_v27 }
 0xc52   : > { %v2137_v51 = vpop.f32.mrb[20].mxu0 }
 0xc53   : > { %v2144_v52 = vadd.f32 %v2137_v51, %v1965_v16  ;;  %v2139_v53 = vpop.f32.mrb[21].mxu0  ;;  %v6034_v51 = vld [vmem:[#allocation7 + $0xe0] ss:$8 sps:$4 sm:$0xff]  }
 0xc54   : > { %v2145_v57 = vadd.f32 %v2139_v53, %v1966_v18  ;;  %v2141_v58 = vpop.f32.mrb[22].mxu0 }
 0xc55   : > { %v2142_v60 = vpop.f32.mrb[23].mxu0 }
 0xcaf   : > { %v2206_v62 = vpop.xlane.xlu1 %2205 }
 0xcb0   : > { %6254 = vrcp.f32 %v2206_v62  ;;  %v6037_v62 = vld [vmem:[#allocation7 + $0xf0] ss:$8 sps:$4 sm:$0xff]  }
 0xcba   : > { %v6255_v63 = vpop.eup %6254 }
 0xcf6   : > { %v2253_v0 = vpop.f32.mrb[24].mxu0 }
 0xcf7   : > { %v2259_v54 = vmul.f32 %v6255_v63, %v2253_v0  ;;  %v5663_v1 = vpop.f32.mrb[25].mxu0 }
 0xcf8   : > { %v2256_v3 = vpop.f32.mrb[26].mxu0 }
 0xcf9   : > { %v2260_v5 = vpack.c.bf16 %v2259_v54, %v2259_v54  ;;  %v5664_v6 = vpop.f32.mrb[27].mxu0 }
 0xcfb   : > { %5283 = vmatmul.mubr.msk.bf16.vlgmr.msra.gmra.mrb[52].mxu1 %vm1243_vm1, %v2260_v5 }
 0xcfc   : > { %5672 = vmatpush3.bf16.msra.mxu1 %v2399_v7  ;;  %5673 = vmatprep.mubr.msk.bf16.mxu1 %vm6718_vm0, %v6717_v4  ;;  %v2745_v7 = vld [vmem:[#allocation8] sm:$0xff] }
 0xcfd   : > { %5677 = vmatprep.subr.bf16.mxu1 %v6717_v4 }
 0xcfe   : > { %v2375_v8 = vpop.f32.mrb[28].mxu0 }
 0xcff   : > { %v5669_v9 = vpop.f32.mrb[29].mxu0  ;;  %v2381_v10 = vsel %vm1290_vm2, %v2375_v8, -inf }
 0xd00   : > { %2382 = vmax.xlane.f32.xlu0 %v2381_v10  ;;  %v2378_v11 = vpop.f32.mrb[30].mxu0  ;;  %v2746_v9 = vld [vmem:[#allocation8 + $0x8] sm:$0xff] }
 0xd01   : > { %v5670_v12 = vpop.f32.mrb[31].mxu0 }
 0xd02   : > { %v2750_v12 = vld [vmem:[#allocation8 + $0x28] sm:$0xff] }
 0xd16   : > { %2515 = vrot.lane.b32.xlu0 %v7267_v38, %s6721_s27 }
 0xd1a   : > { %2513 = vrot.lane.b32.xlu0 %v7277_v42, %s6721_s27  ;;  %v6028_v42 = vld [vmem:[#allocation7 + $0xc0] ss:$8 sps:$4 sm:$0xff]  }
 0xd1b   : > { %2471 = vmatpush1.bf16.msra.mxu0 %v6028_v42  ;;  %v2765_v42 = vld [vmem:[#allocation8 + $0xa0] sm:$0xff] }
 0xd1c   : > { %2472 = vmatprep.subr.bf16.mxu0 %v6033_v31  ;;  %v2773_v31 = vld [vmem:[#allocation8 + $0xe0] sm:$0xff] }
 0xd1f   : > { %2473 = vmatpush1.bf16.msra.mxu0 %v6031_v29  ;;  %v2770_v29 = vld [vmem:[#allocation8 + $0xc8] sm:$0xff] }
 0xd20   : > { %5683 = vmatprep.subr.bf16.mxu0 %v6717_v4 }
 0xd8d   : > { %v2383_v13 = vpop.xlane.xlu0 %2382 }
 0xd8e   : > { %v2384_v14 = vsub.f32 %v2375_v8, %v2383_v13  ;;  %v2749_v8 = vld [vmem:[#allocation8 + $0x20] sm:$0xff] }
 0xd8f   : > { %v5298_v10 = vcombine.low %v2745_v7, %v2749_v8  ;;  %v5299_v11 = vcombine.high %v2745_v7, %v2749_v8  ;;  %v2753_v13 = vld [vmem:[#allocation8 + $0x40] sm:$0xff] }
 0xd90   : > { %v2385_v15 = vmul.f32 1.442695, %v2384_v14  ;;  %v2757_v14 = vld [vmem:[#allocation8 + $0x60] sm:$0xff] }
 0xd91   : > { %v2516_v17 = vpop.permute.xlu0 %2515  ;;  %v2809_v7 = vld [vmem:[#allocation8 + $0x200] sm:$0xff] }
 0xd92   : > { %6256 = vpow2.f32 %v2385_v15  ;;  %v2521_v20 = vsel %vm1243_vm1, %v2516_v17, 0  ;;  %v5300_v15 = vcombine.low %v2746_v9, %v2750_v12  ;;  %v5307_v17 = vcombine.high %v2753_v13, %v2757_v14  ;;  %v2813_v8 = vld [vmem:[#allocation8 + $0x220] sm:$0xff] }
 0xd95   : > { %v2514_v38 = vpop.permute.xlu0 %2513 }
 0xd9c   : > { %v6257_v16 = vpop.eup %6256 }
 0xd9d   : > { %v2387_v18 = vsel %vm1290_vm2, %v6257_v16, 0.0  ;;  %v2392_v19 = vpack.c.bf16 %v6257_v16, %v6257_v16  ;;  %v5301_v16 = vcombine.high %v2746_v9, %v2750_v12  ;;  %v2810_v9 = vld [vmem:[#allocation8 + $0x208] sm:$0xff] }
 0xd9e   : > { %2388 = vadd.xlane.f32.xlu1 %v2387_v18  ;;  %v2754_v18 = vld [vmem:[#allocation8 + $0x48] sm:$0xff] }
 0xd9f   : > { %5674 = vmatmul.mubr.msk.bf16.vlgmr.msra.gmra.mrb[56].mxu1 %vm1290_vm2, %v2392_v19  ;;  %v2758_v19 = vld [vmem:[#allocation8 + $0x68] sm:$0xff] }
 0xda0   : > { %5678 = vmatpush3.bf16.xpose.msra.mxu1 %v2521_v20  ;;  %5679 = vmatprep.mubr.msk.bf16.mxu1 %vm6718_vm0, %v6717_v4  ;;  %v2761_v20 = vld [vmem:[#allocation8 + $0x80] sm:$0xff] }
 0xda7   : > { %5680 = vmatmul.mubr.msk.bf16.vlgmr.msra.gmra.mrb[60].mxu1 %vm1243_vm1, %v2514_v38  ;;  %v5309_v38 = vcombine.high %v2754_v18, %v2758_v19 }
 0xda8   : > { %2684 = vmatprep.mubr.bf16.mxu1 %v6722_v27 }
 0xdaf   : > { %2575 = vrot.lane.b32.xlu1 %v7287_v56, %s6721_s27 }
 0xdce   : > { %v2322_v22 = vpop.f32.mrb[52].mxu1 }
 0xdcf   : > { %v2329_v23 = vadd.f32 %v2322_v22, %v2144_v52  ;;  %v2324_v24 = vpop.f32.mrb[53].mxu1  ;;  %v2766_v22 = vld [vmem:[#allocation8 + $0xa8] sm:$0xff] }
 0xdd0   : > { %v2330_v25 = vadd.f32 %v2324_v24, %v2145_v57  ;;  %v2326_v26 = vpop.f32.mrb[54].mxu1  ;;  %v5308_v24 = vcombine.low %v2754_v18, %v2758_v19 }
 0xdd1   : > { %v2327_v28 = vpop.f32.mrb[55].mxu1  ;;  %v5317_v26 = vcombine.high %v2762_v21, %v2766_v22 }
 0xdd2   : > { %v2769_v28 = vld [vmem:[#allocation8 + $0xc0] sm:$0xff] }
 0xe2b   : > { %v2389_v27 = vpop.xlane.xlu1 %2388 }
 0xe2c   : > { %6258 = vrcp.f32 %v2389_v27  ;;  %v2774_v27 = vld [vmem:[#allocation8 + $0xe8] sm:$0xff] }
 0xe2f   : > { %v2576_v35 = vpop.permute.xlu1 %2575 }
 0xe30   : > { %v2581_v41 = vsel %vm1306_vm3, %v2576_v35, 0  ;;  %v2777_v35 = vld [vmem:[#allocation8 + $0x100] sm:$0xff] }
 0xe36   : > { %v6259_v32 = vpop.eup %6258 }
 0xe72   : > { %v2435_v56 = vpop.f32.mrb[56].mxu1 }
 0xe73   : > { %v2441_v33 = vmul.f32 %v6259_v32, %v2435_v56  ;;  %v5675_v34 = vpop.f32.mrb[57].mxu1  ;;  %v5314_v32 = vcombine.low %v2761_v20, %v2765_v42  ;;  %v5316_v56 = vcombine.low %v2762_v21, %v2766_v22 }
 0xe74   : > { %v2438_v36 = vpop.f32.mrb[58].mxu1  ;;  %v5325_v34 = vcombine.high %v2770_v29, %v2774_v27 }
 0xe75   : > { %v2442_v39 = vpack.c.bf16 %v2441_v33, %v2441_v33  ;;  %v5676_v40 = vpop.f32.mrb[59].mxu1  ;;  %v5323_v33 = vcombine.high %v2769_v28, %v2773_v31  ;;  %v2781_v36 = vld [vmem:[#allocation8 + $0x120] sm:$0xff] }
 0xe76   : > { %v2782_v40 = vld [vmem:[#allocation8 + $0x128] sm:$0xff] }
 0xe77   : > { %5290 = vmatmul.mubr.msk.bf16.vlgmr.msra.gmra.mrb[32].mxu0 %vm1243_vm1, %v2442_v39  ;;  %v2778_v39 = vld [vmem:[#allocation8 + $0x108] sm:$0xff] }
 0xe78   : > { %5684 = vmatpush3.bf16.msra.mxu0 %v2581_v41  ;;  %5685 = vmatprep.mubr.msk.bf16.mxu0 %vm6718_vm0, %v6717_v4  ;;  %v6036_v4 = vld [vmem:[#allocation7 + $0xe4] ss:$8 sps:$4 sm:$0xff]   ;;  %v5322_v41 = vcombine.low %v2769_v28, %v2773_v31 }
 0xe79   : > { %2652 = vmatprep.subr.bf16.mxu1 %v6036_v4  ;;  %3555 = vmatprep.subr.bf16.mxu0 %v5299_v11  ;;  %v2797_v4 = vld [vmem:[#allocation8 + $0x1a0] sm:$0xff] }
 0xe7a   : > { %v2557_v55 = vpop.f32.mrb[60].mxu1  ;;  %2653 = vmatpush1.bf16.msra.mxu1 %v6034_v51  ;;  %v2793_v51 = vld [vmem:[#allocation8 + $0x180] sm:$0xff] }
 0xe7b   : > { %v5681_v30 = vpop.f32.mrb[61].mxu1  ;;  %v2563_v43 = vsel %vm1290_vm2, %v2557_v55, -inf  ;;  %2654 = vmatprep.subr.bf16.mxu1 %v6039_v61  ;;  %v5347_v61 = vcombine.high %v2793_v51, %v2797_v4  ;;  %v2821_v31 = vld [vmem:[#allocation8 + $0x260] sm:$0xff] }
 0xe7c   : > { %2564 = vmax.xlane.f32.xlu0 %v2563_v43  ;;  %v2560_v44 = vpop.f32.mrb[62].mxu1  ;;  %v5331_v30 = vcombine.high %v2777_v35, %v2781_v36  ;;  %v5333_v43 = vcombine.high %v2778_v39, %v2782_v40 }
 0xe7d   : > { %v5682_v45 = vpop.f32.mrb[63].mxu1  ;;  %v2785_v44 = vld [vmem:[#allocation8 + $0x140] sm:$0xff] }
 0xe7e   : > { %2655 = vmatpush1.bf16.msra.mxu1 %v6037_v62  ;;  %v2789_v45 = vld [vmem:[#allocation8 + $0x160] sm:$0xff] }
 0xe7f   : > { %3596 = vmatprep.subr.bf16.mxu1 %v5301_v16 }
 0xf09   : > { %v2565_v46 = vpop.xlane.xlu0 %2564 }
 0xf0a   : > { %v2566_v47 = vsub.f32 %v2557_v55, %v2565_v46  ;;  %v5324_v55 = vcombine.low %v2770_v29, %v2774_v27  ;;  %v2786_v46 = vld [vmem:[#allocation8 + $0x148] sm:$0xff] }
 0xf0b   : > { %v2818_v29 = vld [vmem:[#allocation8 + $0x248] sm:$0xff] }
 0xf0c   : > { %v2567_v48 = vmul.f32 1.442695, %v2566_v47  ;;  %v2790_v47 = vld [vmem:[#allocation8 + $0x168] sm:$0xff] }
 0xf0e   : > { %6260 = vpow2.f32 %v2567_v48  ;;  %v5330_v48 = vcombine.low %v2777_v35, %v2781_v36  ;;  %v2825_v35 = vld [vmem:[#allocation8 + $0x280] sm:$0xff] }
 0xf0f   : > { %v2829_v36 = vld [vmem:[#allocation8 + $0x2a0] sm:$0xff] }
 0xf18   : > { %v6261_v49 = vpop.eup %6260 }
 0xf19   : > { %v2569_v50 = vsel %vm1290_vm2, %v6261_v49, 0.0  ;;  %v2574_v37 = vpack.c.bf16 %v6261_v49, %v6261_v49  ;;  %v5332_v49 = vcombine.low %v2778_v39, %v2782_v40  ;;  %v2826_v39 = vld [vmem:[#allocation8 + $0x288] sm:$0xff]  ;;  %v5379_v40 = vcombine.high %v2825_v35, %v2829_v36 }
 0xf1a   : > { %2570 = vadd.xlane.f32.xlu1 %v2569_v50  ;;  %v5339_v50 = vcombine.high %v2785_v44, %v2789_v45 }
 0xf1b   : > { %5686 = vmatmul.mubr.msk.bf16.vlgmr.msra.gmra.mrb[36].mxu0 %vm1290_vm2, %v2574_v37  ;;  %v5341_v37 = vcombine.high %v2786_v46, %v2790_v47 }
 0xf1c   : > { %3556 = vmatpush1.bf16.msra.mxu0 %v5298_v10  ;;  %v2814_v10 = vld [vmem:[#allocation8 + $0x228] sm:$0xff] }
 0xf1d   : > { %3557 = vmatprep.subr.bf16.mxu0 %v5307_v17  ;;  %v5364_v16 = vcombine.low %v2810_v9, %v2814_v10 }
 0xf4a   : > { %v2504_v52 = vpop.f32.mrb[32].mxu0 }
 0xf4b   : > { %v7357_v53 = vadd.f32 %v2504_v52, %v2329_v23  ;;  %v2506_v57 = vpop.f32.mrb[33].mxu0  ;;  %v5306_v23 = vcombine.low %v2753_v13, %v2757_v14  ;;  %v2794_v52 = vld [vmem:[#allocation8 + $0x188] sm:$0xff]  ;;  %v5363_v13 = vcombine.high %v2809_v7, %v2813_v8  ;;  %v5365_v14 = vcombine.high %v2810_v9, %v2814_v10 }
 0xf4c   : > { %v7359_v58 = vadd.f32 %v2506_v57, %v2330_v25  ;;  %v2508_v60 = vpop.f32.mrb[34].mxu0  ;;  %v5315_v25 = vcombine.high %v2761_v20, %v2765_v42  ;;  %v2798_v57 = vld [vmem:[#allocation8 + $0x1a8] sm:$0xff]  ;;  %v6300_v42 = vld [vmem:[%s7141_s29] sm:$0xff] }
 0xf4d   : > { %v2509_v59 = vpop.f32.mrb[35].mxu0  ;;  %3558 = vmatpush1.bf16.msra.mxu0 %v5306_v23  ;;  %v5338_v60 = vcombine.low %v2785_v44, %v2789_v45  ;;  %v5349_v62 = vcombine.high %v2794_v52, %v2798_v57  ;;  %v6301_v23 = vld [vmem:[%s7141_s29 + $0x8] sm:$0xff]  ;;  %v2833_v44 = vld [vmem:[#allocation8 + $0x2c0] sm:$0xff]  ;;  %s6612_s29 = scalar_lea.vmem %s7540_s25, 256 }
 0xf4e   : > { %3559 = vmatprep.subr.bf16.mxu0 %v5315_v25  ;;  %v5340_v59 = vcombine.low %v2786_v46, %v2790_v47  ;;  %v2837_v45 = vld [vmem:[#allocation8 + $0x2e0] sm:$0xff]  ;;  %v2834_v46 = vld [vmem:[#allocation8 + $0x2c8] sm:$0xff]  ;;  %p6613_p11 = scmp.ne.s32.totalorder %s7540_s25, %s6612_s29  ;;  %p6620_p9 = scmp.lt.s32.totalorder %s6618_s12, %s6612_s29 }
 0xf4f   : > { %v5387_v47 = vcombine.high %v2833_v44, %v2837_v45 }
 0xf50   : > { %p6614_p13 = pnand %p6613_p11, %p7627_p12  ;;  %p6621_p4 = por %p6620_p9, %p6619_p7 }
 0xf51   : > { %3560 = vmatpush1.bf16.msra.mxu0 %v5314_v32  ;;  %v2822_v32 = vld [vmem:[#allocation8 + $0x268] sm:$0xff] }
 0xf52   : > { %3561 = vmatprep.subr.bf16.mxu0 %v5323_v33  ;;  %v5372_v33 = vcombine.low %v2818_v29, %v2822_v32  ;;  %p6615_p3 = pneg %p6614_p13 }
 0xf54   : > { %p6622_p8 = pnand %p6621_p4, %p6615_p3 }
 0xf55   : > { %3562 = vmatpush1.bf16.msra.mxu0 %v5322_v41  ;;  %v2830_v41 = vld [vmem:[#allocation8 + $0x2a8] sm:$0xff] }
 0xf56   : > { %3563 = vmatprep.subr.bf16.mxu0 %v5331_v30  ;;  %v5380_v30 = vcombine.low %v2826_v39, %v2830_v41 }
 0xf59   : > { %3564 = vmatpush1.bf16.msra.mxu0 %v5330_v48  ;;  %v2838_v48 = vld [vmem:[#allocation8 + $0x2e8] sm:$0xff] }
 0xf5a   : > { %3565 = vmatprep.subr.bf16.mxu0 %v5339_v50  ;;  %v5388_v50 = vcombine.low %v2834_v46, %v2838_v48 }
 0xf5d   : > { %3566 = vmatpush1.bf16.msra.mxu0 %v5338_v60 }
 0xf5e   : > { %3567 = vmatprep.subr.bf16.mxu0 %v5347_v61  ;;  %v2849_v61 = vld [vmem:[#allocation8 + $0x340] sm:$0xff] }
 0xfa7   : > { %v2571_v63 = vpop.xlane.xlu1 %2570 }
 0xfa8   : > { %6262 = vrcp.f32 %v2571_v63  ;;  %v2801_v63 = vld [vmem:[#allocation8 + $0x1c0] sm:$0xff] }
 0xfb2   : > { %v6263_v0 = vpop.eup %6262 }
 0xfee   : > { %v2617_v54 = vpop.f32.mrb[36].mxu0 }
 0xfef   : > { %v2623_v1 = vmul.f32 %v6263_v0, %v2617_v54  ;;  %v5687_v2 = vpop.f32.mrb[37].mxu0  ;;  %v2805_v0 = vld [vmem:[#allocation8 + $0x1e0] sm:$0xff]  ;;  %v2802_v54 = vld [vmem:[#allocation8 + $0x1c8] sm:$0xff] }
 0xff0   : > { %v2620_v3 = vpop.f32.mrb[38].mxu0  ;;  %v5346_v2 = vcombine.low %v2793_v51, %v2797_v4  ;;  %v5354_v11 = vcombine.low %v2801_v63, %v2805_v0  ;;  %v2841_v51 = vld [vmem:[#allocation8 + $0x300] sm:$0xff] }
 0xff1   : > { %v2624_v5 = vpack.c.bf16 %v2623_v1, %v2623_v1  ;;  %v5688_v6 = vpop.f32.mrb[39].mxu0  ;;  %v2806_v1 = vld [vmem:[#allocation8 + $0x1e8] sm:$0xff]  ;;  %v5348_v3 = vcombine.low %v2794_v52, %v2798_v57  ;;  %v2845_v4 = vld [vmem:[#allocation8 + $0x320] sm:$0xff] }
 0xff2   : > { %v5357_v6 = vcombine.high %v2802_v54, %v2806_v1  ;;  %3568 = vmatpush1.bf16.msra.mxu0 %v5346_v2  ;;  %v5356_v12 = vcombine.low %v2802_v54, %v2806_v1  ;;  %v2842_v52 = vld [vmem:[#allocation8 + $0x308] sm:$0xff]  ;;  %v5394_v57 = vcombine.low %v2841_v51, %v2845_v4  ;;  %v5395_v60 = vcombine.high %v2841_v51, %v2845_v4 }
 0xff3   : > { %5297 = vmatmul.mubr.msk.bf16.vlgmr.msra.gmra.mrb[64].mxu1 %vm1243_vm1, %v2624_v5  ;;  %v5355_v5 = vcombine.high %v2801_v63, %v2805_v0  ;;  %v2850_v1 = vld [vmem:[#allocation8 + $0x348] sm:$0xff] }
 0xff4   : > { %3597 = vmatpush1.bf16.msra.mxu1 %v5300_v15  ;;  %v5362_v15 = vcombine.low %v2809_v7, %v2813_v8  ;;  %v2854_v2 = vld [vmem:[#allocation8 + $0x368] sm:$0xff] }
 0xff5   : > { %3598 = vmatprep.subr.bf16.mxu1 %v5309_v38  ;;  %3569 = vmatprep.subr.bf16.mxu0 %v5355_v5  ;;  %v2857_v5 = vld [vmem:[#allocation8 + $0x380] sm:$0xff]  ;;  %v2858_v7 = vld [vmem:[#allocation8 + $0x388] sm:$0xff]  ;;  %v5404_v10 = vcombine.low %v2850_v1, %v2854_v2 }
 0xff6   : > { %3570 = vmatpush1.bf16.msra.mxu0 %v5354_v11  ;;  %v2862_v8 = vld [vmem:[#allocation8 + $0x3a8] sm:$0xff] }
 0xff7   : > { %3571 = vmatprep.subr.bf16.mxu0 %v5363_v13  ;;  %v2865_v13 = vld [vmem:[#allocation8 + $0x3c0] sm:$0xff] }
 0xff8   : > { %3599 = vmatpush1.bf16.msra.mxu1 %v5308_v24 }
 0xff9   : > { %3600 = vmatprep.subr.bf16.mxu1 %v5317_v26 }
 0xffa   : > { %3572 = vmatpush1.bf16.msra.mxu0 %v5362_v15  ;;  %v2866_v15 = vld [vmem:[#allocation8 + $0x3c8] sm:$0xff] }
 0xffc   : > { %3601 = vmatpush1.bf16.msra.mxu1 %v5316_v56 }
 0xffd   : > { %3602 = vmatprep.subr.bf16.mxu1 %v5325_v34  ;;  %v5373_v34 = vcombine.high %v2818_v29, %v2822_v32 }
0x1000   : > { %3603 = vmatpush1.bf16.msra.mxu1 %v5324_v55  ;;  %v5378_v55 = vcombine.low %v2825_v35, %v2829_v36  ;;  %v2718_v35 = vlaneseq }
0x1001   : > { %3604 = vmatprep.subr.bf16.mxu1 %v5333_v43  ;;  %v5381_v43 = vcombine.high %v2826_v39, %v2830_v41 }
0x1002   : > { %v7376_v39 = vshrl.u32 %v2718_v35, 7 }
0x1004   : > { %3605 = vmatpush1.bf16.msra.mxu1 %v5332_v49  ;;  %v5386_v49 = vcombine.low %v2833_v44, %v2837_v45  ;;  %v7382_v41 = vsub.s32 0, %v7376_v39 }
0x1005   : > { %3606 = vmatprep.subr.bf16.mxu1 %v5341_v37  ;;  %v5389_v37 = vcombine.high %v2834_v46, %v2838_v48 }
0x1008   : > { %3607 = vmatpush1.bf16.msra.mxu1 %v5340_v59  ;;  %v2846_v59 = vld [vmem:[#allocation8 + $0x328] sm:$0xff] }
0x1009   : > { %3608 = vmatprep.subr.bf16.mxu1 %v5349_v62  ;;  %v2853_v62 = vld [vmem:[#allocation8 + $0x360] sm:$0xff]  ;;  %v5396_v63 = vcombine.low %v2842_v52, %v2846_v59  ;;  %v5397_v0 = vcombine.high %v2842_v52, %v2846_v59  ;;  %v2760_v59 = vld [vmem:[#allocation8 + $0x78] sm:$0xff] }
0x100a   : > { %v5403_v54 = vcombine.high %v2849_v61, %v2853_v62  ;;  %v5402_v9 = vcombine.low %v2849_v61, %v2853_v62 }
0x100c   : > { %3609 = vmatpush1.bf16.msra.mxu1 %v5348_v3  ;;  %v5405_v3 = vcombine.high %v2850_v1, %v2854_v2  ;;  %v2767_v1 = vld [vmem:[#allocation8 + $0xb0] sm:$0xff]  ;;  %v2764_v2 = vld [vmem:[#allocation8 + $0x98] sm:$0xff] }
0x100d   : > { %3610 = vmatprep.subr.bf16.mxu1 %v5357_v6  ;;  %v2861_v6 = vld [vmem:[#allocation8 + $0x3a0] sm:$0xff] }
0x100e   : > { %v5411_v11 = vcombine.high %v2857_v5, %v2861_v6 }
0x1010   : > { %3611 = vmatpush1.bf16.msra.mxu1 %v5356_v12  ;;  %v5413_v12 = vcombine.high %v2858_v7, %v2862_v8 }
0x1011   : > { %3612 = vmatprep.subr.bf16.mxu1 %v5365_v14  ;;  %v2869_v14 = vld [vmem:[#allocation8 + $0x3e0] sm:$0xff] }
0x1014   : > { %3613 = vmatpush1.bf16.msra.mxu1 %v5364_v16  ;;  %v2870_v16 = vld [vmem:[#allocation8 + $0x3e8] sm:$0xff] }
0x1015   : > { %3614 = vmatprep.subr.bf16.mxu1 %v5373_v34 }
0x1018   : > { %3615 = vmatpush1.bf16.msra.mxu1 %v5372_v33 }
0x1019   : > { %3616 = vmatprep.subr.bf16.mxu1 %v5381_v43 }
0x101c   : > { %3617 = vmatpush1.bf16.msra.mxu1 %v5380_v30  ;;  %v2698_v30 = vld [vmem:[#allocation16] sm:$0x3] }
0x101d   : > { %3618 = vmatprep.subr.bf16.mxu1 %v5389_v37  ;;  %v2734_v37 = vrot.slane %v2698_v30, %v7382_v41 }
0x1020   : > { %3619 = vmatpush1.bf16.msra.mxu1 %v5388_v50 }
0x1021   : > { %3620 = vmatprep.subr.bf16.mxu1 %v5397_v0 }
0x1024   : > { %3621 = vmatpush1.bf16.msra.mxu1 %v5396_v63  ;;  %v2763_v63 = vld [vmem:[#allocation8 + $0x90] sm:$0xff] }
0x1025   : > { %3622 = vmatprep.subr.bf16.mxu1 %v5405_v3  ;;  %v2768_v3 = vld [vmem:[#allocation8 + $0xb8] sm:$0xff] }
0x1028   : > { %3623 = vmatpush1.bf16.msra.mxu1 %v5404_v10  ;;  %v2775_v10 = vld [vmem:[#allocation8 + $0xf0] sm:$0xff] }
0x1029   : > { %3624 = vmatprep.subr.bf16.mxu1 %v5413_v12  ;;  %v2776_v12 = vld [vmem:[#allocation8 + $0xf8] sm:$0xff] }
0x10c6   : > { %v2686_v17 = vpop.f32.mrb[64].mxu1 }
0x10c7   : > { %v2693_v18 = vadd.f32 %v2686_v17, %v7357_v53  ;;  %v2688_v19 = vpop.f32.mrb[65].mxu1  ;;  %v5410_v17 = vcombine.low %v2857_v5, %v2861_v6 }
0x10c8   : > { %v2694_v20 = vadd.f32 %v2688_v19, %v7359_v58  ;;  %v2690_v38 = vpop.f32.mrb[66].mxu1  ;;  %v2817_v58 = vld [vmem:[#allocation8 + $0x240] sm:$0xff]  ;;  %v5419_v19 = vcombine.high %v2865_v13, %v2869_v14 }
0x10c9   : > { %v7365_v21 = vadd.f32 %v6300_v42, %v2693_v18  ;;  %v2691_v22 = vpop.f32.mrb[67].mxu1  ;;  %v5371_v27 = vcombine.high %v2817_v58, %v2821_v31  ;;  %v5370_v56 = vcombine.low %v2817_v58, %v2821_v31  ;;  %v5412_v18 = vcombine.low %v2858_v7, %v2862_v8 }
0x10ca   : > { %v7368_v24 = vadd.f32 %v6301_v23, %v2694_v20  ;;  %v5421_v20 = vcombine.high %v2866_v15, %v2870_v16  ;;  %v5418_v38 = vcombine.low %v2865_v13, %v2869_v14  ;;  %v5420_v42 = vcombine.low %v2866_v15, %v2870_v16  ;;  %v2747_v22 = vld [vmem:[#allocation8 + $0x10] sm:$0xff] }
0x10cb   : > { %v2703_v26 = vmul.f32 %v7365_v21, %v7365_v21  ;;  %3573 = vmatprep.subr.bf16.mxu0 %v5371_v27  ;;  %3625 = vmatpush1.bf16.msra.mxu1 %v5412_v18  ;;  %v2751_v23 = vld [vmem:[#allocation8 + $0x30] sm:$0xff]  ;;  %v5319_v7 = vcombine.high %v2763_v63, %v2767_v1  ;;  %v5321_v8 = vcombine.high %v2764_v2, %v2768_v3 }
0x10cc   : > { %v2699_v25 = vadd.f32 %v7368_v24, %v7365_v21  ;;  %v2704_v53 = vmul.f32 %v7368_v24, %v7368_v24  ;;  %3574 = vmatpush1.bf16.msra.mxu0 %v5370_v56  ;;  %3626 = vmatprep.subr.bf16.mxu1 %v5421_v20  ;;  %v5318_v13 = vcombine.low %v2763_v63, %v2767_v1  ;;  %v2783_v18 = vld [vmem:[#allocation8 + $0x130] sm:$0xff]  ;;  %v2784_v20 = vld [vmem:[#allocation8 + $0x138] sm:$0xff] }
0x10cd   : > { %3575 = vmatprep.subr.bf16.mxu0 %v5379_v40  ;;  %v7379_v40 = vsub.s32 1, %v7376_v39  ;;  %v5320_v14 = vcombine.low %v2764_v2, %v2768_v3  ;;  %v2819_v63 = vld [vmem:[#allocation8 + $0x250] sm:$0xff]  ;;  %v2824_v1 = vld [vmem:[#allocation8 + $0x278] sm:$0xff] }
0x10ce   : > { %2700 = vadd.xlane.f32.xlu0 %v2699_v25  ;;  %v2705_v28 = vadd.f32 %v2704_v53, %v2703_v26  ;;  %v2748_v25 = vld [vmem:[#allocation8 + $0x18] sm:$0xff]  ;;  %v5303_v26 = vcombine.high %v2747_v22, %v2751_v23 }
0x10cf   : > { %3627 = vmatpush1.bf16.msra.mxu1 %v5420_v42  ;;  %v2752_v53 = vld [vmem:[#allocation8 + $0x38] sm:$0xff] }
0x10d0   : > { %3576 = vmatpush1.bf16.msra.mxu0 %v5378_v55  ;;  %v5304_v58 = vcombine.low %v2748_v25, %v2752_v53  ;;  %v5305_v31 = vcombine.high %v2748_v25, %v2752_v53  ;;  %v2697_v55 = vld [vmem:[#allocation14] sm:$0x3]  ;;  %v2787_v25 = vld [vmem:[#allocation8 + $0x150] sm:$0xff]  ;;  %v2788_v53 = vld [vmem:[#allocation8 + $0x158] sm:$0xff] }
0x10d1   : > { %3577 = vmatprep.subr.bf16.mxu0 %v5387_v47  ;;  %v2725_v45 = vrot.slane %v2697_v55, %v7379_v40  ;;  %v2721_v46 = vrot.slane %v2697_v55, %v7382_v41 }
0x10d2   : > { %2706 = vadd.xlane.f32.xlu0 %v2705_v28  ;;  %v5302_v28 = vcombine.low %v2747_v22, %v2751_v23  ;;  %3678 = vmatprep.subr.bf16.mxu1 %v5305_v31 }
0x10d4   : > { %3578 = vmatpush1.bf16.msra.mxu0 %v5386_v49  ;;  %v2738_v49 = vrot.slane %v2698_v30, %v7379_v40 }
0x10d5   : > { %3579 = vmatprep.subr.bf16.mxu0 %v5395_v60  ;;  %v2759_v60 = vld [vmem:[#allocation8 + $0x70] sm:$0xff] }
0x10d8   : > { %3580 = vmatpush1.bf16.msra.mxu0 %v5394_v57 }
0x10d9   : > { %3581 = vmatprep.subr.bf16.mxu0 %v5403_v54 }
0x10dc   : > { %3582 = vmatpush1.bf16.msra.mxu0 %v5402_v9  ;;  %v2771_v9 = vld [vmem:[#allocation8 + $0xd0] sm:$0xff] }
0x10dd   : > { %3583 = vmatprep.subr.bf16.mxu0 %v5411_v11  ;;  %v2772_v11 = vld [vmem:[#allocation8 + $0xd8] sm:$0xff]  ;;  %v5327_v15 = vcombine.high %v2771_v9, %v2775_v10 }
0x10de   : > { %v5329_v16 = vcombine.high %v2772_v11, %v2776_v12  ;;  %v5328_v42 = vcombine.low %v2772_v11, %v2776_v12 }
0x10e0   : > { %3584 = vmatpush1.bf16.msra.mxu0 %v5410_v17  ;;  %v2779_v17 = vld [vmem:[#allocation8 + $0x110] sm:$0xff] }
0x10e1   : > { %3585 = vmatprep.subr.bf16.mxu0 %v5419_v19  ;;  %v2780_v19 = vld [vmem:[#allocation8 + $0x118] sm:$0xff]  ;;  %v5335_v22 = vcombine.high %v2779_v17, %v2783_v18 }
0x10e2   : > { %v5337_v23 = vcombine.high %v2780_v19, %v2784_v20  ;;  %v5336_v31 = vcombine.low %v2780_v19, %v2784_v20 }
0x10e4   : > { %3586 = vmatpush1.bf16.msra.mxu0 %v5418_v38  ;;  %v5326_v38 = vcombine.low %v2771_v9, %v2775_v10  ;;  %v2828_v9 = vld [vmem:[#allocation8 + $0x298] sm:$0xff] }
0x10e5   : > { %3637 = vmatprep.subr.bf16.mxu0 %v5303_v26  ;;  %v2791_v26 = vld [vmem:[#allocation8 + $0x170] sm:$0xff]  ;;  %v2832_v10 = vld [vmem:[#allocation8 + $0x2b8] sm:$0xff] }
0x10e6   : > { %v5342_v35 = vcombine.low %v2787_v25, %v2791_v26  ;;  %v5384_v20 = vcombine.low %v2828_v9, %v2832_v10 }
0x115b   : > { %v2701_v29 = vpop.xlane.xlu0 %2700 }
0x115c   : > { %v2702_v27 = vmul.f32 0.00390625, %v2701_v29  ;;  %v5343_v29 = vcombine.high %v2787_v25, %v2791_v26  ;;  %v2844_v25 = vld [vmem:[#allocation8 + $0x318] sm:$0xff] }
0x115d   : > { %v2848_v26 = vld [vmem:[#allocation8 + $0x338] sm:$0xff] }
0x115e   : > { %v2709_v56 = vmul.f32 %v2702_v27, %v2702_v27  ;;  %v2711_v43 = vsub.f32 %v7365_v21, %v2702_v27  ;;  %v2712_v44 = vsub.f32 %v7368_v24, %v2702_v27  ;;  %v2755_v21 = vld [vmem:[#allocation8 + $0x50] sm:$0xff]  ;;  %v2756_v24 = vld [vmem:[#allocation8 + $0x58] sm:$0xff] }
0x115f   : > { %v2707_v32 = vpop.xlane.xlu0 %2706  ;;  %v5311_v0 = vcombine.high %v2755_v21, %v2759_v60  ;;  %v5313_v54 = vcombine.high %v2756_v24, %v2760_v59  ;;  %v5310_v5 = vcombine.low %v2755_v21, %v2759_v60  ;;  %v5312_v6 = vcombine.low %v2756_v24, %v2760_v59  ;;  %v2816_v21 = vld [vmem:[#allocation8 + $0x238] sm:$0xff] }
0x1160   : > { %v2708_v33 = vmul.f32 0.00390625, %v2707_v32  ;;  %v2795_v32 = vld [vmem:[#allocation8 + $0x190] sm:$0xff] }
0x1162   : > { %v2710_v34 = vsub.f32 %v2708_v33, %v2709_v56  ;;  %v2799_v56 = vld [vmem:[#allocation8 + $0x1b0] sm:$0xff]  ;;  %v2796_v33 = vld [vmem:[#allocation8 + $0x198] sm:$0xff] }
0x1163   : > { %v5351_v55 = vcombine.high %v2795_v32, %v2799_v56 }
0x1164   : > { %v2713_v36 = vadd.f32 1e-05, %v2710_v34  ;;  %v2800_v34 = vld [vmem:[#allocation8 + $0x1b8] sm:$0xff] }
0x1165   : > { %v5353_v30 = vcombine.high %v2796_v33, %v2800_v34 }
0x1166   : > { %6264 = vrsqrt.f32 %v2713_v36 }
0x1170   : > { %v6265_v47 = vpop.eup %6264 }
0x1171   : > { %v2716_v48 = vmul.f32 %v6265_v47, %v2712_v44  ;;  %v2715_v50 = vmul.f32 %v6265_v47, %v2711_v43  ;;  %v2803_v43 = vld [vmem:[#allocation8 + $0x1d0] sm:$0xff]  ;;  %v5350_v47 = vcombine.low %v2795_v32, %v2799_v56  ;;  %v2852_v32 = vld [vmem:[#allocation8 + $0x358] sm:$0xff] }
0x1172   : > { %v2807_v44 = vld [vmem:[#allocation8 + $0x1f0] sm:$0xff]  ;;  %v2856_v56 = vld [vmem:[#allocation8 + $0x378] sm:$0xff] }
0x1173   : > { %v2729_v51 = vmul.f32 %v2725_v45, %v2716_v48  ;;  %v2728_v4 = vmul.f32 %v2721_v46, %v2715_v50  ;;  %v2804_v45 = vld [vmem:[#allocation8 + $0x1d8] sm:$0xff]  ;;  %v5352_v48 = vcombine.low %v2796_v33, %v2800_v34  ;;  %v5358_v60 = vcombine.low %v2803_v43, %v2807_v44 }
0x1174   : > { %v2808_v46 = vld [vmem:[#allocation8 + $0x1f8] sm:$0xff]  ;;  %v5400_v34 = vcombine.low %v2844_v25, %v2848_v26 }
0x1175   : > { %v7390_v52 = vadd.f32 %v2738_v49, %v2729_v51  ;;  %v7392_v57 = vadd.f32 %v2734_v37, %v2728_v4  ;;  %v5359_v49 = vcombine.high %v2803_v43, %v2807_v44  ;;  %v5361_v50 = vcombine.high %v2804_v45, %v2808_v46  ;;  %v2811_v37 = vld [vmem:[#allocation8 + $0x210] sm:$0xff]  ;;  %v2812_v4 = vld [vmem:[#allocation8 + $0x218] sm:$0xff] }
0x1176   : > { %v2815_v51 = vld [vmem:[#allocation8 + $0x230] sm:$0xff]  ;;  %v5360_v24 = vcombine.low %v2804_v45, %v2808_v46  ;;  %v5368_v3 = vcombine.low %v2812_v4, %v2816_v21  ;;  %v2860_v43 = vld [vmem:[#allocation8 + $0x398] sm:$0xff]  ;;  %v5408_v46 = vcombine.low %v2852_v32, %v2856_v56 }
0x1177   : > { %v2744_v61 = vpack.c.bf16 %v7390_v52, %v7390_v52  ;;  %v7398_v62 = vpack.c.bf16 %v7392_v57, %v7392_v57  ;;  %v5367_v59 = vcombine.high %v2811_v37, %v2815_v51  ;;  %v5366_v2 = vcombine.low %v2811_v37, %v2815_v51  ;;  %v2864_v44 = vld [vmem:[#allocation8 + $0x3b8] sm:$0xff] }
0x1178   : > { %v2868_v37 = vld [vmem:[#allocation8 + $0x3d8] sm:$0xff] }
0x1179   : > { %3587 = vmatprep.mubr.bf16.mxu0 %v2744_v61  ;;  %3628 = vmatprep.mubr.bf16.mxu1 %v2744_v61  ;;  %v2872_v51 = vld [vmem:[#allocation8 + $0x3f8] sm:$0xff] }
0x117a   : > { %3588 = vmatmul.mubr.bf16.vlgmr.msra.gmra.mrb[40].mxu0 %v7398_v62  ;;  %3629 = vmatmul.mubr.bf16.vlgmr.msra.gmra.mrb[68].mxu1 %v7398_v62 }
0x117b   : > { %3638 = vmatpush1.bf16.msra.mxu0 %v5302_v28  ;;  %3679 = vmatpush1.bf16.msra.mxu1 %v5304_v58  ;;  %v2792_v28 = vld [vmem:[#allocation8 + $0x178] sm:$0xff]  ;;  %v5334_v58 = vcombine.low %v2779_v17, %v2783_v18 }
0x117c   : > { %3669 = vmatprep.mubr.bf16.mxu0 %v2744_v61  ;;  %3710 = vmatprep.mubr.bf16.mxu1 %v2744_v61  ;;  %v5345_v27 = vcombine.high %v2788_v53, %v2792_v28  ;;  %v5344_v36 = vcombine.low %v2788_v53, %v2792_v28  ;;  %v5369_v61 = vcombine.high %v2812_v4, %v2816_v21  ;;  %v2836_v17 = vld [vmem:[#allocation8 + $0x2d8] sm:$0xff] }
0x117d   : > { %3639 = vmatprep.subr.bf16.mxu0 %v5311_v0  ;;  %3680 = vmatprep.subr.bf16.mxu1 %v5313_v54  ;;  %v2823_v0 = vld [vmem:[#allocation8 + $0x270] sm:$0xff]  ;;  %v2820_v54 = vld [vmem:[#allocation8 + $0x258] sm:$0xff]  ;;  %v5416_v21 = vcombine.low %v2860_v43, %v2864_v44 }
0x117e   : > { %v5374_v11 = vcombine.low %v2819_v63, %v2823_v0  ;;  %v5376_v12 = vcombine.low %v2820_v54, %v2824_v1  ;;  %v2840_v18 = vld [vmem:[#allocation8 + $0x2f8] sm:$0xff] }
0x117f   : > { %3640 = vmatpush1.bf16.msra.mxu0 %v5310_v5  ;;  %3681 = vmatpush1.bf16.msra.mxu1 %v5312_v6  ;;  %v5375_v5 = vcombine.high %v2819_v63, %v2823_v0  ;;  %v5377_v6 = vcombine.high %v2820_v54, %v2824_v1  ;;  %v5392_v28 = vcombine.low %v2836_v17, %v2840_v18  ;;  %v6042_v63 = vld [vmem:[#allocation11 + $0x4] ss:$8 sps:$4 sm:$0xff]   ;;  %v6040_v54 = vld [vmem:[#allocation11] ss:$8 sps:$4 sm:$0xff]  }
0x1180   : > { %3641 = vmatprep.subr.bf16.mxu0 %v5319_v7  ;;  %3682 = vmatprep.subr.bf16.mxu1 %v5321_v8  ;;  %v2827_v7 = vld [vmem:[#allocation8 + $0x290] sm:$0xff] }
0x1181   : > { %v2831_v8 = vld [vmem:[#allocation8 + $0x2b0] sm:$0xff] }
0x1182   : > { %v5382_v19 = vcombine.low %v2827_v7, %v2831_v8  ;;  %v6045_v0 = vld [vmem:[#allocation11 + $0x104] ss:$8 sps:$4 sm:$0xff]   ;;  %v6043_v1 = vld [vmem:[#allocation11 + $0x100] ss:$8 sps:$4 sm:$0xff]  }
0x1183   : > { %3642 = vmatpush1.bf16.msra.mxu0 %v5318_v13  ;;  %3683 = vmatpush1.bf16.msra.mxu1 %v5320_v14  ;;  %v5383_v13 = vcombine.high %v2827_v7, %v2831_v8  ;;  %v5385_v14 = vcombine.high %v2828_v9, %v2832_v10  ;;  %v6054_v7 = vld [vmem:[#allocation11 + $0x24] ss:$8 sps:$4 sm:$0xff]   ;;  %v6052_v9 = vld [vmem:[#allocation11 + $0x20] ss:$8 sps:$4 sm:$0xff]  }
0x1184   : > { %3643 = vmatprep.subr.bf16.mxu0 %v5327_v15  ;;  %3684 = vmatprep.subr.bf16.mxu1 %v5329_v16  ;;  %v2835_v15 = vld [vmem:[#allocation8 + $0x2d0] sm:$0xff] }
0x1185   : > { %v2839_v16 = vld [vmem:[#allocation8 + $0x2f0] sm:$0xff] }
0x1186   : > { %v5390_v53 = vcombine.low %v2835_v15, %v2839_v16  ;;  %v6057_v8 = vld [vmem:[#allocation11 + $0x124] ss:$8 sps:$4 sm:$0xff]   ;;  %v6055_v10 = vld [vmem:[#allocation11 + $0x120] ss:$8 sps:$4 sm:$0xff]  }
0x1187   : > { %3644 = vmatpush1.bf16.msra.mxu0 %v5326_v38  ;;  %3685 = vmatpush1.bf16.msra.mxu1 %v5328_v42  ;;  %v5391_v38 = vcombine.high %v2835_v15, %v2839_v16  ;;  %v5393_v42 = vcombine.high %v2836_v17, %v2840_v18  ;;  %v6069_v15 = vld [vmem:[#allocation11 + $0x144] ss:$8 sps:$4 sm:$0xff]   ;;  %v6064_v16 = vld [vmem:[#allocation11 + $0x40] ss:$8 sps:$4 sm:$0xff]   ;;  %v6072_v18 = vld [vmem:[#allocation11 + $0x54] ss:$8 sps:$4 sm:$0xff]  }
0x1188   : > { %3645 = vmatprep.subr.bf16.mxu0 %v5335_v22  ;;  %3686 = vmatprep.subr.bf16.mxu1 %v5337_v23  ;;  %v2843_v22 = vld [vmem:[#allocation8 + $0x310] sm:$0xff] }
0x1189   : > { %v2847_v23 = vld [vmem:[#allocation8 + $0x330] sm:$0xff] }
0x118a   : > { %v5398_v33 = vcombine.low %v2843_v22, %v2847_v23  ;;  %v6067_v17 = vld [vmem:[#allocation11 + $0x140] ss:$8 sps:$4 sm:$0xff]  }
0x118b   : > { %3646 = vmatpush1.bf16.msra.mxu0 %v5334_v58  ;;  %3687 = vmatpush1.bf16.msra.mxu1 %v5336_v31  ;;  %v5399_v58 = vcombine.high %v2843_v22, %v2847_v23  ;;  %v5401_v31 = vcombine.high %v2844_v25, %v2848_v26  ;;  %v6081_v22 = vld [vmem:[#allocation11 + $0x164] ss:$8 sps:$4 sm:$0xff]   ;;  %v6076_v23 = vld [vmem:[#allocation11 + $0x60] ss:$8 sps:$4 sm:$0xff]   ;;  %v6084_v26 = vld [vmem:[#allocation11 + $0x74] ss:$8 sps:$4 sm:$0xff]  }
0x118c   : > { %3647 = vmatprep.subr.bf16.mxu0 %v5343_v29  ;;  %3688 = vmatprep.subr.bf16.mxu1 %v5345_v27  ;;  %v2851_v29 = vld [vmem:[#allocation8 + $0x350] sm:$0xff] }
0x118d   : > { %v2855_v27 = vld [vmem:[#allocation8 + $0x370] sm:$0xff] }
0x118e   : > { %v5406_v45 = vcombine.low %v2851_v29, %v2855_v27  ;;  %v6079_v25 = vld [vmem:[#allocation11 + $0x160] ss:$8 sps:$4 sm:$0xff]  }
0x118f   : > { %3648 = vmatpush1.bf16.msra.mxu0 %v5342_v35  ;;  %3689 = vmatpush1.bf16.msra.mxu1 %v5344_v36  ;;  %v5407_v35 = vcombine.high %v2851_v29, %v2855_v27  ;;  %v5409_v36 = vcombine.high %v2852_v32, %v2856_v56  ;;  %v6093_v29 = vld [vmem:[#allocation11 + $0x184] ss:$8 sps:$4 sm:$0xff]   ;;  %v6088_v27 = vld [vmem:[#allocation11 + $0x80] ss:$8 sps:$4 sm:$0xff]   ;;  %v6096_v56 = vld [vmem:[#allocation11 + $0x94] ss:$8 sps:$4 sm:$0xff]  }
0x1190   : > { %3649 = vmatprep.subr.bf16.mxu0 %v5351_v55  ;;  %3690 = vmatprep.subr.bf16.mxu1 %v5353_v30  ;;  %v2859_v55 = vld [vmem:[#allocation8 + $0x390] sm:$0xff] }
0x1191   : > { %v2863_v30 = vld [vmem:[#allocation8 + $0x3b0] sm:$0xff] }
0x1192   : > { %v5414_v4 = vcombine.low %v2859_v55, %v2863_v30  ;;  %v6091_v32 = vld [vmem:[#allocation11 + $0x180] ss:$8 sps:$4 sm:$0xff]  }
0x1193   : > { %3650 = vmatpush1.bf16.msra.mxu0 %v5350_v47  ;;  %3691 = vmatpush1.bf16.msra.mxu1 %v5352_v48  ;;  %v5415_v47 = vcombine.high %v2859_v55, %v2863_v30  ;;  %v5417_v48 = vcombine.high %v2860_v43, %v2864_v44  ;;  %v6105_v55 = vld [vmem:[#allocation11 + $0x1a4] ss:$8 sps:$4 sm:$0xff]   ;;  %v6100_v30 = vld [vmem:[#allocation11 + $0xa0] ss:$8 sps:$4 sm:$0xff]   ;;  %v6108_v44 = vld [vmem:[#allocation11 + $0xb4] ss:$8 sps:$4 sm:$0xff]  }
0x1194   : > { %3651 = vmatprep.subr.bf16.mxu0 %v5359_v49  ;;  %3692 = vmatprep.subr.bf16.mxu1 %v5361_v50  ;;  %v2867_v49 = vld [vmem:[#allocation8 + $0x3d0] sm:$0xff] }
0x1195   : > { %v2871_v50 = vld [vmem:[#allocation8 + $0x3f0] sm:$0xff] }
0x1196   : > { %v6103_v43 = vld [vmem:[#allocation11 + $0x1a0] ss:$8 sps:$4 sm:$0xff]  }
0x1197   : > { %3652 = vmatpush1.bf16.msra.mxu0 %v5358_v60  ;;  %3693 = vmatpush1.bf16.msra.mxu1 %v5360_v24  ;;  %v5423_v60 = vcombine.high %v2867_v49, %v2871_v50  ;;  %v5425_v24 = vcombine.high %v2868_v37, %v2872_v51 }
0x1198   : > { %3653 = vmatprep.subr.bf16.mxu0 %v5367_v59  ;;  %3694 = vmatprep.subr.bf16.mxu1 %v5369_v61  ;;  %v5422_v59 = vcombine.low %v2867_v49, %v2871_v50  ;;  %v5424_v61 = vcombine.low %v2868_v37, %v2872_v51  ;;  %v6117_v49 = vld [vmem:[#allocation11 + $0x1c4] ss:$8 sps:$4 sm:$0xff]   ;;  %v6112_v50 = vld [vmem:[#allocation11 + $0xc0] ss:$8 sps:$4 sm:$0xff]   ;;  %v6120_v51 = vld [vmem:[#allocation11 + $0xd4] ss:$8 sps:$4 sm:$0xff]  }
0x1199   : > { %v6115_v37 = vld [vmem:[#allocation11 + $0x1c0] ss:$8 sps:$4 sm:$0xff]  }
0x119b   : > { %3654 = vmatpush1.bf16.msra.mxu0 %v5366_v2  ;;  %3695 = vmatpush1.bf16.msra.mxu1 %v5368_v3  ;;  %v6048_v2 = vld [vmem:[#allocation11 + $0x14] ss:$8 sps:$4 sm:$0xff]  }
0x119c   : > { %3655 = vmatprep.subr.bf16.mxu0 %v5375_v5  ;;  %3696 = vmatprep.subr.bf16.mxu1 %v5377_v6  ;;  %v6051_v3 = vld [vmem:[#allocation11 + $0x114] ss:$8 sps:$4 sm:$0xff]   ;;  %v6046_v5 = vld [vmem:[#allocation11 + $0x10] ss:$8 sps:$4 sm:$0xff]  }
0x119d   : > { %v6049_v6 = vld [vmem:[#allocation11 + $0x110] ss:$8 sps:$4 sm:$0xff]  }
0x119f   : > { %3656 = vmatpush1.bf16.msra.mxu0 %v5374_v11  ;;  %3697 = vmatpush1.bf16.msra.mxu1 %v5376_v12  ;;  %v6060_v11 = vld [vmem:[#allocation11 + $0x34] ss:$8 sps:$4 sm:$0xff]  }
0x11a0   : > { %3657 = vmatprep.subr.bf16.mxu0 %v5383_v13  ;;  %3698 = vmatprep.subr.bf16.mxu1 %v5385_v14  ;;  %v6063_v12 = vld [vmem:[#allocation11 + $0x134] ss:$8 sps:$4 sm:$0xff]   ;;  %v6058_v13 = vld [vmem:[#allocation11 + $0x30] ss:$8 sps:$4 sm:$0xff]   ;;  %v6066_v14 = vld [vmem:[#allocation11 + $0x44] ss:$8 sps:$4 sm:$0xff]  }
0x11a3   : > { %3658 = vmatpush1.bf16.msra.mxu0 %v5382_v19  ;;  %3699 = vmatpush1.bf16.msra.mxu1 %v5384_v20  ;;  %v6075_v19 = vld [vmem:[#allocation11 + $0x154] ss:$8 sps:$4 sm:$0xff]   ;;  %v6070_v20 = vld [vmem:[#allocation11 + $0x50] ss:$8 sps:$4 sm:$0xff]  }
0x11a4   : > { %3659 = vmatprep.subr.bf16.mxu0 %v5391_v38  ;;  %3700 = vmatprep.subr.bf16.mxu1 %v5393_v42  ;;  %v6073_v38 = vld [vmem:[#allocation11 + $0x150] ss:$8 sps:$4 sm:$0xff]   ;;  %v6078_v42 = vld [vmem:[#allocation11 + $0x64] ss:$8 sps:$4 sm:$0xff]  }
0x11a7   : > { %3660 = vmatpush1.bf16.msra.mxu0 %v5390_v53  ;;  %3701 = vmatpush1.bf16.msra.mxu1 %v5392_v28  ;;  %v6087_v53 = vld [vmem:[#allocation11 + $0x174] ss:$8 sps:$4 sm:$0xff]   ;;  %v6082_v28 = vld [vmem:[#allocation11 + $0x70] ss:$8 sps:$4 sm:$0xff]  }
0x11a8   : > { %3661 = vmatprep.subr.bf16.mxu0 %v5399_v58  ;;  %3702 = vmatprep.subr.bf16.mxu1 %v5401_v31  ;;  %v6085_v58 = vld [vmem:[#allocation11 + $0x170] ss:$8 sps:$4 sm:$0xff]   ;;  %v6090_v31 = vld [vmem:[#allocation11 + $0x84] ss:$8 sps:$4 sm:$0xff]  }
0x11ab   : > { %3662 = vmatpush1.bf16.msra.mxu0 %v5398_v33  ;;  %3703 = vmatpush1.bf16.msra.mxu1 %v5400_v34  ;;  %v6099_v33 = vld [vmem:[#allocation11 + $0x194] ss:$8 sps:$4 sm:$0xff]   ;;  %v6094_v34 = vld [vmem:[#allocation11 + $0x90] ss:$8 sps:$4 sm:$0xff]  }
0x11ac   : > { %3663 = vmatprep.subr.bf16.mxu0 %v5407_v35  ;;  %3704 = vmatprep.subr.bf16.mxu1 %v5409_v36  ;;  %v6097_v35 = vld [vmem:[#allocation11 + $0x190] ss:$8 sps:$4 sm:$0xff]   ;;  %v6102_v36 = vld [vmem:[#allocation11 + $0xa4] ss:$8 sps:$4 sm:$0xff]  }
0x11af   : > { %3664 = vmatpush1.bf16.msra.mxu0 %v5406_v45  ;;  %3705 = vmatpush1.bf16.msra.mxu1 %v5408_v46  ;;  %v6111_v45 = vld [vmem:[#allocation11 + $0x1b4] ss:$8 sps:$4 sm:$0xff]   ;;  %v6106_v46 = vld [vmem:[#allocation11 + $0xb0] ss:$8 sps:$4 sm:$0xff]  }
0x11b0   : > { %3665 = vmatprep.subr.bf16.mxu0 %v5415_v47  ;;  %3706 = vmatprep.subr.bf16.mxu1 %v5417_v48  ;;  %v6109_v47 = vld [vmem:[#allocation11 + $0x1b0] ss:$8 sps:$4 sm:$0xff]   ;;  %v6114_v48 = vld [vmem:[#allocation11 + $0xc4] ss:$8 sps:$4 sm:$0xff]  }
0x11b3   : > { %3666 = vmatpush1.bf16.msra.mxu0 %v5414_v4  ;;  %3707 = vmatpush1.bf16.msra.mxu1 %v5416_v21  ;;  %v6123_v4 = vld [vmem:[#allocation11 + $0x1d4] ss:$8 sps:$4 sm:$0xff]   ;;  %v6118_v21 = vld [vmem:[#allocation11 + $0xd0] ss:$8 sps:$4 sm:$0xff]  }
0x11b4   : > { %3667 = vmatprep.subr.bf16.mxu0 %v5423_v60  ;;  %3708 = vmatprep.subr.bf16.mxu1 %v5425_v24  ;;  %v6121_v60 = vld [vmem:[#allocation11 + $0x1d0] ss:$8 sps:$4 sm:$0xff]   ;;  %v6126_v24 = vld [vmem:[#allocation11 + $0xe4] ss:$8 sps:$4 sm:$0xff]  }
0x11b7   : > { %3668 = vmatpush1.bf16.msra.mxu0 %v5422_v59  ;;  %3709 = vmatpush1.bf16.msra.mxu1 %v5424_v61  ;;  %v6129_v59 = vld [vmem:[#allocation11 + $0x1e4] ss:$8 sps:$4 sm:$0xff]   ;;  %v6124_v61 = vld [vmem:[#allocation11 + $0xe0] ss:$8 sps:$4 sm:$0xff]  }
0x11b8   : > { %4723 = vmatprep.subr.bf16.mxu0 %v6042_v63  ;;  %4764 = vmatprep.subr.bf16.mxu1 %v6045_v0  ;;  %v6127_v63 = vld [vmem:[#allocation11 + $0x1e0] ss:$8 sps:$4 sm:$0xff]   ;;  %v6132_v0 = vld [vmem:[#allocation11 + $0xf4] ss:$8 sps:$4 sm:$0xff]  }
0x11ba   : > { %3670 = vmatmul.mubr.bf16.vlgmr.msra.gmra.mrb[44].mxu0 %v7398_v62  ;;  %3711 = vmatmul.mubr.bf16.vlgmr.msra.gmra.mrb[72].mxu1 %v7398_v62  ;;  %v6061_v62 = vld [vmem:[#allocation11 + $0x130] ss:$8 sps:$4 sm:$0xff]  }
0x11bb   : > { %4724 = vmatpush1.bf16.msra.mxu0 %v6040_v54  ;;  %4765 = vmatpush1.bf16.msra.mxu1 %v6043_v1  ;;  %v6130_v54 = vld [vmem:[#allocation11 + $0xf0] ss:$8 sps:$4 sm:$0xff]  }
0x11bc   : > { %4725 = vmatprep.subr.bf16.mxu0 %v6048_v2  ;;  %4766 = vmatprep.subr.bf16.mxu1 %v6051_v3  ;;  %v6133_v1 = vld [vmem:[#allocation11 + $0x1f0] ss:$8 sps:$4 sm:$0xff]   ;;  %v6135_v2 = vld [vmem:[#allocation11 + $0x1f4] ss:$8 sps:$4 sm:$0xff]   ;;  %v6138_v3 = vld [vmem:[#allocation11 + $0x204] ss:$8 sps:$4 sm:$0xff]  }
0x11bf   : > { %4726 = vmatpush1.bf16.msra.mxu0 %v6046_v5  ;;  %4767 = vmatpush1.bf16.msra.mxu1 %v6049_v6  ;;  %v6141_v5 = vld [vmem:[#allocation11 + $0x304] ss:$8 sps:$4 sm:$0xff]   ;;  %v2885_v6 = vsub.s32 2, %v7376_v39 }
0x11c0   : > { %4727 = vmatprep.subr.bf16.mxu0 %v6054_v7  ;;  %4768 = vmatprep.subr.bf16.mxu1 %v6057_v8  ;;  %v7405_v7 = vld [vmem:[#allocation10] sm:$0xff]  ;;  %v2889_v8 = vsub.s32 3, %v7376_v39 }
0x11c3   : > { %4728 = vmatpush1.bf16.msra.mxu0 %v6052_v9  ;;  %4769 = vmatpush1.bf16.msra.mxu1 %v6055_v10  ;;  %v2878_v9 = vrot.slane %v7405_v7, %v7382_v41  ;;  %v2886_v10 = vrot.slane %v7405_v7, %v2885_v6 }
0x11c4   : > { %4729 = vmatprep.subr.bf16.mxu0 %v6060_v11  ;;  %4770 = vmatprep.subr.bf16.mxu1 %v6063_v12  ;;  %v2882_v11 = vrot.slane %v7405_v7, %v7379_v40  ;;  %v2890_v12 = vrot.slane %v7405_v7, %v2889_v8 }
0x11c7   : > { %4730 = vmatpush1.bf16.msra.mxu0 %v6058_v13  ;;  %4771 = vmatpush1.bf16.msra.mxu1 %v6061_v62 }
0x11c8   : > { %4731 = vmatprep.subr.bf16.mxu0 %v6066_v14  ;;  %4772 = vmatprep.subr.bf16.mxu1 %v6069_v15 }
0x11cb   : > { %4732 = vmatpush1.bf16.msra.mxu0 %v6064_v16  ;;  %4773 = vmatpush1.bf16.msra.mxu1 %v6067_v17 }
0x11cc   : > { %4733 = vmatprep.subr.bf16.mxu0 %v6072_v18  ;;  %4774 = vmatprep.subr.bf16.mxu1 %v6075_v19 }
0x11cf   : > { %4734 = vmatpush1.bf16.msra.mxu0 %v6070_v20  ;;  %4775 = vmatpush1.bf16.msra.mxu1 %v6073_v38 }
0x11d0   : > { %4735 = vmatprep.subr.bf16.mxu0 %v6078_v42  ;;  %4776 = vmatprep.subr.bf16.mxu1 %v6081_v22 }
0x11d3   : > { %4736 = vmatpush1.bf16.msra.mxu0 %v6076_v23  ;;  %4777 = vmatpush1.bf16.msra.mxu1 %v6079_v25 }
0x11d4   : > { %4737 = vmatprep.subr.bf16.mxu0 %v6084_v26  ;;  %4778 = vmatprep.subr.bf16.mxu1 %v6087_v53 }
0x11d7   : > { %4738 = vmatpush1.bf16.msra.mxu0 %v6082_v28  ;;  %4779 = vmatpush1.bf16.msra.mxu1 %v6085_v58 }
0x11d8   : > { %4739 = vmatprep.subr.bf16.mxu0 %v6090_v31  ;;  %4780 = vmatprep.subr.bf16.mxu1 %v6093_v29 }
0x11db   : > { %4740 = vmatpush1.bf16.msra.mxu0 %v6088_v27  ;;  %4781 = vmatpush1.bf16.msra.mxu1 %v6091_v32 }
0x11dc   : > { %4741 = vmatprep.subr.bf16.mxu0 %v6096_v56  ;;  %4782 = vmatprep.subr.bf16.mxu1 %v6099_v33 }
0x11df   : > { %4742 = vmatpush1.bf16.msra.mxu0 %v6094_v34  ;;  %4783 = vmatpush1.bf16.msra.mxu1 %v6097_v35 }
0x11e0   : > { %4743 = vmatprep.subr.bf16.mxu0 %v6102_v36  ;;  %4784 = vmatprep.subr.bf16.mxu1 %v6105_v55 }
0x11e3   : > { %4744 = vmatpush1.bf16.msra.mxu0 %v6100_v30  ;;  %4785 = vmatpush1.bf16.msra.mxu1 %v6103_v43 }
0x11e4   : > { %4745 = vmatprep.subr.bf16.mxu0 %v6108_v44  ;;  %4786 = vmatprep.subr.bf16.mxu1 %v6111_v45 }
0x11e7   : > { %4746 = vmatpush1.bf16.msra.mxu0 %v6106_v46  ;;  %4787 = vmatpush1.bf16.msra.mxu1 %v6109_v47 }
0x11e8   : > { %4747 = vmatprep.subr.bf16.mxu0 %v6114_v48  ;;  %4788 = vmatprep.subr.bf16.mxu1 %v6117_v49 }
0x11eb   : > { %4748 = vmatpush1.bf16.msra.mxu0 %v6112_v50  ;;  %4789 = vmatpush1.bf16.msra.mxu1 %v6115_v37 }
0x11ec   : > { %4749 = vmatprep.subr.bf16.mxu0 %v6120_v51  ;;  %4790 = vmatprep.subr.bf16.mxu1 %v6123_v4 }
0x11ef   : > { %4750 = vmatpush1.bf16.msra.mxu0 %v6118_v21  ;;  %4791 = vmatpush1.bf16.msra.mxu1 %v6121_v60 }
0x11f0   : > { %4751 = vmatprep.subr.bf16.mxu0 %v6126_v24  ;;  %4792 = vmatprep.subr.bf16.mxu1 %v6129_v59 }
0x11f3   : > { %4752 = vmatpush1.bf16.msra.mxu0 %v6124_v61  ;;  %4793 = vmatpush1.bf16.msra.mxu1 %v6127_v63 }
0x11f4   : > { %4753 = vmatprep.subr.bf16.mxu0 %v6132_v0  ;;  %4794 = vmatprep.subr.bf16.mxu1 %v6135_v2 }
0x11f7   : > { %4754 = vmatpush1.bf16.msra.mxu0 %v6130_v54  ;;  %4795 = vmatpush1.bf16.msra.mxu1 %v6133_v1 }
0x11f8   : > { %4805 = vmatprep.subr.bf16.mxu0 %v6138_v3  ;;  %4846 = vmatprep.subr.bf16.mxu1 %v6141_v5 }
0x124d   : > { %v3589_v13 = vpop.f32.mrb[40].mxu0  ;;  %v3630_v62 = vpop.f32.mrb[68].mxu1 }
0x124e   : > { %v7414_v14 = vadd.f32 %v3589_v13, %v2878_v9  ;;  %v7416_v15 = vadd.f32 %v3630_v62, %v2886_v10  ;;  %v3591_v16 = vpop.f32.mrb[41].mxu0  ;;  %v3632_v17 = vpop.f32.mrb[69].mxu1 }
0x124f   : > { %v7418_v18 = vadd.f32 %v3591_v16, %v2882_v11  ;;  %v7420_v19 = vadd.f32 %v3632_v17, %v2890_v12  ;;  %v3593_v20 = vpop.f32.mrb[42].mxu0  ;;  %v3634_v38 = vpop.f32.mrb[70].mxu1 }
0x1250   : > { %v7423_v42 = vmul.f32 0.70710677, %v7414_v14  ;;  %v7426_v22 = vmul.f32 0.70710677, %v7416_v15  ;;  %v3594_v34 = vpop.f32.mrb[43].mxu0  ;;  %v3635_v35 = vpop.f32.mrb[71].mxu1 }
0x1251   : > { %v7429_v23 = vmul.f32 0.70710677, %v7418_v18  ;;  %v7432_v25 = vmul.f32 0.70710677, %v7420_v19 }
0x1252   : > { %v3727_v26 = vand.u32 2147483647, %v7423_v42  ;;  %v3729_v53 = vand.u32 2147483647, %v7426_v22  ;;  %vm3887_vm4 = vcmp.ge.f32.partialorder %v7423_v42, 0.0  ;;  %vm3889_vm5 = vcmp.ge.f32.partialorder %v7426_v22, 0.0 }
0x1253   : > { %v3728_v28 = vand.u32 2147483647, %v7429_v23  ;;  %v3730_v58 = vand.u32 2147483647, %v7432_v25  ;;  %vm3888_vm6 = vcmp.ge.f32.partialorder %v7429_v23, 0.0  ;;  %vm3890_vm7 = vcmp.ge.f32.partialorder %v7432_v25, 0.0 }
0x1254   : > { %v3735_v31 = vmul.f32 0.3275911, %v3727_v26  ;;  %v3737_v29 = vmul.f32 0.3275911, %v3729_v53  ;;  %v3839_v30 = vsub.f32 0.0, %v3727_v26  ;;  %v3841_v43 = vsub.f32 0.0, %v3729_v53 }
0x1255   : > { %v3736_v27 = vmul.f32 0.3275911, %v3728_v28  ;;  %v3738_v33 = vmul.f32 0.3275911, %v3730_v58  ;;  %v3840_v46 = vsub.f32 0.0, %v3728_v28  ;;  %v3842_v37 = vsub.f32 0.0, %v3730_v58 }
0x1256   : > { %v3743_v32 = vadd.f32 1.0, %v3735_v31  ;;  %v3745_v56 = vadd.f32 1.0, %v3737_v29  ;;  %v3847_v45 = vmul.f32 %v3839_v30, %v3727_v26  ;;  %v3849_v49 = vmul.f32 %v3841_v43, %v3729_v53 }
0x1257   : > { %v3744_v36 = vadd.f32 1.0, %v3736_v27  ;;  %v3746_v55 = vadd.f32 1.0, %v3738_v33  ;;  %v3848_v24 = vmul.f32 %v3840_v46, %v3728_v28  ;;  %v3850_v1 = vmul.f32 %v3842_v37, %v3730_v58 }
0x1258   : > { %6266 = vrcp.f32 %v3743_v32  ;;  %v3855_v21 = vmul.f32 1.442695, %v3847_v45  ;;  %v3859_v61 = vmul.f32 1.442695, %v3849_v49  ;;  %v3913_v22 = vmul.f32 0.5, %v7416_v15 }
0x1259   : > { %6268 = vrcp.f32 %v3745_v56  ;;  %v3857_v8 = vmul.f32 1.442695, %v3848_v24  ;;  %v3861_v13 = vmul.f32 1.442695, %v3850_v1  ;;  %v2893_v25 = vsub.s32 4, %v7376_v39 }
0x125a   : > { %6270 = vrcp.f32 %v3744_v36  ;;  %v6147_v15 = vld [vmem:[#allocation11 + $0x314] ss:$8 sps:$4 sm:$0xff]  }
0x125b   : > { %6272 = vrcp.f32 %v3746_v55 }
0x125c   : > { %6274 = vpow2.f32 %v3855_v21 }
0x125d   : > { %6276 = vpow2.f32 %v3859_v61 }
0x125e   : > { %6278 = vpow2.f32 %v3857_v8 }
0x125f   : > { %6280 = vpow2.f32 %v3861_v13 }
0x1262   : > { %v6267_v44 = vpop.eup %6266 }
0x1263   : > { %v6269_v47 = vpop.eup %6268  ;;  %v3767_v48 = vmul.f32 1.0614054, %v6267_v44 }
0x1264   : > { %v3769_v50 = vmul.f32 1.0614054, %v6269_v47  ;;  %v6271_v4 = vpop.eup %6270 }
0x1265   : > { %v3775_v51 = vadd.f32 -1.4531521, %v3767_v48  ;;  %v3768_v63 = vmul.f32 1.0614054, %v6271_v4  ;;  %v6273_v0 = vpop.eup %6272 }
0x1266   : > { %v3777_v60 = vadd.f32 -1.4531521, %v3769_v50  ;;  %v3770_v5 = vmul.f32 1.0614054, %v6273_v0  ;;  %v6275_v34 = vpop.eup %6274 }
0x1267   : > { %v3783_v59 = vmul.f32 %v6267_v44, %v3775_v51  ;;  %v3776_v3 = vadd.f32 -1.4531521, %v3768_v63  ;;  %v6277_v36 = vpop.eup %6276 }
0x1268   : > { %v3785_v54 = vmul.f32 %v6269_v47, %v3777_v60  ;;  %v3778_v11 = vadd.f32 -1.4531521, %v3770_v5  ;;  %v6279_v50 = vpop.eup %6278 }
0x1269   : > { %v3791_v2 = vadd.f32 1.4214138, %v3783_v59  ;;  %v3784_v10 = vmul.f32 %v6271_v4, %v3776_v3  ;;  %v6281_v24 = vpop.eup %6280 }
0x126a   : > { %v3793_v6 = vadd.f32 1.4214138, %v3785_v54  ;;  %v3786_v17 = vmul.f32 %v6273_v0, %v3778_v11 }
0x126b   : > { %v3799_v9 = vmul.f32 %v6267_v44, %v3791_v2  ;;  %v3792_v16 = vadd.f32 1.4214138, %v3784_v10  ;;  %v3914_v10 = vmul.f32 0.5, %v7420_v19  ;;  %v2897_v19 = vsub.s32 5, %v7376_v39 }
0x126c   : > { %v3801_v12 = vmul.f32 %v6269_v47, %v3793_v6  ;;  %v3794_v53 = vadd.f32 1.4214138, %v3786_v17  ;;  %v3912_v6 = vmul.f32 0.5, %v7418_v18  ;;  %v6144_v17 = vld [vmem:[#allocation11 + $0x214] ss:$8 sps:$4 sm:$0xff]  }
0x126d   : > { %v3807_v62 = vadd.f32 -0.28449672, %v3799_v9  ;;  %v3800_v26 = vmul.f32 %v6271_v4, %v3792_v16  ;;  %v6139_v18 = vld [vmem:[#allocation11 + $0x300] ss:$8 sps:$4 sm:$0xff]  }
0x126e   : > { %v3809_v20 = vadd.f32 -0.28449672, %v3801_v12  ;;  %v3802_v29 = vmul.f32 %v6273_v0, %v3794_v53  ;;  %v2905_v53 = vsub.s32 7, %v7376_v39 }
0x126f   : > { %v3815_v38 = vmul.f32 %v6267_v44, %v3807_v62  ;;  %v3808_v31 = vadd.f32 -0.28449672, %v3800_v26 }
0x1270   : > { %v3817_v28 = vmul.f32 %v6269_v47, %v3809_v20  ;;  %v3810_v33 = vadd.f32 -0.28449672, %v3802_v29  ;;  %v2894_v29 = vrot.slane %v7405_v7, %v2893_v25 }
0x1271   : > { %v3823_v58 = vadd.f32 0.2548296, %v3815_v38  ;;  %v3816_v56 = vmul.f32 %v6271_v4, %v3808_v31  ;;  %v2901_v38 = vsub.s32 6, %v7376_v39  ;;  %v6145_v31 = vld [vmem:[#allocation11 + $0x310] ss:$8 sps:$4 sm:$0xff]  }
0x1272   : > { %v3825_v27 = vadd.f32 0.2548296, %v3817_v28  ;;  %v3818_v43 = vmul.f32 %v6273_v0, %v3810_v33  ;;  %v6142_v28 = vld [vmem:[#allocation11 + $0x210] ss:$8 sps:$4 sm:$0xff]   ;;  %v2906_v33 = vrot.slane %v7405_v7, %v2905_v53  ;;  %v6148_v39 = vld [vmem:[#allocation11 + $0x220] ss:$8 sps:$4 sm:$0xff]  }
0x1273   : > { %v3831_v32 = vmul.f32 %v6267_v44, %v3823_v58  ;;  %v3824_v30 = vadd.f32 0.2548296, %v3816_v56  ;;  %v6150_v58 = vld [vmem:[#allocation11 + $0x224] ss:$8 sps:$4 sm:$0xff]   ;;  %v2898_v56 = vrot.slane %v7405_v7, %v2897_v19  ;;  %v6178_v19 = vld [vmem:[#allocation11 + $0x270] ss:$8 sps:$4 sm:$0xff]  }
0x1274   : > { %v3833_v35 = vmul.f32 %v6269_v47, %v3825_v27  ;;  %v3826_v49 = vadd.f32 0.2548296, %v3818_v43  ;;  %v2902_v27 = vrot.slane %v7405_v7, %v2901_v38  ;;  %v6175_v38 = vld [vmem:[#allocation11 + $0x360] ss:$8 sps:$4 sm:$0xff]   ;;  %v6186_v53 = vld [vmem:[#allocation11 + $0x284] ss:$8 sps:$4 sm:$0xff]  }
0x1275   : > { %v3871_v55 = vmul.f32 %v6275_v34, %v3831_v32  ;;  %v3832_v48 = vmul.f32 %v6271_v4, %v3824_v30  ;;  %v3911_v4 = vmul.f32 0.5, %v7414_v14  ;;  %v6136_v14 = vld [vmem:[#allocation11 + $0x200] ss:$8 sps:$4 sm:$0xff]   ;;  %v6153_v32 = vld [vmem:[#allocation11 + $0x324] ss:$8 sps:$4 sm:$0xff]  }
0x1276   : > { %v3873_v45 = vmul.f32 %v6277_v36, %v3833_v35  ;;  %v3834_v60 = vmul.f32 %v6273_v0, %v3826_v49  ;;  %v6156_v36 = vld [vmem:[#allocation11 + $0x234] ss:$8 sps:$4 sm:$0xff]  }
0x1277   : > { %v3879_v46 = vsub.f32 1.0, %v3871_v55  ;;  %v3872_v21 = vmul.f32 %v6279_v50, %v3832_v48  ;;  %v6151_v55 = vld [vmem:[#allocation11 + $0x320] ss:$8 sps:$4 sm:$0xff]  }
0x1278   : > { %v3881_v37 = vsub.f32 1.0, %v3873_v45  ;;  %v3874_v61 = vmul.f32 %v6281_v24, %v3834_v60  ;;  %v6154_v60 = vld [vmem:[#allocation11 + $0x230] ss:$8 sps:$4 sm:$0xff]  }
0x1279   : > { %v3895_v51 = vsub.f32 0.0, %v3879_v46  ;;  %v3880_v47 = vsub.f32 1.0, %v3872_v21 }
0x127a   : > { %v3897_v44 = vsub.f32 0.0, %v3881_v37  ;;  %v3882_v2 = vsub.f32 1.0, %v3874_v61 }
0x127b   : > { %v3903_v59 = vsel %vm3887_vm4, %v3879_v46, %v3895_v51  ;;  %v3896_v1 = vsub.f32 0.0, %v3880_v47 }
0x127c   : > { %v3905_v63 = vsel %vm3889_vm5, %v3881_v37, %v3897_v44  ;;  %v3919_v54 = vadd.f32 1.0, %v3903_v59  ;;  %v3898_v0 = vsub.f32 0.0, %v3882_v2  ;;  %v6159_v37 = vld [vmem:[#allocation11 + $0x334] ss:$8 sps:$4 sm:$0xff]   ;;  %v6162_v59 = vld [vmem:[#allocation11 + $0x244] ss:$8 sps:$4 sm:$0xff]  }
0x127d   : > { %v3921_v3 = vadd.f32 1.0, %v3905_v63  ;;  %v3904_v5 = vsel %vm3888_vm6, %v3880_v47, %v3896_v1  ;;  %v6157_v63 = vld [vmem:[#allocation11 + $0x330] ss:$8 sps:$4 sm:$0xff]  }
0x127e   : > { %v3920_v42 = vadd.f32 1.0, %v3904_v5  ;;  %v3927_v8 = vmul.f32 %v3919_v54, %v3911_v4  ;;  %v3906_v9 = vsel %vm3890_vm7, %v3882_v2, %v3898_v0  ;;  %v6165_v2 = vld [vmem:[#allocation11 + $0x344] ss:$8 sps:$4 sm:$0xff]   ;;  %v6160_v5 = vld [vmem:[#allocation11 + $0x240] ss:$8 sps:$4 sm:$0xff]  }
0x127f   : > { %v3922_v12 = vadd.f32 1.0, %v3906_v9  ;;  %v3929_v13 = vmul.f32 %v3921_v3, %v3913_v22 }
0x1280   : > { %v3928_v11 = vmul.f32 %v3920_v42, %v3912_v6  ;;  %v3935_v16 = vpack.c.bf16 %v3927_v8, %v3927_v8  ;;  %v6163_v6 = vld [vmem:[#allocation11 + $0x340] ss:$8 sps:$4 sm:$0xff]   ;;  %v6168_v42 = vld [vmem:[#allocation11 + $0x254] ss:$8 sps:$4 sm:$0xff]  }
0x1281   : > { %v3930_v62 = vmul.f32 %v3922_v12, %v3914_v10  ;;  %v3937_v26 = vpack.c.bf16 %v3929_v13, %v3929_v13  ;;  %v6171_v12 = vld [vmem:[#allocation11 + $0x354] ss:$8 sps:$4 sm:$0xff]  }
0x1282   : > { %v3936_v23 = vpack.c.bf16 %v3928_v11, %v3928_v11 }
0x1283   : > { %v3938_v20 = vpack.c.bf16 %v3930_v62, %v3930_v62  ;;  %v6174_v62 = vld [vmem:[#allocation11 + $0x264] ss:$8 sps:$4 sm:$0xff]  }
0x1284   : > { %4755 = vmatprep.mubr.bf16.mxu0 %v3936_v23  ;;  %v6166_v23 = vld [vmem:[#allocation11 + $0x250] ss:$8 sps:$4 sm:$0xff]  }
0x1285   : > { %4756 = vmatmul.mubr.bf16.vlgmr.msra.gmra.mrb[48].mxu0 %v3935_v16  ;;  %4796 = vmatprep.mubr.bf16.mxu1 %v3938_v20  ;;  %v6169_v16 = vld [vmem:[#allocation11 + $0x350] ss:$8 sps:$4 sm:$0xff]   ;;  %v6172_v20 = vld [vmem:[#allocation11 + $0x260] ss:$8 sps:$4 sm:$0xff]  }
0x1286   : > { %4806 = vmatpush1.bf16.msra.mxu0 %v6136_v14  ;;  %4797 = vmatmul.mubr.bf16.vlgmr.msra.gmra.mrb[76].mxu1 %v3937_v26 }
0x1287   : > { %4807 = vmatprep.subr.bf16.mxu0 %v6144_v17  ;;  %4847 = vmatpush1.bf16.msra.mxu1 %v6139_v18  ;;  %v6177_v17 = vld [vmem:[#allocation11 + $0x364] ss:$8 sps:$4 sm:$0xff]   ;;  %v6180_v18 = vld [vmem:[#allocation11 + $0x274] ss:$8 sps:$4 sm:$0xff]  }
0x1288   : > { %4848 = vmatprep.subr.bf16.mxu1 %v6147_v15  ;;  %v6183_v15 = vld [vmem:[#allocation11 + $0x374] ss:$8 sps:$4 sm:$0xff]  }
0x128a   : > { %4808 = vmatpush1.bf16.msra.mxu0 %v6142_v28 }
0x128b   : > { %4809 = vmatprep.subr.bf16.mxu0 %v6150_v58  ;;  %4849 = vmatpush1.bf16.msra.mxu1 %v6145_v31 }
0x128c   : > { %4850 = vmatprep.subr.bf16.mxu1 %v6153_v32 }
0x128d   : > { %v3671_v34 = vpop.f32.mrb[44].mxu0  ;;  %v3712_v35 = vpop.f32.mrb[72].mxu1 }
0x128e   : > { %v7454_v30 = vadd.f32 %v3671_v34, %v2894_v29  ;;  %v7456_v43 = vadd.f32 %v3712_v35, %v2902_v27  ;;  %v3673_v45 = vpop.f32.mrb[45].mxu0  ;;  %v3714_v46 = vpop.f32.mrb[73].mxu1  ;;  %4810 = vmatpush1.bf16.msra.mxu0 %v6148_v39  ;;  %v6181_v29 = vld [vmem:[#allocation11 + $0x370] ss:$8 sps:$4 sm:$0xff]   ;;  %v6184_v35 = vld [vmem:[#allocation11 + $0x280] ss:$8 sps:$4 sm:$0xff]  }
0x128f   : > { %v7458_v48 = vadd.f32 %v3673_v45, %v2898_v56  ;;  %v7460_v49 = vadd.f32 %v3714_v46, %v2906_v33  ;;  %v3675_v7 = vpop.f32.mrb[46].mxu0  ;;  %v3716_v50 = vpop.f32.mrb[74].mxu1  ;;  %4811 = vmatprep.subr.bf16.mxu0 %v6156_v36  ;;  %4851 = vmatpush1.bf16.msra.mxu1 %v6151_v55  ;;  %v6189_v33 = vld [vmem:[#allocation11 + $0x384] ss:$8 sps:$4 sm:$0xff]   ;;  %v6192_v55 = vld [vmem:[#allocation11 + $0x294] ss:$8 sps:$4 sm:$0xff]  }
0x1290   : > { %v7463_v51 = vmul.f32 0.70710677, %v7454_v30  ;;  %v7466_v21 = vmul.f32 0.70710677, %v7456_v43  ;;  %4852 = vmatprep.subr.bf16.mxu1 %v6159_v37  ;;  %v3676_v10 = vpop.f32.mrb[47].mxu0  ;;  %v3717_v11 = vpop.f32.mrb[75].mxu1 }
0x1291   : > { %v7469_v24 = vmul.f32 0.70710677, %v7458_v48  ;;  %v7472_v44 = vmul.f32 0.70710677, %v7460_v49  ;;  %v6187_v37 = vld [vmem:[#allocation11 + $0x380] ss:$8 sps:$4 sm:$0xff]  }
0x1292   : > { %v3731_v47 = vand.u32 2147483647, %v7463_v51  ;;  %v3733_v61 = vand.u32 2147483647, %v7466_v21  ;;  %4812 = vmatpush1.bf16.msra.mxu0 %v6154_v60  ;;  %v6201_v10 = vld [vmem:[#allocation11 + $0x3a4] ss:$8 sps:$4 sm:$0xff]  }
0x1293   : > { %v7477_v54 = vand.u32 2147483647, %v7469_v24  ;;  %v7480_v1 = vand.u32 2147483647, %v7472_v44  ;;  %4813 = vmatprep.subr.bf16.mxu0 %v6162_v59  ;;  %4853 = vmatpush1.bf16.msra.mxu1 %v6157_v63  ;;  %vm3891_vm8 = vcmp.ge.f32.partialorder %v7463_v51, 0.0  ;;  %vm3893_vm9 = vcmp.ge.f32.partialorder %v7466_v21, 0.0 }
0x1294   : > { %v3739_v4 = vmul.f32 0.3275911, %v3731_v47  ;;  %v3741_v3 = vmul.f32 0.3275911, %v3733_v61  ;;  %4854 = vmatprep.subr.bf16.mxu1 %v6165_v2  ;;  %v3843_v25 = vsub.f32 0.0, %v3731_v47  ;;  %v3845_v26 = vsub.f32 0.0, %v3733_v61 }
0x1295   : > { %v3740_v0 = vmul.f32 0.3275911, %v7477_v54  ;;  %v3742_v9 = vmul.f32 0.3275911, %v7480_v1  ;;  %v3844_v31 = vsub.f32 0.0, %v7477_v54  ;;  %v3846_v34 = vsub.f32 0.0, %v7480_v1 }
0x1296   : > { %v3747_v8 = vadd.f32 1.0, %v3739_v4  ;;  %v3749_v22 = vadd.f32 1.0, %v3741_v3  ;;  %4814 = vmatpush1.bf16.msra.mxu0 %v6160_v5  ;;  %v3851_v58 = vmul.f32 %v3843_v25, %v3731_v47  ;;  %v3853_v56 = vmul.f32 %v3845_v26, %v3733_v61  ;;  %v6195_v47 = vld [vmem:[#allocation11 + $0x394] ss:$8 sps:$4 sm:$0xff]   ;;  %v6190_v3 = vld [vmem:[#allocation11 + $0x290] ss:$8 sps:$4 sm:$0xff]  }
0x1297   : > { %v3748_v13 = vadd.f32 1.0, %v3740_v0  ;;  %4815 = vmatprep.subr.bf16.mxu0 %v6168_v42  ;;  %v3750_v14 = vadd.f32 1.0, %v3742_v9  ;;  %4855 = vmatpush1.bf16.msra.mxu1 %v6163_v6  ;;  %v3852_v50 = vmul.f32 %v3844_v31, %v7477_v54  ;;  %v3854_v4 = vmul.f32 %v3846_v34, %v7480_v1  ;;  %v6198_v5 = vld [vmem:[#allocation11 + $0x2a4] ss:$8 sps:$4 sm:$0xff]   ;;  %v6223_v51 = vld [vmem:[#allocation11 + $0x3e0] ss:$8 sps:$4 sm:$0xff]  }
0x1298   : > { %6282 = vrcp.f32 %v3747_v8  ;;  %4856 = vmatprep.subr.bf16.mxu1 %v6171_v12  ;;  %v3863_v46 = vmul.f32 1.442695, %v3851_v58  ;;  %v3867_v59 = vmul.f32 1.442695, %v3853_v56  ;;  %v6210_v31 = vld [vmem:[#allocation11 + $0x2c4] ss:$8 sps:$4 sm:$0xff]  }
0x1299   : > { %6284 = vrcp.f32 %v3749_v22  ;;  %v3865_v8 = vmul.f32 1.442695, %v3852_v50  ;;  %v6193_v22 = vld [vmem:[#allocation11 + $0x390] ss:$8 sps:$4 sm:$0xff]   ;;  %v6213_v34 = vld [vmem:[#allocation11 + $0x3c4] ss:$8 sps:$4 sm:$0xff]  }
0x129a   : > { %6286 = vrcp.f32 %v3748_v13  ;;  %4816 = vmatpush1.bf16.msra.mxu0 %v6166_v23  ;;  %v3869_v13 = vmul.f32 1.442695, %v3854_v4  ;;  %v6196_v23 = vld [vmem:[#allocation11 + $0x2a0] ss:$8 sps:$4 sm:$0xff]   ;;  %v6219_v4 = vld [vmem:[#allocation11 + $0x3d4] ss:$8 sps:$4 sm:$0xff]  }
0x129b   : > { %4817 = vmatprep.subr.bf16.mxu0 %v6174_v62  ;;  %6288 = vrcp.f32 %v3750_v14  ;;  %4857 = vmatpush1.bf16.msra.mxu1 %v6169_v16  ;;  %v6204_v14 = vld [vmem:[#allocation11 + $0x2b4] ss:$8 sps:$4 sm:$0xff]   ;;  %vm3892_vm10 = vcmp.ge.f32.partialorder %v7469_v24, 0.0  ;;  %vm3894_vm11 = vcmp.ge.f32.partialorder %v7472_v44, 0.0 }
0x129c   : > { %4858 = vmatprep.subr.bf16.mxu1 %v6177_v17  ;;  %6290 = vpow2.f32 %v3863_v46  ;;  %v6231_v21 = vld [vmem:[#allocation11 + $0x3f4] ss:$8 sps:$4 sm:$0xff]  }
0x129d   : > { %6292 = vpow2.f32 %v3867_v59 }
0x129e   : > { %4818 = vmatpush1.bf16.msra.mxu0 %v6172_v20  ;;  %6294 = vpow2.f32 %v3865_v8 }
0x129f   : > { %4819 = vmatprep.subr.bf16.mxu0 %v6180_v18  ;;  %4859 = vmatpush1.bf16.msra.mxu1 %v6175_v38  ;;  %v6199_v18 = vld [vmem:[#allocation11 + $0x3a0] ss:$8 sps:$4 sm:$0xff]   ;;  %v6207_v38 = vld [vmem:[#allocation11 + $0x3b4] ss:$8 sps:$4 sm:$0xff]   ;;  %6296 = vpow2.f32 %v3869_v13 }
0x12a0   : > { %4860 = vmatprep.subr.bf16.mxu1 %v6183_v15 }
0x12a2   : > { %v7484_v28 = vpop.eup %6282  ;;  %4820 = vmatpush1.bf16.msra.mxu0 %v6178_v19 }
0x12a3   : > { %v7487_v27 = vpop.eup %6284  ;;  %v3771_v32 = vmul.f32 1.0614054, %v7484_v28  ;;  %4821 = vmatprep.subr.bf16.mxu0 %v6186_v53  ;;  %4861 = vmatpush1.bf16.msra.mxu1 %v6181_v29  ;;  %v6202_v53 = vld [vmem:[#allocation11 + $0x2b0] ss:$8 sps:$4 sm:$0xff]  }
0x12a4   : > { %v3773_v39 = vmul.f32 1.0614054, %v7487_v27  ;;  %v7492_v45 = vpop.eup %6286  ;;  %4862 = vmatprep.subr.bf16.mxu1 %v6189_v33  ;;  %v6205_v33 = vld [vmem:[#allocation11 + $0x3b0] ss:$8 sps:$4 sm:$0xff]  }
0x12a5   : > { %v3779_v36 = vadd.f32 -1.4531521, %v3771_v32  ;;  %v3772_v61 = vmul.f32 1.0614054, %v7492_v45  ;;  %v7497_v63 = vpop.eup %6288 }
0x12a6   : > { %v3781_v7 = vadd.f32 -1.4531521, %v3773_v39  ;;  %4822 = vmatpush1.bf16.msra.mxu0 %v6184_v35  ;;  %v3774_v6 = vmul.f32 1.0614054, %v7497_v63 }
0x12a7   : > { %v3787_v60 = vmul.f32 %v7484_v28, %v3779_v36  ;;  %4823 = vmatprep.subr.bf16.mxu0 %v6192_v55  ;;  %v3780_v54 = vadd.f32 -1.4531521, %v3772_v61  ;;  %4863 = vmatpush1.bf16.msra.mxu1 %v6187_v37  ;;  %v6291_v55 = vpop.eup %6290 }
0x12a8   : > { %v3789_v2 = vmul.f32 %v7487_v27, %v3781_v7  ;;  %4864 = vmatprep.subr.bf16.mxu1 %v6195_v47  ;;  %v3782_v11 = vadd.f32 -1.4531521, %v3774_v6  ;;  %v6208_v7 = vld [vmem:[#allocation11 + $0x2c0] ss:$8 sps:$4 sm:$0xff]   ;;  %v6293_v50 = vpop.eup %6292 }
0x12a9   : > { %v3795_v0 = vadd.f32 1.4214138, %v3787_v60  ;;  %v3788_v1 = vmul.f32 %v7492_v45, %v3780_v54  ;;  %v6216_v60 = vld [vmem:[#allocation11 + $0x2d4] ss:$8 sps:$4 sm:$0xff]   ;;  %v6214_v54 = vld [vmem:[#allocation11 + $0x2d0] ss:$8 sps:$4 sm:$0xff]  }
0x12aa   : > { %v3797_v42 = vadd.f32 1.4214138, %v3789_v2  ;;  %4824 = vmatpush1.bf16.msra.mxu0 %v6190_v3  ;;  %v3790_v17 = vmul.f32 %v7497_v63, %v3782_v11 }
0x12ab   : > { %v3803_v9 = vmul.f32 %v7484_v28, %v3795_v0  ;;  %4825 = vmatprep.subr.bf16.mxu0 %v6198_v5  ;;  %v3796_v16 = vadd.f32 1.4214138, %v3788_v1  ;;  %4865 = vmatpush1.bf16.msra.mxu1 %v6193_v22  ;;  %v6295_v0 = vpop.eup %6294  ;;  %v6217_v1 = vld [vmem:[#allocation11 + $0x3d0] ss:$8 sps:$4 sm:$0xff]  }
0x12ac   : > { %v3805_v12 = vmul.f32 %v7487_v27, %v3797_v42  ;;  %4866 = vmatprep.subr.bf16.mxu1 %v6201_v10  ;;  %v3798_v15 = vadd.f32 1.4214138, %v3790_v17  ;;  %v6222_v42 = vld [vmem:[#allocation11 + $0x2e4] ss:$8 sps:$4 sm:$0xff]  }
0x12ad   : > { %v3811_v62 = vadd.f32 -0.28449672, %v3803_v9  ;;  %v3804_v26 = vmul.f32 %v7492_v45, %v3796_v16  ;;  %v6297_v9 = vpop.eup %6296  ;;  %v6228_v16 = vld [vmem:[#allocation11 + $0x2f4] ss:$8 sps:$4 sm:$0xff]  }
0x12ae   : > { %v3813_v20 = vadd.f32 -0.28449672, %v3805_v12  ;;  %4826 = vmatpush1.bf16.msra.mxu0 %v6196_v23  ;;  %v3806_v32 = vmul.f32 %v7497_v63, %v3798_v15  ;;  %v6226_v15 = vld [vmem:[#allocation11 + $0x2f0] ss:$8 sps:$4 sm:$0xff]  }
0x12af   : > { %v3819_v25 = vmul.f32 %v7484_v28, %v3811_v62  ;;  %4827 = vmatprep.subr.bf16.mxu0 %v6204_v14  ;;  %v3812_v29 = vadd.f32 -0.28449672, %v3804_v26  ;;  %4867 = vmatpush1.bf16.msra.mxu1 %v6199_v18  ;;  %v6220_v62 = vld [vmem:[#allocation11 + $0x2e0] ss:$8 sps:$4 sm:$0xff]   ;;  %v3916_v26 = vmul.f32 0.5, %v7458_v48 }
0x12b0   : > { %v3821_v19 = vmul.f32 %v7487_v27, %v3813_v20  ;;  %4868 = vmatprep.subr.bf16.mxu1 %v6207_v38  ;;  %v3814_v36 = vadd.f32 -0.28449672, %v3806_v32  ;;  %v3915_v20 = vmul.f32 0.5, %v7454_v30  ;;  %v6229_v30 = vld [vmem:[#allocation11 + $0x3f0] ss:$8 sps:$4 sm:$0xff]  }
0x12b1   : > { %v3827_v58 = vadd.f32 0.2548296, %v3819_v25  ;;  %v3820_v35 = vmul.f32 %v7492_v45, %v3812_v29 }
0x12b2   : > { %v3829_v56 = vadd.f32 0.2548296, %v3821_v19  ;;  %4828 = vmatpush1.bf16.msra.mxu0 %v6202_v53  ;;  %v3822_v47 = vmul.f32 %v7497_v63, %v3814_v36 }
0x12b3   : > { %v3835_v39 = vmul.f32 %v7484_v28, %v3827_v58  ;;  %4829 = vmatprep.subr.bf16.mxu0 %v6210_v31  ;;  %v3828_v59 = vadd.f32 0.2548296, %v3820_v35  ;;  %4869 = vmatpush1.bf16.msra.mxu1 %v6205_v33  ;;  %v6211_v28 = vld [vmem:[#allocation11 + $0x3c0] ss:$8 sps:$4 sm:$0xff]   ;;  %v3917_v58 = vmul.f32 0.5, %v7456_v43  ;;  %v3918_v31 = vmul.f32 0.5, %v7460_v49 }
0x12b4   : > { %v3837_v46 = vmul.f32 %v7487_v27, %v3829_v56  ;;  %4870 = vmatprep.subr.bf16.mxu1 %v6213_v34  ;;  %v3830_v5 = vadd.f32 0.2548296, %v3822_v47  ;;  %v4071_v43 = vld [vmem:[#allocation13] sm:$0x3] }
0x12b5   : > { %v3875_v37 = vmul.f32 %v6291_v55, %v3835_v39  ;;  %v3836_v3 = vmul.f32 %v7492_v45, %v3828_v59  ;;  %v6225_v45 = vld [vmem:[#allocation11 + $0x3e4] ss:$8 sps:$4 sm:$0xff]   ;;  %v4076_v49 = vrot.slane %v4071_v43, %v7382_v41  ;;  %v4080_v35 = vrot.slane %v4071_v43, %v7379_v40 }
0x12b6   : > { %v3877_v61 = vmul.f32 %v6293_v50, %v3837_v46  ;;  %4830 = vmatpush1.bf16.msra.mxu0 %v6208_v7  ;;  %v3838_v22 = vmul.f32 %v7497_v63, %v3830_v5 }
0x12b7   : > { %v3883_v2 = vsub.f32 1.0, %v3875_v37  ;;  %4831 = vmatprep.subr.bf16.mxu0 %v6216_v60  ;;  %v3876_v8 = vmul.f32 %v6295_v0, %v3836_v3  ;;  %4871 = vmatpush1.bf16.msra.mxu1 %v6211_v28 }
0x12b8   : > { %v3885_v27 = vsub.f32 1.0, %v3877_v61  ;;  %4872 = vmatprep.subr.bf16.mxu1 %v6219_v4  ;;  %v3878_v13 = vmul.f32 %v6297_v9, %v3838_v22 }
0x12b9   : > { %v3899_v6 = vsub.f32 0.0, %v3883_v2  ;;  %v3884_v12 = vsub.f32 1.0, %v3876_v8 }
0x12ba   : > { %v3901_v10 = vsub.f32 0.0, %v3885_v27  ;;  %4832 = vmatpush1.bf16.msra.mxu0 %v6214_v54  ;;  %v3886_v17 = vsub.f32 1.0, %v3878_v13 }
0x12bb   : > { %v3907_v11 = vsel %vm3891_vm8, %v3883_v2, %v3899_v6  ;;  %4833 = vmatprep.subr.bf16.mxu0 %v6222_v42  ;;  %v3900_v63 = vsub.f32 0.0, %v3884_v12  ;;  %4873 = vmatpush1.bf16.msra.mxu1 %v6217_v1 }
0x12bc   : > { %v3909_v23 = vsel %vm3893_vm9, %v3885_v27, %v3901_v10  ;;  %v3923_v14 = vadd.f32 1.0, %v3907_v11  ;;  %4874 = vmatprep.subr.bf16.mxu1 %v6225_v45  ;;  %v3902_v38 = vsub.f32 0.0, %v3886_v17 }
0x12bd   : > { %v3925_v18 = vadd.f32 1.0, %v3909_v23  ;;  %v3908_v25 = vsel %vm3892_vm10, %v3884_v12, %v3900_v63 }
0x12be   : > { %4834 = vmatpush1.bf16.msra.mxu0 %v6220_v62  ;;  %v3924_v19 = vadd.f32 1.0, %v3908_v25  ;;  %v3931_v53 = vmul.f32 %v3923_v14, %v3915_v20  ;;  %v3910_v24 = vsel %vm3894_vm11, %v3886_v17, %v3902_v38 }
0x12bf   : > { %4835 = vmatprep.subr.bf16.mxu0 %v6228_v16  ;;  %4875 = vmatpush1.bf16.msra.mxu1 %v6223_v51  ;;  %v3926_v32 = vadd.f32 1.0, %v3910_v24  ;;  %v3933_v56 = vmul.f32 %v3925_v18, %v3917_v58  ;;  %v4890_v18 = vld [vmem:[#allocation19] sm:$0x3] }
0x12c0   : > { %v3932_v29 = vmul.f32 %v3924_v19, %v3916_v26  ;;  %4876 = vmatprep.subr.bf16.mxu1 %v6231_v21  ;;  %v3939_v44 = vpack.c.bf16 %v3931_v53, %v3931_v53  ;;  %v4926_v53 = vrot.slane %v4890_v18, %v7382_v41  ;;  %v4930_v58 = vrot.slane %v4890_v18, %v7379_v40 }
0x12c1   : > { %v3934_v33 = vmul.f32 %v3926_v32, %v3918_v31  ;;  %v3941_v34 = vpack.c.bf16 %v3933_v56, %v3933_v56 }
0x12c2   : > { %4836 = vmatpush1.bf16.msra.mxu0 %v6226_v15  ;;  %v3940_v48 = vpack.c.bf16 %v3932_v29, %v3932_v29 }
0x12c3   : > { %4877 = vmatpush1.bf16.msra.mxu1 %v6229_v30  ;;  %v3942_v39 = vpack.c.bf16 %v3934_v33, %v3934_v33 }
0x12c4   : > { %4837 = vmatprep.mubr.bf16.mxu0 %v3940_v48 }
0x12c5   : > { %4838 = vmatmul.mubr.bf16.vlgmr.msra.gmra.mrb[52].mxu0 %v3939_v44  ;;  %4878 = vmatprep.mubr.bf16.mxu1 %v3942_v39 }
0x12c6   : > { %4879 = vmatmul.mubr.bf16.vlgmr.msra.gmra.mrb[80].mxu1 %v3941_v34 }
0x1358   : > { %v4757_v36 = vpop.f32.mrb[48].mxu0 }
0x1359   : > { %v4758_v55 = vadd.f32 %v4757_v36, %v4076_v49  ;;  %v4759_v46 = vpop.f32.mrb[49].mxu0  ;;  %v4798_v7 = vpop.f32.mrb[76].mxu1 }
0x135a   : > { %v4760_v50 = vadd.f32 %v4759_v46, %v4080_v35  ;;  %v4761_v37 = vpop.f32.mrb[50].mxu0  ;;  %v4800_v59 = vpop.f32.mrb[77].mxu1 }
0x135b   : > { %v4799_v60 = vadd.f32 %v4798_v7, %v4758_v55  ;;  %v4762_v47 = vpop.f32.mrb[51].mxu0  ;;  %v4802_v28 = vpop.f32.mrb[78].mxu1 }
0x135c   : > { %v4801_v61 = vadd.f32 %v4800_v59, %v4760_v50  ;;  %v4803_v2 = vpop.f32.mrb[79].mxu1 }
0x1398   : > { %v4839_v4 = vpop.f32.mrb[52].mxu0 }
0x1399   : > { %v4840_v3 = vadd.f32 %v4839_v4, %v4799_v60  ;;  %v4841_v5 = vpop.f32.mrb[53].mxu0  ;;  %v4880_v0 = vpop.f32.mrb[80].mxu1 }
0x139a   : > { %v4842_v27 = vadd.f32 %v4841_v5, %v4801_v61  ;;  %v4843_v54 = vpop.f32.mrb[54].mxu0  ;;  %v4882_v42 = vpop.f32.mrb[81].mxu1 }
0x139b   : > { %v4881_v6 = vadd.f32 %v4880_v0, %v4840_v3  ;;  %v4844_v8 = vpop.f32.mrb[55].mxu0  ;;  %v4884_v9 = vpop.f32.mrb[82].mxu1 }
0x139c   : > { %v4883_v22 = vadd.f32 %v4882_v42, %v4842_v27  ;;  %v4885_v1 = vpop.f32.mrb[83].mxu1 }
0x139d   : > { %v4887_v10 = vadd.f32 %v4881_v6, %v7392_v57  ;;  %v4889_v57 = vld [vmem:[#allocation17] sm:$0x3] }
0x139e   : > { %v4888_v11 = vadd.f32 %v4883_v22, %v7390_v52  ;;  %v4913_v25 = vrot.slane %v4889_v57, %v7382_v41  ;;  %v4917_v38 = vrot.slane %v4889_v57, %v7379_v40 }
0x139f   : > { %v4895_v12 = vmul.f32 %v4887_v10, %v4887_v10 }
0x13a0   : > { %v4891_v45 = vadd.f32 %v4888_v11, %v4887_v10  ;;  %v4896_v13 = vmul.f32 %v4888_v11, %v4888_v11 }
0x13a2   : > { %4892 = vadd.xlane.f32.xlu0 %v4891_v45  ;;  %v4897_v23 = vadd.f32 %v4896_v13, %v4895_v12 }
0x13a6   : > { %4898 = vadd.xlane.f32.xlu0 %v4897_v23 }
0x142f   : > { %v4893_v62 = vpop.xlane.xlu0 %4892 }
0x1430   : > { %v4894_v14 = vmul.f32 0.00390625, %v4893_v62 }
0x1432   : > { %v4901_v63 = vmul.f32 %v4894_v14, %v4894_v14  ;;  %v4903_v21 = vsub.f32 %v4887_v10, %v4894_v14  ;;  %v4904_v52 = vsub.f32 %v4888_v11, %v4894_v14 }
0x1433   : > { %v4899_v16 = vpop.xlane.xlu0 %4898 }
0x1434   : > { %v4900_v17 = vmul.f32 0.00390625, %v4899_v16 }
0x1436   : > { %v4902_v51 = vsub.f32 %v4900_v17, %v4901_v63 }
0x1438   : > { %v4905_v20 = vadd.f32 1e-05, %v4902_v51 }
0x143a   : > { %6298 = vrsqrt.f32 %v4905_v20 }
0x1444   : > { %v6299_v26 = vpop.eup %6298 }
0x1445   : > { %v4907_v15 = vmul.f32 %v6299_v26, %v4903_v21  ;;  %v4908_v19 = vmul.f32 %v6299_v26, %v4904_v52 }
0x1447   : > { %v4920_v24 = vmul.f32 %v4913_v25, %v4907_v15  ;;  %v4921_v31 = vmul.f32 %v4917_v38, %v4908_v19 }
0x1449   : > { %v4933_v30 = vadd.f32 %v4926_v53, %v4920_v24  ;;  %v4934_v29 = vadd.f32 %v4930_v58, %v4921_v31 }
0x144b   : > { %4935 = vst [vmem:[%s535_s28] sm:$0xff] %v4933_v30  ;;  %4936 = vst [vmem:[%s535_s28 + $0x8] sm:$0xff] %v4934_v29 }
0x144c   : > { %6625 = shalt.err (!%p6622_p8)
}
0x144d   : > { %s6626_s13 = scalar_lea.hbm %s7538_s16, 256  ;;  %s6630_s28 = scalar_lea.hbm %s7626_s2, 512 }
0x144e   : > { %p6627_p0 = scmp.ne.s32.totalorder %s7538_s16, %s6626_s13  ;;  %p6631_p5 = scmp.lt.u32.totalorder %s7538_s16, %s7626_s2 }
0x144f   : > { %p6632_p10 = scmp.lt.u32.totalorder %s6630_s28, %s6626_s13  ;;  %p6634_p11 = scmp.lt.u32.totalorder %s6626_s13, %s7538_s16 }
0x1450   : > { %p6628_p2 = pnand %p6627_p0, %p7627_p12 }
0x1451   : > { %p6633_p1 = por %p6632_p10, %p6631_p5 }
0x1452   : > { %p6629_p6 = pneg %p6628_p2 }
0x1453   : > { %p6635_p13 = por %p6634_p11, %p6633_p1 }
0x1455   : > { %p6636_p3 = pnand %p6635_p13, %p6629_p6 }
0x1457   : > { %6639 = shalt.err (!%p6636_p3)
}
0x1458   : > { %5731 = dma.vmem_to_hbm [thread:$0]  (%p7627_p12), %s7540_s25, 256, %s7538_s16, %s4938_s23  }
0x1459 PF: > { %s4964_s29 = sand.u32 1, %s6686_s17   ;;  %p7628_p7 = scmp.ne.s32.totalorder %s7612_s26, 0 }
0x145a   : > { %p7629_p9 = scmp.ge.s32.totalorder %s6698_s20, 2  ;;  %s4965_s24 = scalar_lea.sflag [#allocation4], %s4964_s29 }
0x145c   : > { %p5769_p4 = pnand %p7629_p9, %p7628_p7 }
0x145e   : > { %6681 = dma.done.wait (!%p5769_p4), %s4965_s24, 256  }
0x145f   : > { %6683 = vsyncadd (!%p5769_p4), %s4965_s24, 4294967040  ;;  %p29_p8 = scmp.ge.s32.totalorder %s7059_s14, 4   ;;  %s7630_s17 = smov %s6690_s18 }
0x1460   : > { %s7631_s18 = smov %s6694_s19  ;;  %s7632_s19 = smov %s7070_s1 }
0x1461   : > { %s7633_s20 = smov %s7059_s14  ;;  %31 = sbr.rel (!%p29_p8) target bundleno = 14 (0xe), region = 149 }
0x1468   :  { %4970 = vsyncpa [#allocation3], 1 }
0x1469   :  { %4972 = vsyncpa [#allocation3 + $0x1], 1 }
0x146a   :  { %4973 = vsyncpa [#allocation6], 1 }
0x146b   :  { %4974 = vsyncpa [#allocation9], 1 }
0x146c   :  { %4975 = vsyncpa [#allocation12], 1 }
0x146d   :  { %4976 = vsyncpa [#allocation15], 1 }
0x146e   :  { %4977 = vsyncpa [#allocation18], 1 }
0x146f   :  { %4978 = vsyncpa [#allocation4], 1 }
0x1470   :  { %4980 = vsyncpa [#allocation4 + $0x1], 1 }

</bundles_post_ra>
